<compile_context>
chip_gen: v7x
topology: tpu7x:2x2x1
jax: 0.10.0
libtpu: 0.0.40
codegen_flags: <defaults>
</compile_context>

<pallas_src>
import functools

import jax
import jax.numpy as jnp
from jax.experimental import pallas as pl
from jax.experimental.pallas import tpu as pltpu


def _round_up(a, m):
    return (a + m - 1) // m * m


# ----------------------------- Pallas kernel ------------------------------ #
def mil_kernel(x_ref,       # (B, XLEN)  zero-padded images, row-major flattened
               bias_ref,    # (1, NP)    additive score mask: 0 valid / -1e30 pad
               wconv_ref,   # (C, 9)     conv weight (flattened 3x3, Cin=1)
               bconv_ref,   # (C, 1)     conv bias
               vt_ref,      # (L, C)     attention projection (transposed)
               watt_ref,    # (1, L)     attention vector (transposed)
               wcls_ref,    # (C, NC)    classifier weight
               bcls_ref,    # (1, NC)    classifier bias
               logits_ref,  # (B, NC)    output logits (whole batch, one store)
               *, tap_offsets):
    x_all = x_ref[...]                                   # (B, XLEN)
    bias = bias_ref[...]                                 # (1, NP)
    wconv = wconv_ref[...]                               # (C, 9)
    bconv = bconv_ref[...]                               # (C, 1)
    vt_bf = vt_ref[...].astype(jnp.bfloat16)             # hoisted, loop-invariant
    watt = watt_ref[...]                                 # (1, L)

    batch = x_all.shape[0]
    n_ch = wconv.shape[0]
    n_pos = bias.shape[1]                                # NP, multiple of 128

    pooled_rows = []
    for b in range(batch):                               # static unroll (B tiny)
        # --- 3x3 conv fused as 9 statically shifted VPU FMAs -> (C, NP). ---
        feat = jnp.zeros((n_ch, n_pos), jnp.float32)
        for t, off in enumerate(tap_offsets):
            tap = x_all[b:b + 1, off:off + n_pos]        # (1, NP) static slice
            feat = feat + wconv[:, t:t + 1] * tap        # (C,1)*(1,NP) -> (C,NP)
        feat = jnp.maximum(feat + bconv, 0.0)            # conv bias + ReLU

        # --- MIL attention: instances on the lane axis (lane-dense). ---
        feat_bf = feat.astype(jnp.bfloat16)
        att = jnp.tanh(jnp.dot(vt_bf, feat_bf,
                               preferred_element_type=jnp.float32))   # (L, NP)
        scores = jnp.dot(watt, att,
                         preferred_element_type=jnp.float32) + bias   # (1, NP)

        # Masked, numerically-stable softmax over the lane axis.
        m = jnp.max(scores, axis=-1, keepdims=True)
        e = jnp.exp(scores - m)
        a = e / jnp.sum(e, axis=-1, keepdims=True)                    # (1, NP)

        # --- attention pooling as an MXU contraction over NP. ---
        pooled = jax.lax.dot_general(
            a.astype(jnp.bfloat16), feat_bf,
            dimension_numbers=(((1,), (1,)), ((), ())),
            preferred_element_type=jnp.float32)                       # (1, C)
        pooled_rows.append(pooled)

    pooled_all = jnp.concatenate(pooled_rows, axis=0)                 # (B, C)

    # --- classifier; single batched (B, NC) store. ---
    logits_ref[...] = (jnp.dot(pooled_all, wcls_ref[...],
                               preferred_element_type=jnp.float32)
                       + bcls_ref[...])


# ------------------------------ JAX wrapper -------------------------------- #
def model_wrapper_forward(x, params):
    """Equivalent of ModelWrapper(model)(x): returns logits of shape (B, NC)."""
    # x.unsqueeze(1): (B, H, W) -> (B, 1, H, W).  Cin == 1 is implicit below.
    B, H, W = x.shape
    Hp, Wp = H + 2, W + 2
    wconv, bconv, vt, watt, wcls, bcls = params
    NC = wcls.shape[1]

    # Flat-position bookkeeping: output position (i, j) lives at p = i*Wp + j
    # in the row-major flattened *padded* image; tap (di, dj) is a constant
    # lane offset di*Wp + dj.  Positions with i >= H or j >= W are garbage and
    # are masked out of the softmax by an additive -1e30 bias.
    NP = _round_up((H - 1) * Wp + W, 128)                # lane-dense #instances
    max_off = 2 * Wp + 2
    XLEN = _round_up(max(NP + max_off, Hp * Wp), 128)

    xp = jnp.pad(x, ((0, 0), (1, 1), (1, 1)))            # (B, Hp, Wp), pad=1
    x_flat = xp.reshape(B, Hp * Wp)
    x_flat = jnp.pad(x_flat, ((0, 0), (0, XLEN - Hp * Wp)))

    pos = jnp.arange(NP)
    valid = ((pos // Wp) < H) & ((pos % Wp) < W)
    score_bias = jnp.where(valid, 0.0, -1e30).astype(jnp.float32)[None, :]

    taps = tuple(di * Wp + dj for di in range(3) for dj in range(3))
    kernel = functools.partial(mil_kernel, tap_offsets=taps)

    # Whole problem fits in VMEM with huge margin -> one grid-free invocation,
    # whole arrays resident in VMEM.
    vmem = pl.BlockSpec(memory_space=pltpu.MemorySpace.VMEM)
    return pl.pallas_call(
        kernel,
        out_shape=jax.ShapeDtypeStruct((B, NC), jnp.float32),
        in_specs=[vmem] * 8,
        out_specs=vmem,
    )(x_flat, score_bias, wconv, bconv, vt, watt, wcls, bcls)


# --------------------------- pure-JAX reference ---------------------------- #
def reference_forward(x, params):
    B, H, W = x.shape
    wconv, bconv, vt, watt, wcls, bcls = params
    xp = jnp.pad(x, ((0, 0), (1, 1), (1, 1)))
    cols = [xp[:, di:di + H, dj:dj + W] for di in range(3) for dj in range(3)]
    patches = jnp.stack(cols, axis=-1).reshape(B, H * W, 9)           # (B,N,9)
    feat = jnp.maximum(jnp.einsum('bnk,ck->bnc', patches, wconv)
                       + bconv[:, 0], 0.0)                            # (B,N,C)
    att = jnp.tanh(jnp.einsum('bnc,lc->bnl', feat, vt))               # (B,N,L)
    scores = jnp.einsum('bnl,l->bn', att, watt[0])                    # (B,N)
    a = jax.nn.softmax(scores, axis=-1)                               # (B,N)
    pooled = jnp.einsum('bn,bnc->bc', a, feat)                        # (B,C)
    return pooled @ wcls + bcls                                       # (B,NC)


def init_params(key, C=32, L=16, num_classes=2):
    k1, k2, k3, k4 = jax.random.split(key, 4)
    wconv = jax.random.normal(k1, (C, 9), jnp.float32) * 0.1
    bconv = jnp.zeros((C, 1), jnp.float32)
    vt = jax.random.normal(k2, (L, C), jnp.float32) * 0.1
    watt = jax.random.normal(k3, (1, L), jnp.float32) * 0.1
    wcls = jax.random.normal(k4, (C, num_classes), jnp.float32) * 0.1
    bcls = jnp.zeros((1, num_classes), jnp.float32)
    return (wconv, bconv, vt, watt, wcls, bcls)


if __name__ == "__main__":
    key = jax.random.PRNGKey(0)
    kx, kp = jax.random.split(key)

    B, H, W = 2, 16, 16                     # unsqueeze(1) -> (B, 1, 16, 16)
    x = jax.random.normal(kx, (B, H, W), jnp.float32)
    params = init_params(kp, C=32, L=16, num_classes=2)

    logits = jax.block_until_ready(jax.jit(model_wrapper_forward)(x, params))
    ref = jax.block_until_ready(reference_forward(x, params))

    assert logits.shape == (B, 2) and logits.dtype == jnp.float32
    assert bool(jnp.all(jnp.isfinite(logits)))
    assert bool(jnp.allclose(logits, ref, atol=3e-2, rtol=3e-2)), (logits, ref)
    print("KERNEL_OK")
</pallas_src>

<mosaic_0001>
module attributes {stable_mosaic.version = 11 : i64} {
  func.func @mil_kernel(%arg0: memref<2x512xf32, #tpu.memory_space<vmem>>, %arg1: memref<1x384xf32, #tpu.memory_space<vmem>>, %arg2: memref<32x9xf32, #tpu.memory_space<vmem>>, %arg3: memref<32x1xf32, #tpu.memory_space<vmem>>, %arg4: memref<16x32xf32, #tpu.memory_space<vmem>>, %arg5: memref<1x16xf32, #tpu.memory_space<vmem>>, %arg6: memref<32x2xf32, #tpu.memory_space<vmem>>, %arg7: memref<1x2xf32, #tpu.memory_space<vmem>>, %arg8: memref<2x2xf32, #tpu.memory_space<vmem>>) attributes {dimension_semantics = [], scalar_prefetch = 0 : i64, scratch_operands = 0 : i64, tpu.core_type = #tpu.core_type<tc>} {
    %c0 = arith.constant 0 : index
    %c0_0 = arith.constant 0 : index
    %0 = vector.load %arg0[%c0, %c0_0] : memref<2x512xf32, #tpu.memory_space<vmem>>, vector<2x512xf32>
    %c0_1 = arith.constant 0 : index
    %c0_2 = arith.constant 0 : index
    %1 = vector.load %arg1[%c0_1, %c0_2] : memref<1x384xf32, #tpu.memory_space<vmem>>, vector<1x384xf32>
    %c0_3 = arith.constant 0 : index
    %c0_4 = arith.constant 0 : index
    %2 = vector.load %arg2[%c0_3, %c0_4] : memref<32x9xf32, #tpu.memory_space<vmem>>, vector<32x9xf32>
    %c0_5 = arith.constant 0 : index
    %c0_6 = arith.constant 0 : index
    %3 = vector.load %arg3[%c0_5, %c0_6] : memref<32x1xf32, #tpu.memory_space<vmem>>, vector<32x1xf32>
    %c0_7 = arith.constant 0 : index
    %c0_8 = arith.constant 0 : index
    %4 = vector.load %arg4[%c0_7, %c0_8] : memref<16x32xf32, #tpu.memory_space<vmem>>, vector<16x32xf32>
    %5 = arith.truncf %4 : vector<16x32xf32> to vector<16x32xbf16>
    %c0_9 = arith.constant 0 : index
    %c0_10 = arith.constant 0 : index
    %6 = vector.load %arg5[%c0_9, %c0_10] : memref<1x16xf32, #tpu.memory_space<vmem>>, vector<1x16xf32>
    %cst = arith.constant 0.000000e+00 : f32
    %7 = vector.broadcast %cst : f32 to vector<32x384xf32>
    %8 = vector.extract_strided_slice %0 {offsets = [0, 0], sizes = [1, 384], strides = [1, 1]} : vector<2x512xf32> to vector<1x384xf32>
    %9 = vector.extract_strided_slice %2 {offsets = [0, 0], sizes = [32, 1], strides = [1, 1]} : vector<32x9xf32> to vector<32x1xf32>
    %10 = vector.broadcast %9 : vector<32x1xf32> to vector<32x384xf32>
    %11 = vector.broadcast %8 : vector<1x384xf32> to vector<32x384xf32>
    %12 = arith.mulf %10, %11 : vector<32x384xf32>
    %13 = arith.addf %7, %12 : vector<32x384xf32>
    %14 = vector.extract_strided_slice %0 {offsets = [0, 1], sizes = [1, 384], strides = [1, 1]} : vector<2x512xf32> to vector<1x384xf32>
    %15 = vector.extract_strided_slice %2 {offsets = [0, 1], sizes = [32, 1], strides = [1, 1]} : vector<32x9xf32> to vector<32x1xf32>
    %16 = vector.broadcast %15 : vector<32x1xf32> to vector<32x384xf32>
    %17 = vector.broadcast %14 : vector<1x384xf32> to vector<32x384xf32>
    %18 = arith.mulf %16, %17 : vector<32x384xf32>
    %19 = arith.addf %13, %18 : vector<32x384xf32>
    %20 = vector.extract_strided_slice %0 {offsets = [0, 2], sizes = [1, 384], strides = [1, 1]} : vector<2x512xf32> to vector<1x384xf32>
    %21 = vector.extract_strided_slice %2 {offsets = [0, 2], sizes = [32, 1], strides = [1, 1]} : vector<32x9xf32> to vector<32x1xf32>
    %22 = vector.broadcast %21 : vector<32x1xf32> to vector<32x384xf32>
    %23 = vector.broadcast %20 : vector<1x384xf32> to vector<32x384xf32>
    %24 = arith.mulf %22, %23 : vector<32x384xf32>
    %25 = arith.addf %19, %24 : vector<32x384xf32>
    %26 = vector.extract_strided_slice %0 {offsets = [0, 18], sizes = [1, 384], strides = [1, 1]} : vector<2x512xf32> to vector<1x384xf32>
    %27 = vector.extract_strided_slice %2 {offsets = [0, 3], sizes = [32, 1], strides = [1, 1]} : vector<32x9xf32> to vector<32x1xf32>
    %28 = vector.broadcast %27 : vector<32x1xf32> to vector<32x384xf32>
    %29 = vector.broadcast %26 : vector<1x384xf32> to vector<32x384xf32>
    %30 = arith.mulf %28, %29 : vector<32x384xf32>
    %31 = arith.addf %25, %30 : vector<32x384xf32>
    %32 = vector.extract_strided_slice %0 {offsets = [0, 19], sizes = [1, 384], strides = [1, 1]} : vector<2x512xf32> to vector<1x384xf32>
    %33 = vector.extract_strided_slice %2 {offsets = [0, 4], sizes = [32, 1], strides = [1, 1]} : vector<32x9xf32> to vector<32x1xf32>
    %34 = vector.broadcast %33 : vector<32x1xf32> to vector<32x384xf32>
    %35 = vector.broadcast %32 : vector<1x384xf32> to vector<32x384xf32>
    %36 = arith.mulf %34, %35 : vector<32x384xf32>
    %37 = arith.addf %31, %36 : vector<32x384xf32>
    %38 = vector.extract_strided_slice %0 {offsets = [0, 20], sizes = [1, 384], strides = [1, 1]} : vector<2x512xf32> to vector<1x384xf32>
    %39 = vector.extract_strided_slice %2 {offsets = [0, 5], sizes = [32, 1], strides = [1, 1]} : vector<32x9xf32> to vector<32x1xf32>
    %40 = vector.broadcast %39 : vector<32x1xf32> to vector<32x384xf32>
    %41 = vector.broadcast %38 : vector<1x384xf32> to vector<32x384xf32>
    %42 = arith.mulf %40, %41 : vector<32x384xf32>
    %43 = arith.addf %37, %42 : vector<32x384xf32>
    %44 = vector.extract_strided_slice %0 {offsets = [0, 36], sizes = [1, 384], strides = [1, 1]} : vector<2x512xf32> to vector<1x384xf32>
    %45 = vector.extract_strided_slice %2 {offsets = [0, 6], sizes = [32, 1], strides = [1, 1]} : vector<32x9xf32> to vector<32x1xf32>
    %46 = vector.broadcast %45 : vector<32x1xf32> to vector<32x384xf32>
    %47 = vector.broadcast %44 : vector<1x384xf32> to vector<32x384xf32>
    %48 = arith.mulf %46, %47 : vector<32x384xf32>
    %49 = arith.addf %43, %48 : vector<32x384xf32>
    %50 = vector.extract_strided_slice %0 {offsets = [0, 37], sizes = [1, 384], strides = [1, 1]} : vector<2x512xf32> to vector<1x384xf32>
    %51 = vector.extract_strided_slice %2 {offsets = [0, 7], sizes = [32, 1], strides = [1, 1]} : vector<32x9xf32> to vector<32x1xf32>
    %52 = vector.broadcast %51 : vector<32x1xf32> to vector<32x384xf32>
    %53 = vector.broadcast %50 : vector<1x384xf32> to vector<32x384xf32>
    %54 = arith.mulf %52, %53 : vector<32x384xf32>
    %55 = arith.addf %49, %54 : vector<32x384xf32>
    %56 = vector.extract_strided_slice %0 {offsets = [0, 38], sizes = [1, 384], strides = [1, 1]} : vector<2x512xf32> to vector<1x384xf32>
    %57 = vector.extract_strided_slice %2 {offsets = [0, 8], sizes = [32, 1], strides = [1, 1]} : vector<32x9xf32> to vector<32x1xf32>
    %58 = vector.broadcast %57 : vector<32x1xf32> to vector<32x384xf32>
    %59 = vector.broadcast %56 : vector<1x384xf32> to vector<32x384xf32>
    %60 = arith.mulf %58, %59 : vector<32x384xf32>
    %61 = arith.addf %55, %60 : vector<32x384xf32>
    %62 = vector.broadcast %3 : vector<32x1xf32> to vector<32x384xf32>
    %63 = arith.addf %61, %62 : vector<32x384xf32>
    %cst_11 = arith.constant 0.000000e+00 : f32
    %64 = vector.broadcast %cst_11 : f32 to vector<32x384xf32>
    %65 = arith.maximumf %63, %64 : vector<32x384xf32>
    %66 = arith.truncf %65 : vector<32x384xf32> to vector<32x384xbf16>
    %cst_12 = arith.constant dense<0.000000e+00> : vector<16x384xf32>
    %67 = tpu.matmul %5, %66, %cst_12 {dimension_numbers = #tpu.dot_dimension_numbers<[1], [0], [0], [1], [0, 0, 1, 1], [], []>} : vector<16x32xbf16>, vector<32x384xbf16>, vector<16x384xf32> -> vector<16x384xf32>
    %68 = math.tanh %67 : vector<16x384xf32>
    %cst_13 = arith.constant dense<0.000000e+00> : vector<1x384xf32>
    %69 = tpu.matmul %6, %68, %cst_13 {dimension_numbers = #tpu.dot_dimension_numbers<[1], [0], [0], [1], [0, 0, 1, 1], [], []>} : vector<1x16xf32>, vector<16x384xf32>, vector<1x384xf32> -> vector<1x384xf32>
    %70 = arith.addf %69, %1 : vector<1x384xf32>
    %cst_14 = arith.constant dense<0xFF800000> : vector<1xf32>
    %71 = vector.multi_reduction <maximumf>, %70, %cst_14 [1] : vector<1x384xf32> to vector<1xf32>
    %72 = vector.shape_cast %71 : vector<1xf32> to vector<1x1xf32>
    %73 = vector.broadcast %72 : vector<1x1xf32> to vector<1x384xf32>
    %74 = arith.subf %70, %73 : vector<1x384xf32>
    %75 = math.exp %74 : vector<1x384xf32>
    %cst_15 = arith.constant dense<0.000000e+00> : vector<1xf32>
    %76 = vector.multi_reduction <add>, %75, %cst_15 [1] : vector<1x384xf32> to vector<1xf32>
    %77 = vector.shape_cast %76 : vector<1xf32> to vector<1x1xf32>
    %78 = vector.broadcast %77 : vector<1x1xf32> to vector<1x384xf32>
    %79 = arith.divf %75, %78 : vector<1x384xf32>
    %80 = arith.truncf %79 : vector<1x384xf32> to vector<1x384xbf16>
    %cst_16 = arith.constant dense<0.000000e+00> : vector<1x32xf32>
    %81 = tpu.matmul %80, %66, %cst_16 {dimension_numbers = #tpu.dot_dimension_numbers<[1], [1], [0], [0], [0, 0, 1, 0], [], []>} : vector<1x384xbf16>, vector<32x384xbf16>, vector<1x32xf32> -> vector<1x32xf32>
    %cst_17 = arith.constant 0.000000e+00 : f32
    %82 = vector.broadcast %cst_17 : f32 to vector<32x384xf32>
    %83 = vector.extract_strided_slice %0 {offsets = [1, 0], sizes = [1, 384], strides = [1, 1]} : vector<2x512xf32> to vector<1x384xf32>
    %84 = vector.extract_strided_slice %2 {offsets = [0, 0], sizes = [32, 1], strides = [1, 1]} : vector<32x9xf32> to vector<32x1xf32>
    %85 = vector.broadcast %84 : vector<32x1xf32> to vector<32x384xf32>
    %86 = vector.broadcast %83 : vector<1x384xf32> to vector<32x384xf32>
    %87 = arith.mulf %85, %86 : vector<32x384xf32>
    %88 = arith.addf %82, %87 : vector<32x384xf32>
    %89 = vector.extract_strided_slice %0 {offsets = [1, 1], sizes = [1, 384], strides = [1, 1]} : vector<2x512xf32> to vector<1x384xf32>
    %90 = vector.extract_strided_slice %2 {offsets = [0, 1], sizes = [32, 1], strides = [1, 1]} : vector<32x9xf32> to vector<32x1xf32>
    %91 = vector.broadcast %90 : vector<32x1xf32> to vector<32x384xf32>
    %92 = vector.broadcast %89 : vector<1x384xf32> to vector<32x384xf32>
    %93 = arith.mulf %91, %92 : vector<32x384xf32>
    %94 = arith.addf %88, %93 : vector<32x384xf32>
    %95 = vector.extract_strided_slice %0 {offsets = [1, 2], sizes = [1, 384], strides = [1, 1]} : vector<2x512xf32> to vector<1x384xf32>
    %96 = vector.extract_strided_slice %2 {offsets = [0, 2], sizes = [32, 1], strides = [1, 1]} : vector<32x9xf32> to vector<32x1xf32>
    %97 = vector.broadcast %96 : vector<32x1xf32> to vector<32x384xf32>
    %98 = vector.broadcast %95 : vector<1x384xf32> to vector<32x384xf32>
    %99 = arith.mulf %97, %98 : vector<32x384xf32>
    %100 = arith.addf %94, %99 : vector<32x384xf32>
    %101 = vector.extract_strided_slice %0 {offsets = [1, 18], sizes = [1, 384], strides = [1, 1]} : vector<2x512xf32> to vector<1x384xf32>
    %102 = vector.extract_strided_slice %2 {offsets = [0, 3], sizes = [32, 1], strides = [1, 1]} : vector<32x9xf32> to vector<32x1xf32>
    %103 = vector.broadcast %102 : vector<32x1xf32> to vector<32x384xf32>
    %104 = vector.broadcast %101 : vector<1x384xf32> to vector<32x384xf32>
    %105 = arith.mulf %103, %104 : vector<32x384xf32>
    %106 = arith.addf %100, %105 : vector<32x384xf32>
    %107 = vector.extract_strided_slice %0 {offsets = [1, 19], sizes = [1, 384], strides = [1, 1]} : vector<2x512xf32> to vector<1x384xf32>
    %108 = vector.extract_strided_slice %2 {offsets = [0, 4], sizes = [32, 1], strides = [1, 1]} : vector<32x9xf32> to vector<32x1xf32>
    %109 = vector.broadcast %108 : vector<32x1xf32> to vector<32x384xf32>
    %110 = vector.broadcast %107 : vector<1x384xf32> to vector<32x384xf32>
    %111 = arith.mulf %109, %110 : vector<32x384xf32>
    %112 = arith.addf %106, %111 : vector<32x384xf32>
    %113 = vector.extract_strided_slice %0 {offsets = [1, 20], sizes = [1, 384], strides = [1, 1]} : vector<2x512xf32> to vector<1x384xf32>
    %114 = vector.extract_strided_slice %2 {offsets = [0, 5], sizes = [32, 1], strides = [1, 1]} : vector<32x9xf32> to vector<32x1xf32>
    %115 = vector.broadcast %114 : vector<32x1xf32> to vector<32x384xf32>
    %116 = vector.broadcast %113 : vector<1x384xf32> to vector<32x384xf32>
    %117 = arith.mulf %115, %116 : vector<32x384xf32>
    %118 = arith.addf %112, %117 : vector<32x384xf32>
    %119 = vector.extract_strided_slice %0 {offsets = [1, 36], sizes = [1, 384], strides = [1, 1]} : vector<2x512xf32> to vector<1x384xf32>
    %120 = vector.extract_strided_slice %2 {offsets = [0, 6], sizes = [32, 1], strides = [1, 1]} : vector<32x9xf32> to vector<32x1xf32>
    %121 = vector.broadcast %120 : vector<32x1xf32> to vector<32x384xf32>
    %122 = vector.broadcast %119 : vector<1x384xf32> to vector<32x384xf32>
    %123 = arith.mulf %121, %122 : vector<32x384xf32>
    %124 = arith.addf %118, %123 : vector<32x384xf32>
    %125 = vector.extract_strided_slice %0 {offsets = [1, 37], sizes = [1, 384], strides = [1, 1]} : vector<2x512xf32> to vector<1x384xf32>
    %126 = vector.extract_strided_slice %2 {offsets = [0, 7], sizes = [32, 1], strides = [1, 1]} : vector<32x9xf32> to vector<32x1xf32>
    %127 = vector.broadcast %126 : vector<32x1xf32> to vector<32x384xf32>
    %128 = vector.broadcast %125 : vector<1x384xf32> to vector<32x384xf32>
    %129 = arith.mulf %127, %128 : vector<32x384xf32>
    %130 = arith.addf %124, %129 : vector<32x384xf32>
    %131 = vector.extract_strided_slice %0 {offsets = [1, 38], sizes = [1, 384], strides = [1, 1]} : vector<2x512xf32> to vector<1x384xf32>
    %132 = vector.extract_strided_slice %2 {offsets = [0, 8], sizes = [32, 1], strides = [1, 1]} : vector<32x9xf32> to vector<32x1xf32>
    %133 = vector.broadcast %132 : vector<32x1xf32> to vector<32x384xf32>
    %134 = vector.broadcast %131 : vector<1x384xf32> to vector<32x384xf32>
    %135 = arith.mulf %133, %134 : vector<32x384xf32>
    %136 = arith.addf %130, %135 : vector<32x384xf32>
    %137 = vector.broadcast %3 : vector<32x1xf32> to vector<32x384xf32>
    %138 = arith.addf %136, %137 : vector<32x384xf32>
    %cst_18 = arith.constant 0.000000e+00 : f32
    %139 = vector.broadcast %cst_18 : f32 to vector<32x384xf32>
    %140 = arith.maximumf %138, %139 : vector<32x384xf32>
    %141 = arith.truncf %140 : vector<32x384xf32> to vector<32x384xbf16>
    %cst_19 = arith.constant dense<0.000000e+00> : vector<16x384xf32>
    %142 = tpu.matmul %5, %141, %cst_19 {dimension_numbers = #tpu.dot_dimension_numbers<[1], [0], [0], [1], [0, 0, 1, 1], [], []>} : vector<16x32xbf16>, vector<32x384xbf16>, vector<16x384xf32> -> vector<16x384xf32>
    %143 = math.tanh %142 : vector<16x384xf32>
    %cst_20 = arith.constant dense<0.000000e+00> : vector<1x384xf32>
    %144 = tpu.matmul %6, %143, %cst_20 {dimension_numbers = #tpu.dot_dimension_numbers<[1], [0], [0], [1], [0, 0, 1, 1], [], []>} : vector<1x16xf32>, vector<16x384xf32>, vector<1x384xf32> -> vector<1x384xf32>
    %145 = arith.addf %144, %1 : vector<1x384xf32>
    %cst_21 = arith.constant dense<0xFF800000> : vector<1xf32>
    %146 = vector.multi_reduction <maximumf>, %145, %cst_21 [1] : vector<1x384xf32> to vector<1xf32>
    %147 = vector.shape_cast %146 : vector<1xf32> to vector<1x1xf32>
    %148 = vector.broadcast %147 : vector<1x1xf32> to vector<1x384xf32>
    %149 = arith.subf %145, %148 : vector<1x384xf32>
    %150 = math.exp %149 : vector<1x384xf32>
    %cst_22 = arith.constant dense<0.000000e+00> : vector<1xf32>
    %151 = vector.multi_reduction <add>, %150, %cst_22 [1] : vector<1x384xf32> to vector<1xf32>
    %152 = vector.shape_cast %151 : vector<1xf32> to vector<1x1xf32>
    %153 = vector.broadcast %152 : vector<1x1xf32> to vector<1x384xf32>
    %154 = arith.divf %150, %153 : vector<1x384xf32>
    %155 = arith.truncf %154 : vector<1x384xf32> to vector<1x384xbf16>
    %cst_23 = arith.constant dense<0.000000e+00> : vector<1x32xf32>
    %156 = tpu.matmul %155, %141, %cst_23 {dimension_numbers = #tpu.dot_dimension_numbers<[1], [1], [0], [0], [0, 0, 1, 0], [], []>} : vector<1x384xbf16>, vector<32x384xbf16>, vector<1x32xf32> -> vector<1x32xf32>
    %157 = tpu.concatenate %81, %156 in 0 : vector<1x32xf32>, vector<1x32xf32> -> vector<2x32xf32>
    %c0_24 = arith.constant 0 : index
    %c0_25 = arith.constant 0 : index
    %158 = vector.load %arg6[%c0_24, %c0_25] : memref<32x2xf32, #tpu.memory_space<vmem>>, vector<32x2xf32>
    %cst_26 = arith.constant dense<0.000000e+00> : vector<2x2xf32>
    %159 = tpu.matmul %157, %158, %cst_26 {dimension_numbers = #tpu.dot_dimension_numbers<[1], [0], [0], [1], [0, 0, 1, 1], [], []>} : vector<2x32xf32>, vector<32x2xf32>, vector<2x2xf32> -> vector<2x2xf32>
    %c0_27 = arith.constant 0 : index
    %c0_28 = arith.constant 0 : index
    %160 = vector.load %arg7[%c0_27, %c0_28] : memref<1x2xf32, #tpu.memory_space<vmem>>, vector<1x2xf32>
    %161 = vector.broadcast %160 : vector<1x2xf32> to vector<2x2xf32>
    %162 = arith.addf %159, %161 : vector<2x2xf32>
    %c0_29 = arith.constant 0 : index
    %c0_30 = arith.constant 0 : index
    %163 = vector.load %arg8[%c0_29, %c0_30] : memref<2x2xf32, #tpu.memory_space<vmem>>, vector<2x2xf32>
    tpu.vector_store %arg8[%c0_29, %c0_30], %162 {strides = array<i32>} : memref<2x2xf32, #tpu.memory_space<vmem>>, vector<2x2xf32>,
    return
  }
}

</mosaic_0001>

<bundles_post_ra>
// kernel: model_wrapper_forward.1
= control target key start
LH: loop header
LB: loop body
LE: loop exit
PB: predicated region body
PF: predicated region fallthrough
CT: control target
= control target key end

     0   :  { %v66_v1 = vlaneseq  ;;  %v3039_v2 = vmov 1   ;;  %v3040_v3 = vmov 2   ;;  %s5213_s0 = inlined_call_operand.vmem [shape: f32[2,512], index: 0, kind: input, shape index: {}]   ;;  %s5214_s1 = inlined_call_operand.vmem [shape: f32[1,384], index: 1, kind: input, shape index: {}]   ;;  %s5215_s2 = inlined_call_operand.vmem [shape: f32[32,9], index: 2, kind: input, shape index: {}]   ;;  %s5216_s3 = inlined_call_operand.vmem [shape: f32[32,1], index: 3, kind: input, shape index: {}]   ;;  %s5217_s4 = inlined_call_operand.vmem [shape: f32[16,32], index: 4, kind: input, shape index: {}]   ;;  %s5218_s5 = inlined_call_operand.vmem [shape: f32[1,16], index: 5, kind: input, shape index: {}]   ;;  %s5219_s6 = inlined_call_operand.vmem [shape: f32[32,2], index: 6, kind: input, shape index: {}]   ;;  %s5220_s7 = inlined_call_operand.vmem [shape: f32[1,2], index: 7, kind: input, shape index: {}]   ;;  %s5221_s8 = inlined_call_operand.hbm [shape: f32[2,2], index: 8, kind: output, shape index: {}]  }
   0x1   :  { %v3108_v0 = vld [vmem:[%s5215_s2] sm:$0xff]  ;;  %2952 = vset.pattern.permute.xlu0 %v3039_v2  ;;  %2953 = vset.pattern.permute.xlu1 %v3040_v3 }
   0x2   :  { %118 = vperm.xlu0 %2952, %v3108_v0   ;;  %244 = vperm.xlu1 %2953, %v3108_v0   ;;  %v3112_v4 = vshrl.u32 %v66_v1, 7 }
   0x4   :  { %5362 = vst [vmem:[#allocation5_spill] sm:$0xff] %v3112_v4 }
   0x5   :  { %13 = vsyncpa [#allocation3], 0  ;;  %v3117_v5 = vld [vmem:[%s5215_s2 + $0x8] sm:$0xff]  ;;  %v5223_v6 = vmov 0   ;;  %v3123_v7 = vld [vmem:[%s5213_s0] sm:$0xff]  ;;  %v135_v8 = vsub.s32 6, %v3112_v4 }
   0x6   :  { %1148 = vmatprep.mubr.bf16.mxu0 %v5223_v6  ;;  %v1488_v9 = vsub.s32 5, %v3112_v4  ;;  %v1484_v10 = vsub.s32 3, %v3112_v4  ;;  %v1531_v11 = vsub.s32 7, %v3112_v4  ;;  %122 = vperm.xlu0 %2952, %v3117_v5   ;;  %v3134_v12 = vld [vmem:[%s5215_s2 + $0x10] sm:$0xff]  ;;  %v36_v16 = vld [vmem:[%s5215_s2 + $0x18] sm:$0xff]  ;;  %v3042_v18 = vmov 3  }
   0x7   :  { %248 = vperm.xlu1 %2953, %v3117_v5   ;;  %v3137_v13 = vrot.slane %v3123_v7, %v135_v8  ;;  %v3043_v19 = vmov 4   ;;  %v3044_v20 = vmov 5   ;;  %v3045_v21 = vmov 6   ;;  %s3048_s2 = smov 127   ;;  %s3049_s14 = smov 126  }
   0x8   :  { %v3140_v14 = vrot.slane %v3123_v7, %v1488_v9  ;;  %v3143_v15 = vrot.slane %v3123_v7, %v1484_v10  ;;  %v3149_v17 = vrot.slane %v3123_v7, %v1531_v11  ;;  %v3046_v22 = vmov 8   ;;  %s3050_s15 = smov 110   ;;  %s3051_s16 = smov 109  }
   0x9   :  { %v3047_v23 = vmov 7   ;;  %v76_v24 = vsub.s32 4, %v3112_v4  ;;  %v5222_v25 = vsub.s32 2, %v3112_v4  ;;  %v3183_v28 = vsub.s32 0, %v3112_v4  ;;  %s3052_s17 = smov 108   ;;  %s3053_s18 = smov 92  }
   0xa   :  { %5363 = vst [vmem:[#allocation6_spill] sm:$0xff] %v3149_v17  ;;  %126 = vperm.xlu0 %2952, %v3134_v12   ;;  %s3054_s23 = smov 91   ;;  %s3055_s24 = smov 90   ;;  %vm3056_vm0 = vmmov 0   ;;  %vm206_vm1 = vcmask 1039360   ;;  %vm323_vm2 = vcmask 1031168  }
   0xb   :  { %2954 = vset.pattern.permute.xlu1 %v3039_v2  ;;  %v77_v26 = vrot.slane %v3123_v7, %v76_v24  ;;  %v73_v27 = vrot.slane %v3123_v7, %v5222_v25  ;;  %5364 = vst [vmem:[#allocation7_spill] sm:$0xff] %v3183_v28  ;;  %v69_v35 = vrot.slane %v3123_v7, %v3183_v28  ;;  %vm440_vm3 = vcmask 900096   ;;  %s3059_s19 = smov [#allocation2]  }
   0xc   :  { %130 = vperm.xlu1 %2954, %v36_v16   ;;  %vm557_vm4 = vcmask 891904   ;;  %vm674_vm5 = vcmask 883712   ;;  %vm791_vm6 = vcmask 752640   ;;  %vm908_vm7 = vcmask 744448   ;;  %s2805_s20 = sshll.u32 %s3059_s19, 4  ;;  %s2806_s20 = int_to_ptr.vmem [resolvable:$true] %s2805_s20 }
   0xd   :  { %v3186_v29 = vrot.slane %v77_v26, %v3183_v28  ;;  %v3189_v30 = vrot.slane %v73_v27, %v3183_v28  ;;  %v3210_v39 = vrot.slane %v69_v35, %v3183_v28  ;;  %vm1025_vm8 = vcmask 736256   ;;  %p3020_p1 = scmp.lt.s32.totalorder %s2806_s20, %s2806_s20 }
   0xe   :  { %2957 = vset.pattern.permute.xlu0 %v3040_v3  ;;  %vm1112_vm9 = vcmask 261120   ;;  %vm1222_vm10 = vcmask 130048   ;;  %vm1367_vm11 = vcmask 1040384   ;;  %vm2797_vm12 = vcmask 9216  }
   0xf   :  { %256 = vperm.xlu0 %2957, %v36_v16   ;;  %5365 = vst [vmem:[#allocation8_spill] sm:$0xff] %v3186_v29 }
  0x10   :  { %2955 = vset.pattern.permute.xlu1 %v3042_v18 }
  0x11   :  { %365 = vperm.xlu1 %2955, %v3117_v5  }
  0x13   :  { %2958 = vset.pattern.permute.xlu0 %v3042_v18 }
  0x14   :  { %361 = vperm.xlu0 %2958, %v3108_v0  }
  0x15   :  { %2956 = vset.pattern.permute.xlu1 %v3040_v3 }
  0x16   :  { %252 = vperm.xlu1 %2956, %v3134_v12  }
  0x18   :  { %369 = vperm.xlu0 %2958, %v3134_v12  }
  0x1a   :  { %2959 = vset.pattern.permute.xlu1 %v3043_v19 }
  0x1b   :  { %478 = vperm.xlu1 %2959, %v3108_v0  }
  0x1c   :  { %2962 = vset.pattern.permute.xlu0 %v3044_v20 }
  0x1d   :  { %599 = vperm.xlu0 %2962, %v3117_v5  }
  0x1f   :  { %482 = vperm.xlu1 %2959, %v3117_v5  }
  0x21   :  { %607 = vperm.xlu0 %2962, %v36_v16  }
  0x23   :  { %2960 = vset.pattern.permute.xlu1 %v3042_v18 }
  0x24   :  { %373 = vperm.xlu1 %2960, %v36_v16  }
  0x25   :  { %2966 = vset.pattern.permute.xlu0 %v3045_v21 }
  0x26   :  { %712 = vperm.xlu0 %2966, %v3108_v0  }
  0x28   :  { %2961 = vset.pattern.permute.xlu1 %v3044_v20 }
  0x29   :  { %595 = vperm.xlu1 %2961, %v3108_v0  }
  0x2a   :  { %720 = vperm.xlu0 %2966, %v3134_v12  }
  0x2d   :  { %2963 = vset.pattern.permute.xlu1 %v3043_v19 }
  0x2e   :  { %486 = vperm.xlu1 %2963, %v3134_v12   ;;  %2970 = vset.pattern.permute.xlu0 %v3046_v22 }
  0x2f   :  { %950 = vperm.xlu0 %2970, %v3117_v5  }
  0x32   :  { %490 = vperm.xlu1 %2963, %v36_v16  }
  0x33   :  { %954 = vperm.xlu0 %2970, %v3134_v12  }
  0x36   :  { %2964 = vset.pattern.permute.xlu1 %v3045_v21 }
  0x37   :  { %716 = vperm.xlu1 %2964, %v3117_v5   ;;  %2973 = vset.pattern.permute.xlu0 %v5223_v6 }
  0x38   :  { %47 = vperm.xlu0 %2973, %v3108_v0  }
  0x3b   :  { %2965 = vset.pattern.permute.xlu1 %v3044_v20 }
  0x3c   :  { %603 = vperm.xlu1 %2965, %v3134_v12   ;;  %62 = vperm.xlu0 %2973, %v36_v16  }
  0x40   :  { %2967 = vset.pattern.permute.xlu1 %v3047_v23 }
  0x41   :  { %829 = vperm.xlu1 %2967, %v3108_v0  }
  0x45   :  { %833 = vperm.xlu1 %2967, %v3117_v5  }
  0x49   :  { %2968 = vset.pattern.permute.xlu1 %v3045_v21 }
  0x4a   :  { %724 = vperm.xlu1 %2968, %v36_v16  }
  0x4e   :  { %2969 = vset.pattern.permute.xlu1 %v3046_v22 }
  0x4f   :  { %946 = vperm.xlu1 %2969, %v3108_v0  }
  0x53   :  { %2971 = vset.pattern.permute.xlu1 %v3047_v23 }
  0x54   :  { %837 = vperm.xlu1 %2971, %v3134_v12  }
  0x58   :  { %841 = vperm.xlu1 %2971, %v36_v16  }
  0x5c   :  { %2972 = vset.pattern.permute.xlu1 %v3046_v22 }
  0x5d   :  { %958 = vperm.xlu1 %2972, %v36_v16  }
  0x61   :  { %2974 = vset.pattern.permute.xlu1 %v5223_v6 }
  0x62   :  { %52 = vperm.xlu1 %2974, %v3117_v5  }
  0x66   :  { %57 = vperm.xlu1 %2974, %v3134_v12  }
  0x81   :  { %v3191_v31 = vpop.permute.xlu0 %118  ;;  %v3197_v34 = vpop.permute.xlu1 %244 }
  0x82   :  { %5366 = vst [vmem:[#allocation9_spill] sm:$0xff] %v3191_v31  ;;  %v144_v32 = vmul.f32 %v3191_v31, %v3186_v29  ;;  %v143_v33 = vmul.f32 %v3191_v31, %v3189_v30  ;;  %5367 = vst [vmem:[#allocation10_spill] sm:$0xff] %v3197_v34  ;;  %v142_v42 = vmul.f32 %v3191_v31, %v3210_v39 }
  0x83   :  { %v261_v43 = vmul.f32 %v3197_v34, %v3186_v29  ;;  %v260_v44 = vmul.f32 %v3197_v34, %v3189_v30  ;;  %v259_v52 = vmul.f32 %v3197_v34, %v3210_v39 }
  0x84   :  { %178 = vrot.lane.b32.xlu0 %v144_v32, %s3048_s2  ;;  %176 = vrot.lane.b32.xlu1 %v143_v33, %s3048_s2 }
  0x85   :  { %v3203_v36 = vpop.permute.xlu0 %122 }
  0x86   :  { %5368 = vst [vmem:[#allocation11_spill] sm:$0xff] %v3203_v36  ;;  %v148_v37 = vmul.f32 %v3203_v36, %v3186_v29  ;;  %v147_v38 = vmul.f32 %v3203_v36, %v3189_v30  ;;  %v3214_v40 = vpop.permute.xlu1 %248  ;;  %v146_v41 = vmul.f32 %v3203_v36, %v3210_v39 }
  0x87   :  { %5369 = vst [vmem:[#allocation12_spill] sm:$0xff] %v3214_v40  ;;  %v265_v47 = vmul.f32 %v3214_v40, %v3186_v29  ;;  %v264_v48 = vmul.f32 %v3214_v40, %v3189_v30  ;;  %v263_v51 = vmul.f32 %v3214_v40, %v3210_v39 }
  0x88   :  { %186 = vrot.lane.b32.xlu0 %v148_v37, %s3048_s2  ;;  %184 = vrot.lane.b32.xlu1 %v147_v38, %s3048_s2 }
  0x89   :  { %v3240_v50 = vpop.permute.xlu0 %126 }
  0x8a   :  { %5373 = vst [vmem:[#allocation16_spill] sm:$0xff] %v3240_v50  ;;  %v152_v55 = vmul.f32 %v3240_v50, %v3186_v29  ;;  %v151_v56 = vmul.f32 %v3240_v50, %v3189_v30  ;;  %v150_v5 = vmul.f32 %v3240_v50, %v3210_v39 }
  0x8b   :  { %v3226_v45 = vpop.permute.xlu1 %130 }
  0x8c   :  { %182 = vrot.lane.b32.xlu0 %v146_v41, %s3048_s2  ;;  %174 = vrot.lane.b32.xlu1 %v142_v42, %s3048_s2  ;;  %5370 = vst [vmem:[#allocation13_spill] sm:$0xff] %v3226_v45  ;;  %v156_v57 = vmul.f32 %v3226_v45, %v3186_v29  ;;  %v155_v58 = vmul.f32 %v3226_v45, %v3189_v30 }
  0x8d   :  { %v154_v3 = vmul.f32 %v3226_v45, %v3210_v39 }
  0x8e   :  { %v3248_v53 = vpop.permute.xlu0 %256 }
  0x8f   :  { %5374 = vst [vmem:[#allocation17_spill] sm:$0xff] %v3248_v53  ;;  %v273_v19 = vmul.f32 %v3248_v53, %v3186_v29  ;;  %v272_v20 = vmul.f32 %v3248_v53, %v3189_v30  ;;  %v271_v32 = vmul.f32 %v3248_v53, %v3210_v39 }
  0x90   :  { %295 = vrot.lane.b32.xlu0 %v261_v43, %s3049_s14  ;;  %293 = vrot.lane.b32.xlu1 %v260_v44, %s3049_s14  ;;  %v3230_v46 = vpop.permute.xlu1 %365 }
  0x91   :  { %5371 = vst [vmem:[#allocation14_spill] sm:$0xff] %v3230_v46  ;;  %v382_v0 = vmul.f32 %v3230_v46, %v3186_v29  ;;  %v381_v1 = vmul.f32 %v3230_v46, %v3189_v30  ;;  %v380_v9 = vmul.f32 %v3230_v46, %v3210_v39 }
  0x93   :  { %v3264_v60 = vpop.permute.xlu0 %361 }
  0x94   :  { %303 = vrot.lane.b32.xlu0 %v265_v47, %s3049_s14  ;;  %301 = vrot.lane.b32.xlu1 %v264_v48, %s3049_s14  ;;  %5377 = vst [vmem:[#allocation20_spill] sm:$0xff] %v3264_v60  ;;  %v378_v61 = vmul.f32 %v3264_v60, %v3186_v29  ;;  %v377_v62 = vmul.f32 %v3264_v60, %v3189_v30 }
  0x95   :  { %v3238_v49 = vpop.permute.xlu1 %252  ;;  %v376_v10 = vmul.f32 %v3264_v60, %v3210_v39 }
  0x96   :  { %5372 = vst [vmem:[#allocation15_spill] sm:$0xff] %v3238_v49  ;;  %v269_v12 = vmul.f32 %v3238_v49, %v3186_v29  ;;  %v268_v16 = vmul.f32 %v3238_v49, %v3189_v30  ;;  %v267_v33 = vmul.f32 %v3238_v49, %v3210_v39 }
  0x97   :  { %v3334_v35 = vpop.permute.xlu0 %369 }
  0x98   :  { %299 = vrot.lane.b32.xlu0 %v263_v51, %s3049_s14  ;;  %291 = vrot.lane.b32.xlu1 %v259_v52, %s3049_s14  ;;  %v386_v43 = vmul.f32 %v3334_v35, %v3186_v29  ;;  %v385_v44 = vmul.f32 %v3334_v35, %v3189_v30 }
  0x9a   :  { %v3250_v54 = vpop.permute.xlu1 %478 }
  0x9b   :  { %5375 = vst [vmem:[#allocation18_spill] sm:$0xff] %v3250_v54  ;;  %v495_v21 = vmul.f32 %v3250_v54, %v3186_v29  ;;  %v494_v22 = vmul.f32 %v3250_v54, %v3189_v30  ;;  %v493_v38 = vmul.f32 %v3250_v54, %v3210_v39 }
  0x9c   :  { %194 = vrot.lane.b32.xlu0 %v152_v55, %s3048_s2  ;;  %192 = vrot.lane.b32.xlu1 %v151_v56, %s3048_s2  ;;  %v3346_v42 = vpop.permute.xlu0 %599 }
  0x9d   :  { %5385 = vst [vmem:[#allocation28_spill] sm:$0xff] %v3346_v42 }
  0x9e   :  { %v3262_v59 = vpop.permute.xlu1 %482 }
  0x9f   :  { %5376 = vst [vmem:[#allocation19_spill] sm:$0xff] %v3262_v59  ;;  %v499_v24 = vmul.f32 %v3262_v59, %v3186_v29  ;;  %v498_v26 = vmul.f32 %v3262_v59, %v3189_v30  ;;  %v497_v37 = vmul.f32 %v3262_v59, %v3210_v39 }
  0xa0   :  { %202 = vrot.lane.b32.xlu0 %v156_v57, %s3048_s2  ;;  %200 = vrot.lane.b32.xlu1 %v155_v58, %s3048_s2  ;;  %v3360_v52 = vpop.permute.xlu0 %607 }
  0xa1   :  { %5387 = vst [vmem:[#allocation30_spill] sm:$0xff] %v3360_v52 }
  0xa3   :  { %v3272_v63 = vpop.permute.xlu1 %373 }
  0xa4   :  { %412 = vrot.lane.b32.xlu0 %v378_v61, %s3050_s15  ;;  %410 = vrot.lane.b32.xlu1 %v377_v62, %s3050_s15  ;;  %v390_v48 = vmul.f32 %v3272_v63, %v3186_v29  ;;  %v389_v51 = vmul.f32 %v3272_v63, %v3189_v30  ;;  %v616_v61 = vmul.f32 %v3346_v42, %v3186_v29 }
  0xa5   :  { %v3370_v58 = vpop.permute.xlu0 %712  ;;  %v615_v62 = vmul.f32 %v3346_v42, %v3189_v30 }
  0xa6   :  { %5389 = vst [vmem:[#allocation32_spill] sm:$0xff] %v3370_v58 }
  0xa8   :  { %v3280_v2 = vpop.permute.xlu1 %595  ;;  %420 = vrot.lane.b32.xlu0 %v382_v0, %s3050_s15  ;;  %418 = vrot.lane.b32.xlu1 %v381_v1, %s3050_s15  ;;  %v3380_v0 = vrot.slane %v3137_v13, %v3183_v28  ;;  %v388_v13 = vmul.f32 %v3272_v63, %v3210_v39 }
  0xa9   :  { %5378 = vst [vmem:[#allocation21_spill] sm:$0xff] %v3280_v2  ;;  %v612_v55 = vmul.f32 %v3280_v2, %v3186_v29  ;;  %v611_v56 = vmul.f32 %v3280_v2, %v3189_v30 }
  0xac   :  { %198 = vrot.lane.b32.xlu0 %v154_v3, %s3048_s2  ;;  %190 = vrot.lane.b32.xlu1 %v150_v5, %s3048_s2  ;;  %v3386_v3 = vpop.permute.xlu0 %720  ;;  %v149_v5 = vmul.f32 %v3380_v0, %v3203_v36 }
  0xad   :  { %v3290_v8 = vpop.permute.xlu1 %486  ;;  %5391 = vst [vmem:[#allocation34_spill] sm:$0xff] %v3386_v3 }
  0xae   :  { %5379 = vst [vmem:[#allocation22_spill] sm:$0xff] %v3290_v8 }
  0xb0   :  { %416 = vrot.lane.b32.xlu0 %v380_v9, %s3050_s15  ;;  %408 = vrot.lane.b32.xlu1 %v376_v10, %s3050_s15  ;;  %v145_v9 = vmul.f32 %v3380_v0, %v3191_v31  ;;  %v384_v10 = vmul.f32 %v3334_v35, %v3210_v39 }
  0xb1   :  { %v3298_v11 = vpop.permute.xlu1 %490 }
  0xb2   :  { %5380 = vst [vmem:[#allocation23_spill] sm:$0xff] %v3298_v11 }
  0xb4   :  { %311 = vrot.lane.b32.xlu0 %v269_v12, %s3049_s14  ;;  %309 = vrot.lane.b32.xlu1 %v268_v16, %s3049_s14  ;;  %v3400_v16 = vpop.permute.xlu0 %950 }
  0xb5   :  { %5393 = vst [vmem:[#allocation36_spill] sm:$0xff] %v3400_v16 }
  0xb6   :  { %v3306_v18 = vpop.permute.xlu1 %716 }
  0xb7   :  { %5381 = vst [vmem:[#allocation24_spill] sm:$0xff] %v3306_v18 }
  0xb8   :  { %319 = vrot.lane.b32.xlu0 %v273_v19, %s3049_s14  ;;  %317 = vrot.lane.b32.xlu1 %v272_v20, %s3049_s14  ;;  %v614_v19 = vmul.f32 %v3346_v42, %v3210_v39  ;;  %v610_v20 = vmul.f32 %v3280_v2, %v3210_v39 }
  0xbb   :  { %v3318_v23 = vpop.permute.xlu1 %603 }
  0xbc   :  { %5382 = vst [vmem:[#allocation25_spill] sm:$0xff] %v3318_v23  ;;  %529 = vrot.lane.b32.xlu0 %v495_v21, %s3051_s16  ;;  %527 = vrot.lane.b32.xlu1 %v494_v22, %s3051_s16  ;;  %v3412_v22 = vpop.permute.xlu0 %954 }
  0xbd   :  { %5395 = vst [vmem:[#allocation38_spill] sm:$0xff] %v3412_v22 }
  0xc0   :  { %537 = vrot.lane.b32.xlu0 %v499_v24, %s3051_s16  ;;  %535 = vrot.lane.b32.xlu1 %v498_v26, %s3051_s16  ;;  %v3328_v27 = vpop.permute.xlu1 %829  ;;  %v503_v24 = vmul.f32 %v3290_v8, %v3186_v29  ;;  %v502_v26 = vmul.f32 %v3290_v8, %v3189_v30 }
  0xc1   :  { %5383 = vst [vmem:[#allocation26_spill] sm:$0xff] %v3328_v27 }
  0xc4   :  { %315 = vrot.lane.b32.xlu0 %v271_v32, %s3049_s14  ;;  %307 = vrot.lane.b32.xlu1 %v267_v33, %s3049_s14  ;;  %v3342_v41 = vpop.permute.xlu1 %833  ;;  %v507_v32 = vmul.f32 %v3298_v11, %v3186_v29  ;;  %v506_v33 = vmul.f32 %v3298_v11, %v3189_v30 }
  0xc5   :  { %5384 = vst [vmem:[#allocation27_spill] sm:$0xff] %v3342_v41  ;;  %v849_v17 = vmul.f32 %v3342_v41, %v3189_v30 }
  0xc8   :  { %533 = vrot.lane.b32.xlu0 %v497_v37, %s3051_s16  ;;  %525 = vrot.lane.b32.xlu1 %v493_v38, %s3051_s16  ;;  %v3426_v38 = vpop.permute.xlu0 %47 }
  0xc9   :  { %v3354_v47 = vpop.permute.xlu1 %724 }
  0xca   :  { %5386 = vst [vmem:[#allocation29_spill] sm:$0xff] %v3354_v47 }
  0xcc   :  { %428 = vrot.lane.b32.xlu0 %v386_v43, %s3050_s15  ;;  %426 = vrot.lane.b32.xlu1 %v385_v44, %s3050_s15  ;;  %v729_v43 = vmul.f32 %v3370_v58, %v3186_v29  ;;  %v728_v44 = vmul.f32 %v3370_v58, %v3189_v30 }
  0xce   :  { %v3368_v57 = vpop.permute.xlu1 %946 }
  0xcf   :  { %5388 = vst [vmem:[#allocation31_spill] sm:$0xff] %v3368_v57 }
  0xd0   :  { %436 = vrot.lane.b32.xlu0 %v390_v48, %s3050_s15  ;;  %434 = vrot.lane.b32.xlu1 %v389_v51, %s3050_s15  ;;  %v3438_v51 = vpop.permute.xlu0 %62 }
  0xd1   :  { %5397 = vst [vmem:[#allocation40_spill] sm:$0xff] %v3438_v51 }
  0xd3   :  { %v3384_v1 = vpop.permute.xlu1 %837 }
  0xd4   :  { %646 = vrot.lane.b32.xlu0 %v612_v55, %s3052_s17  ;;  %644 = vrot.lane.b32.xlu1 %v611_v56, %s3052_s17  ;;  %5390 = vst [vmem:[#allocation33_spill] sm:$0xff] %v3384_v1  ;;  %v733_v55 = vmul.f32 %v3306_v18, %v3186_v29  ;;  %v732_v56 = vmul.f32 %v3306_v18, %v3189_v30 }
  0xd7   :  { %v3398_v12 = vpop.permute.xlu1 %841 }
  0xd8   :  { %654 = vrot.lane.b32.xlu0 %v616_v61, %s3052_s17  ;;  %652 = vrot.lane.b32.xlu1 %v615_v62, %s3052_s17  ;;  %5392 = vst [vmem:[#allocation35_spill] sm:$0xff] %v3398_v12  ;;  %v38_v61 = vld [vmem:[%s5216_s3 + $0x8] sm:$0xff]  ;;  %v37_v62 = vld [vmem:[%s5216_s3] sm:$0xff] }
  0xdc   :  { %188 = vrot.lane.b32.xlu0 %v149_v5, %s3048_s2  ;;  %180 = vrot.lane.b32.xlu1 %v145_v9, %s3048_s2  ;;  %v3410_v21 = vpop.permute.xlu1 %958 }
  0xdd   :  { %5394 = vst [vmem:[#allocation37_spill] sm:$0xff] %v3410_v21 }
  0xe0   :  { %432 = vrot.lane.b32.xlu0 %v388_v13, %s3050_s15  ;;  %424 = vrot.lane.b32.xlu1 %v384_v10, %s3050_s15 }
  0xe1   :  { %v3424_v37 = vpop.permute.xlu1 %52 }
  0xe4   :  { %650 = vrot.lane.b32.xlu0 %v614_v19, %s3052_s17  ;;  %642 = vrot.lane.b32.xlu1 %v610_v20, %s3052_s17  ;;  %v266_v19 = vmul.f32 %v3214_v40, %v3380_v0  ;;  %v262_v20 = vmul.f32 %v3197_v34, %v3380_v0 }
  0xe5   :  { %v3436_v48 = vpop.permute.xlu1 %57 }
  0xe6   :  { %5396 = vst [vmem:[#allocation39_spill] sm:$0xff] %v3436_v48 }
  0xe8   :  { %545 = vrot.lane.b32.xlu0 %v503_v24, %s3051_s16  ;;  %543 = vrot.lane.b32.xlu1 %v502_v26, %s3051_s16 }
  0xec   :  { %553 = vrot.lane.b32.xlu0 %v507_v32, %s3051_s16  ;;  %551 = vrot.lane.b32.xlu1 %v506_v33, %s3051_s16  ;;  %v505_v32 = vmul.f32 %v3298_v11, %v3210_v39  ;;  %v501_v33 = vmul.f32 %v3290_v8, %v3210_v39 }
  0xf0   :  { %763 = vrot.lane.b32.xlu0 %v729_v43, %s3053_s18  ;;  %761 = vrot.lane.b32.xlu1 %v728_v44, %s3053_s18 }
  0xf4   :  { %771 = vrot.lane.b32.xlu0 %v733_v55, %s3053_s18  ;;  %769 = vrot.lane.b32.xlu1 %v732_v56, %s3053_s18  ;;  %v731_v55 = vmul.f32 %v3306_v18, %v3210_v39  ;;  %v727_v56 = vmul.f32 %v3370_v58, %v3210_v39 }
  0xf6   :  { %v3452_v5 = vpop.permute.xlu0 %178  ;;  %v3454_v9 = vpop.permute.xlu1 %176 }
  0xf7   :  { %5398 = vst [vmem:[#allocation41_spill] sm:$0xff] %v3452_v5 }
  0xf8   :  { %1069 = vperm.xlu0 %2973, %v38_v61   ;;  %1064 = vperm.xlu1 %2974, %v37_v62  }
  0xfa   :  { %v3456_v13 = vpop.permute.xlu0 %186  ;;  %v3458_v10 = vpop.permute.xlu1 %184 }
  0xfb   :  { %5399 = vst [vmem:[#allocation42_spill] sm:$0xff] %v3456_v13 }
  0xfc   :  { %305 = vrot.lane.b32.xlu0 %v266_v19, %s3049_s14  ;;  %297 = vrot.lane.b32.xlu1 %v262_v20, %s3049_s14  ;;  %v620_v19 = vmul.f32 %v3318_v23, %v3186_v29  ;;  %v619_v20 = vmul.f32 %v3318_v23, %v3189_v30 }
  0xfe   :  { %v3466_v24 = vpop.permute.xlu0 %182  ;;  %v3468_v26 = vpop.permute.xlu1 %174 }
  0xff   :  { %5400 = vst [vmem:[#allocation43_spill] sm:$0xff] %v3466_v24  ;;  %5401 = vst [vmem:[#allocation44_spill] sm:$0xff] %v3468_v26 }
 0x100   :  { %549 = vrot.lane.b32.xlu0 %v505_v32, %s3051_s16  ;;  %541 = vrot.lane.b32.xlu1 %v501_v33, %s3051_s16 }
 0x102   :  { %v3476_v43 = vpop.permute.xlu0 %295  ;;  %v3478_v44 = vpop.permute.xlu1 %293 }
 0x103   :  { %5402 = vst [vmem:[#allocation45_spill] sm:$0xff] %v3476_v43 }
 0x104   :  { %767 = vrot.lane.b32.xlu0 %v731_v55, %s3053_s18  ;;  %759 = vrot.lane.b32.xlu1 %v727_v56, %s3053_s18  ;;  %v624_v55 = vmul.f32 %v3360_v52, %v3186_v29  ;;  %v623_v56 = vmul.f32 %v3360_v52, %v3189_v30 }
 0x106   :  { %v3486_v61 = vpop.permute.xlu0 %303  ;;  %v3488_v62 = vpop.permute.xlu1 %301 }
 0x107   :  { %5403 = vst [vmem:[#allocation46_spill] sm:$0xff] %v3486_v61 }
 0x108   :  { %662 = vrot.lane.b32.xlu0 %v620_v19, %s3052_s17  ;;  %660 = vrot.lane.b32.xlu1 %v619_v20, %s3052_s17  ;;  %v846_v19 = vmul.f32 %v3328_v27, %v3186_v29  ;;  %v845_v20 = vmul.f32 %v3328_v27, %v3189_v30 }
 0x10a   :  { %v3496_v32 = vpop.permute.xlu0 %299  ;;  %v3498_v33 = vpop.permute.xlu1 %291 }
 0x10b   :  { %5404 = vst [vmem:[#allocation47_spill] sm:$0xff] %v3496_v32  ;;  %5405 = vst [vmem:[#allocation48_spill] sm:$0xff] %v3498_v33 }
 0x10c   :  { %670 = vrot.lane.b32.xlu0 %v624_v55, %s3052_s17  ;;  %668 = vrot.lane.b32.xlu1 %v623_v56, %s3052_s17  ;;  %v850_v56 = vmul.f32 %v3342_v41, %v3186_v29 }
 0x10e   :  { %v3506_v25 = vpop.permute.xlu0 %194  ;;  %v3508_v6 = vpop.permute.xlu1 %192 }
 0x10f   :  { %5406 = vst [vmem:[#allocation49_spill] sm:$0xff] %v3506_v25  ;;  %5407 = vst [vmem:[#allocation50_spill] sm:$0xff] %v3508_v6 }
 0x110   :  { %880 = vrot.lane.b32.xlu0 %v846_v19, %s3054_s23  ;;  %878 = vrot.lane.b32.xlu1 %v845_v20, %s3054_s23  ;;  %v157_v19 = vmul.f32 %v3380_v0, %v3226_v45  ;;  %v153_v20 = vmul.f32 %v3380_v0, %v3240_v50 }
 0x112   :  { %v3516_v28 = vpop.permute.xlu0 %202  ;;  %v3518_v55 = vpop.permute.xlu1 %200 }
 0x113   :  { %5408 = vst [vmem:[#allocation51_spill] sm:$0xff] %v3516_v28  ;;  %5409 = vst [vmem:[#allocation52_spill] sm:$0xff] %v3518_v55 }
 0x114   :  { %888 = vrot.lane.b32.xlu0 %v850_v56, %s3054_s23  ;;  %886 = vrot.lane.b32.xlu1 %v849_v17, %s3054_s23  ;;  %v383_v17 = vmul.f32 %v3230_v46, %v3380_v0  ;;  %v379_v56 = vmul.f32 %v3264_v60, %v3380_v0 }
 0x116   :  { %v3526_v51 = vpop.permute.xlu0 %412  ;;  %v3528_v48 = vpop.permute.xlu1 %410 }
 0x117   :  { %5410 = vst [vmem:[#allocation53_spill] sm:$0xff] %v3526_v51 }
 0x118   :  { %204 = vrot.lane.b32.xlu0 %v157_v19, %s3048_s2  ;;  %196 = vrot.lane.b32.xlu1 %v153_v20, %s3048_s2  ;;  %v622_v19 = vmul.f32 %v3360_v52, %v3210_v39  ;;  %v618_v20 = vmul.f32 %v3318_v23, %v3210_v39 }
 0x11a   :  { %v3536_v55 = vpop.permute.xlu0 %420  ;;  %v3538_v28 = vpop.permute.xlu1 %418 }
 0x11b   :  { %5411 = vst [vmem:[#allocation54_spill] sm:$0xff] %v3536_v55 }
 0x11c   :  { %422 = vrot.lane.b32.xlu0 %v383_v17, %s3050_s15  ;;  %414 = vrot.lane.b32.xlu1 %v379_v56, %s3050_s15  ;;  %v848_v17 = vmul.f32 %v3342_v41, %v3210_v39  ;;  %v844_v56 = vmul.f32 %v3328_v27, %v3210_v39 }
 0x11e   :  { %v3546_v6 = vpop.permute.xlu0 %198  ;;  %v3548_v25 = vpop.permute.xlu1 %190 }
 0x11f   :  { %5412 = vst [vmem:[#allocation55_spill] sm:$0xff] %v3546_v6  ;;  %5413 = vst [vmem:[#allocation56_spill] sm:$0xff] %v3548_v25 }
 0x120   :  { %666 = vrot.lane.b32.xlu0 %v622_v19, %s3052_s17  ;;  %658 = vrot.lane.b32.xlu1 %v618_v20, %s3052_s17  ;;  %v737_v19 = vmul.f32 %v3386_v3, %v3186_v29  ;;  %v736_v20 = vmul.f32 %v3386_v3, %v3189_v30 }
 0x122   :  { %v3556_v33 = vpop.permute.xlu0 %416  ;;  %v3558_v32 = vpop.permute.xlu1 %408 }
 0x123   :  { %5414 = vst [vmem:[#allocation57_spill] sm:$0xff] %v3556_v33  ;;  %5415 = vst [vmem:[#allocation58_spill] sm:$0xff] %v3558_v32 }
 0x124   :  { %884 = vrot.lane.b32.xlu0 %v848_v17, %s3054_s23  ;;  %876 = vrot.lane.b32.xlu1 %v844_v56, %s3054_s23  ;;  %v741_v17 = vmul.f32 %v3354_v47, %v3186_v29  ;;  %v740_v56 = vmul.f32 %v3354_v47, %v3189_v30 }
 0x126   :  { %v3566_v25 = vpop.permute.xlu0 %311  ;;  %v3568_v6 = vpop.permute.xlu1 %309 }
 0x127   :  { %5416 = vst [vmem:[#allocation59_spill] sm:$0xff] %v3566_v25  ;;  %5417 = vst [vmem:[#allocation60_spill] sm:$0xff] %v3568_v6 }
 0x128   :  { %779 = vrot.lane.b32.xlu0 %v737_v19, %s3053_s18  ;;  %777 = vrot.lane.b32.xlu1 %v736_v20, %s3053_s18  ;;  %v963_v19 = vmul.f32 %v3368_v57, %v3186_v29  ;;  %v962_v20 = vmul.f32 %v3368_v57, %v3189_v30 }
 0x12a   :  { %v3576_v32 = vpop.permute.xlu0 %319  ;;  %v3578_v33 = vpop.permute.xlu1 %317 }
 0x12b   :  { %5418 = vst [vmem:[#allocation61_spill] sm:$0xff] %v3576_v32  ;;  %5419 = vst [vmem:[#allocation62_spill] sm:$0xff] %v3578_v33  ;;  %v966_v32 = vmul.f32 %v3400_v16, %v3189_v30 }
 0x12c   :  { %787 = vrot.lane.b32.xlu0 %v741_v17, %s3053_s18  ;;  %785 = vrot.lane.b32.xlu1 %v740_v56, %s3053_s18  ;;  %v967_v56 = vmul.f32 %v3400_v16, %v3186_v29 }
 0x12e   :  { %v3586_v6 = vpop.permute.xlu0 %529  ;;  %v3588_v25 = vpop.permute.xlu1 %527 }
 0x12f   :  { %5420 = vst [vmem:[#allocation63_spill] sm:$0xff] %v3586_v6 }
 0x130   :  { %997 = vrot.lane.b32.xlu0 %v963_v19, %s3055_s24  ;;  %995 = vrot.lane.b32.xlu1 %v962_v20, %s3055_s24  ;;  %v40_v19 = vld [vmem:[%s5216_s3 + $0x18] sm:$0xff]  ;;  %v39_v20 = vld [vmem:[%s5216_s3 + $0x10] sm:$0xff] }
 0x132   :  { %v3596_v33 = vpop.permute.xlu0 %537  ;;  %v3598_v17 = vpop.permute.xlu1 %535 }
 0x133   :  { %5421 = vst [vmem:[#allocation64_spill] sm:$0xff] %v3596_v33  ;;  %5422 = vst [vmem:[#allocation65_spill] sm:$0xff] %v3598_v17 }
 0x134   :  { %1005 = vrot.lane.b32.xlu0 %v967_v56, %s3055_s24  ;;  %1003 = vrot.lane.b32.xlu1 %v966_v32, %s3055_s24  ;;  %v274_v32 = vmul.f32 %v3248_v53, %v3380_v0  ;;  %v270_v56 = vmul.f32 %v3238_v49, %v3380_v0 }
 0x136   :  { %v3612_v26 = vpop.permute.xlu0 %315  ;;  %v3614_v24 = vpop.permute.xlu1 %307 }
 0x137   :  { %5423 = vst [vmem:[#allocation66_spill] sm:$0xff] %v3612_v26  ;;  %5424 = vst [vmem:[#allocation67_spill] sm:$0xff] %v3614_v24 }
 0x138   :  { %1079 = vperm.xlu0 %2973, %v40_v19   ;;  %1074 = vperm.xlu1 %2974, %v39_v20   ;;  %v500_v19 = vmul.f32 %v3262_v59, %v3380_v0  ;;  %v496_v20 = vmul.f32 %v3250_v54, %v3380_v0  ;;  %v858_v59 = vmul.f32 %v3398_v12, %v3186_v29 }
 0x13a   :  { %v3616_v46 = vpop.permute.xlu0 %533  ;;  %v3618_v60 = vpop.permute.xlu1 %525 }
 0x13b   :  { %5425 = vst [vmem:[#allocation68_spill] sm:$0xff] %v3616_v46  ;;  %5426 = vst [vmem:[#allocation69_spill] sm:$0xff] %v3618_v60  ;;  %v391_v60 = vmul.f32 %v3272_v63, %v3380_v0 }
 0x13c   :  { %321 = vrot.lane.b32.xlu0 %v274_v32, %s3049_s14  ;;  %313 = vrot.lane.b32.xlu1 %v270_v56, %s3049_s14  ;;  %v739_v32 = vmul.f32 %v3354_v47, %v3210_v39  ;;  %v735_v56 = vmul.f32 %v3386_v3, %v3210_v39 }
 0x13e   :  { %v3626_v17 = vpop.permute.xlu0 %428  ;;  %v3628_v26 = vpop.permute.xlu1 %426 }
 0x13f   :  { %5427 = vst [vmem:[#allocation70_spill] sm:$0xff] %v3626_v17  ;;  %5428 = vst [vmem:[#allocation71_spill] sm:$0xff] %v3628_v26 }
 0x140   :  { %539 = vrot.lane.b32.xlu0 %v500_v19, %s3051_s16  ;;  %531 = vrot.lane.b32.xlu1 %v496_v20, %s3051_s16  ;;  %v965_v19 = vmul.f32 %v3400_v16, %v3210_v39  ;;  %v961_v20 = vmul.f32 %v3368_v57, %v3210_v39 }
 0x142   :  { %v3636_v24 = vpop.permute.xlu0 %436  ;;  %v3638_v53 = vpop.permute.xlu1 %434 }
 0x143   :  { %5429 = vst [vmem:[#allocation72_spill] sm:$0xff] %v3636_v24  ;;  %5430 = vst [vmem:[#allocation73_spill] sm:$0xff] %v3638_v53 }
 0x144   :  { %783 = vrot.lane.b32.xlu0 %v739_v32, %s3053_s18  ;;  %775 = vrot.lane.b32.xlu1 %v735_v56, %s3053_s18  ;;  %v854_v32 = vmul.f32 %v3384_v1, %v3186_v29  ;;  %v853_v56 = vmul.f32 %v3384_v1, %v3189_v30 }
 0x146   :  { %v3646_v26 = vpop.permute.xlu0 %646  ;;  %v3648_v17 = vpop.permute.xlu1 %644 }
 0x147   :  { %5431 = vst [vmem:[#allocation74_spill] sm:$0xff] %v3646_v26 }
 0x148   :  { %1001 = vrot.lane.b32.xlu0 %v965_v19, %s3055_s24  ;;  %993 = vrot.lane.b32.xlu1 %v961_v20, %s3055_s24  ;;  %v857_v19 = vmul.f32 %v3398_v12, %v3189_v30 }
 0x14a   :  { %v3656_v53 = vpop.permute.xlu0 %654  ;;  %v3658_v24 = vpop.permute.xlu1 %652 }
 0x14b   :  { %5432 = vst [vmem:[#allocation75_spill] sm:$0xff] %v3656_v53 }
 0x14c   :  { %896 = vrot.lane.b32.xlu0 %v854_v32, %s3054_s23  ;;  %894 = vrot.lane.b32.xlu1 %v853_v56, %s3054_s23  ;;  %v387_v32 = vmul.f32 %v3334_v35, %v3380_v0 }
 0x14e   :  { %v3670_v20 = vpop.permute.xlu0 %188  ;;  %v3672_v54 = vpop.permute.xlu1 %180 }
 0x14f   :  { %5433 = vst [vmem:[#allocation76_spill] sm:$0xff] %v3670_v20  ;;  %5434 = vst [vmem:[#allocation77_spill] sm:$0xff] %v3672_v54  ;;  %v617_v54 = vmul.f32 %v3346_v42, %v3380_v0  ;;  %v975_v42 = vmul.f32 %v3410_v21, %v3186_v29 }
 0x150   :  { %904 = vrot.lane.b32.xlu0 %v858_v59, %s3054_s23  ;;  %902 = vrot.lane.b32.xlu1 %v857_v19, %s3054_s23  ;;  %v613_v59 = vmul.f32 %v3280_v2, %v3380_v0  ;;  %v856_v19 = vmul.f32 %v3398_v12, %v3210_v39 }
 0x152   :  { %v3682_v56 = vpop.permute.xlu0 %432  ;;  %v3684_v46 = vpop.permute.xlu1 %424 }
 0x153   :  { %5435 = vst [vmem:[#allocation78_spill] sm:$0xff] %v3682_v56  ;;  %5436 = vst [vmem:[#allocation79_spill] sm:$0xff] %v3684_v46  ;;  %v971_v46 = vmul.f32 %v3412_v22, %v3186_v29  ;;  %v734_v29 = vmul.f32 %v3306_v18, %v3380_v0 }
 0x154   :  { %438 = vrot.lane.b32.xlu0 %v391_v60, %s3050_s15  ;;  %430 = vrot.lane.b32.xlu1 %v387_v32, %s3050_s15  ;;  %v852_v60 = vmul.f32 %v3384_v1, %v3210_v39 }
 0x156   :  { %v3696_v32 = vpop.permute.xlu0 %650  ;;  %v3698_v20 = vpop.permute.xlu1 %642 }
 0x158   :  { %656 = vrot.lane.b32.xlu0 %v617_v54, %s3052_s17  ;;  %648 = vrot.lane.b32.xlu1 %v613_v59, %s3052_s17  ;;  %v970_v54 = vmul.f32 %v3412_v22, %v3189_v30 }
 0x15a   :  { %v3708_v59 = vpop.permute.xlu0 %545  ;;  %v3710_v56 = vpop.permute.xlu1 %543 }
 0x15b   :  { %5437 = vst [vmem:[#allocation80_spill] sm:$0xff] %v3708_v59 }
 0x15c   :  { %900 = vrot.lane.b32.xlu0 %v856_v19, %s3054_s23  ;;  %892 = vrot.lane.b32.xlu1 %v852_v60, %s3054_s23  ;;  %v974_v19 = vmul.f32 %v3410_v21, %v3189_v30  ;;  %v508_v60 = vmul.f32 %v3298_v11, %v3380_v0 }
 0x15e   :  { %v3724_v2 = vpop.permute.xlu1 %551 }
 0x160   :  { %1013 = vrot.lane.b32.xlu0 %v971_v46, %s3055_s24  ;;  %1011 = vrot.lane.b32.xlu1 %v970_v54, %s3055_s24  ;;  %v504_v46 = vmul.f32 %v3290_v8, %v3380_v0  ;;  %v3722_v54 = vpop.permute.xlu0 %553  ;;  %v973_v8 = vmul.f32 %v3410_v21, %v3210_v39 }
 0x161   :  { %5438 = vst [vmem:[#allocation81_spill] sm:$0xff] %v3722_v54 }
 0x162   :  { %v3736_v11 = vpop.permute.xlu1 %761 }
 0x164   :  { %1021 = vrot.lane.b32.xlu0 %v975_v42, %s3055_s24  ;;  %1019 = vrot.lane.b32.xlu1 %v974_v19, %s3055_s24  ;;  %v730_v42 = vmul.f32 %v3370_v58, %v3380_v0  ;;  %v3734_v19 = vpop.permute.xlu0 %763  ;;  %v851_v58 = vmul.f32 %v3342_v41, %v3380_v0 }
 0x165   :  { %5439 = vst [vmem:[#allocation82_spill] sm:$0xff] %v3734_v19 }
 0x166   :  { %v3750_v18 = vpop.permute.xlu1 %769 }
 0x168   :  { %555 = vrot.lane.b32.xlu0 %v508_v60, %s3051_s16  ;;  %547 = vrot.lane.b32.xlu1 %v504_v46, %s3051_s16  ;;  %v969_v60 = vmul.f32 %v3412_v22, %v3210_v39  ;;  %v625_v46 = vmul.f32 %v3360_v52, %v3380_v0 }
 0x16c   :  { %773 = vrot.lane.b32.xlu0 %v734_v29, %s3053_s18  ;;  %765 = vrot.lane.b32.xlu1 %v730_v42, %s3053_s18  ;;  %v621_v29 = vmul.f32 %v3318_v23, %v3380_v0  ;;  %v3748_v42 = vpop.permute.xlu0 %771  ;;  %v742_v23 = vmul.f32 %v3354_v47, %v3380_v0 }
 0x16d   :  { %5440 = vst [vmem:[#allocation83_spill] sm:$0xff] %v3748_v42 }
 0x170   :  { %1017 = vrot.lane.b32.xlu0 %v973_v8, %s3055_s24  ;;  %1009 = vrot.lane.b32.xlu1 %v969_v60, %s3055_s24  ;;  %v847_v8 = vmul.f32 %v3328_v27, %v3380_v0  ;;  %v968_v27 = vmul.f32 %v3400_v16, %v3380_v0 }
 0x174   :  { %672 = vrot.lane.b32.xlu0 %v625_v46, %s3052_s17  ;;  %664 = vrot.lane.b32.xlu1 %v621_v29, %s3052_s17  ;;  %v738_v46 = vmul.f32 %v3386_v3, %v3380_v0  ;;  %v859_v3 = vmul.f32 %v3398_v12, %v3380_v0 }
 0x177   :  { %v3758_v60 = vpop.permute.xlu0 %1069  ;;  %v3760_v52 = vpop.permute.xlu1 %1064 }
 0x178   :  { %5441 = vst [vmem:[#allocation84_spill] sm:$0xff] %v3758_v60  ;;  %5442 = vst [vmem:[#allocation85_spill] sm:$0xff] %v3760_v52  ;;  %890 = vrot.lane.b32.xlu0 %v851_v58, %s3054_s23  ;;  %882 = vrot.lane.b32.xlu1 %v847_v8, %s3054_s23  ;;  %v964_v58 = vmul.f32 %v3368_v57, %v3380_v0  ;;  %v3795_v57 = vsub.s32 1, %v3112_v4 }
 0x17a   :  { %5447 = vst [vmem:[#allocation90_spill] sm:$0xff] %v3795_v57  ;;  %v3803_v12 = vrot.slane %v3140_v14, %v3795_v57  ;;  %v1481_v14 = vrot.slane %v3123_v7, %v3795_v57 }
 0x17b   :  { %v3768_v29 = vpop.permute.xlu0 %305  ;;  %v3770_v41 = vpop.permute.xlu1 %297 }
 0x17c   :  { %5443 = vst [vmem:[#allocation86_spill] sm:$0xff] %v3768_v29  ;;  %5444 = vst [vmem:[#allocation87_spill] sm:$0xff] %v3770_v41  ;;  %789 = vrot.lane.b32.xlu0 %v742_v23, %s3053_s18  ;;  %781 = vrot.lane.b32.xlu1 %v738_v46, %s3053_s18  ;;  %v855_v23 = vmul.f32 %v3384_v1, %v3380_v0  ;;  %v3807_v1 = vrot.slane %v3143_v15, %v3795_v57 }
 0x17d   :  { %5448 = vst [vmem:[#allocation91_spill] sm:$0xff] %v3803_v12  ;;  %v1540_v4 = vmul.f32 %v3803_v12, %v3191_v31 }
 0x17f   :  { %v3778_v8 = vpop.permute.xlu0 %549  ;;  %v3780_v47 = vpop.permute.xlu1 %541 }
 0x180   :  { %5445 = vst [vmem:[#allocation88_spill] sm:$0xff] %v3778_v8  ;;  %5446 = vst [vmem:[#allocation89_spill] sm:$0xff] %v3780_v47  ;;  %1007 = vrot.lane.b32.xlu0 %v968_v27, %s3055_s24  ;;  %999 = vrot.lane.b32.xlu1 %v964_v58, %s3055_s24  ;;  %v976_v27 = vmul.f32 %v3410_v21, %v3380_v0  ;;  %v972_v58 = vmul.f32 %v3412_v22, %v3380_v0 }
 0x181   :  { %v1539_v0 = vmul.f32 %v3807_v1, %v3191_v31  ;;  %v3832_v22 = vrot.slane %v1481_v14, %v3795_v57  ;;  %v1640_v14 = vmul.f32 %v3803_v12, %v3197_v34 }
 0x183   :  { %v3788_v46 = vpop.permute.xlu0 %767  ;;  %v3790_v16 = vpop.permute.xlu1 %759 }
 0x184   :  { %906 = vrot.lane.b32.xlu0 %v859_v3, %s3054_s23  ;;  %898 = vrot.lane.b32.xlu1 %v855_v23, %s3054_s23 }
 0x187   :  { %v3809_v3 = vpop.permute.xlu0 %662  ;;  %v3811_v23 = vpop.permute.xlu1 %660 }
 0x188   :  { %5449 = vst [vmem:[#allocation92_spill] sm:$0xff] %v3809_v3  ;;  %1023 = vrot.lane.b32.xlu0 %v976_v27, %s3055_s24  ;;  %1015 = vrot.lane.b32.xlu1 %v972_v58, %s3055_s24  ;;  %v1544_v27 = vmul.f32 %v3803_v12, %v3203_v36  ;;  %v1543_v58 = vmul.f32 %v3807_v1, %v3203_v36 }
 0x18b   :  { %v3821_v21 = vpop.permute.xlu0 %670  ;;  %v3823_v15 = vpop.permute.xlu1 %668 }
 0x18c   :  { %5450 = vst [vmem:[#allocation93_spill] sm:$0xff] %v3821_v21  ;;  %5451 = vst [vmem:[#allocation94_spill] sm:$0xff] %v3823_v15  ;;  %1574 = vrot.lane.b32.xlu0 %v1540_v4, %s3048_s2  ;;  %1572 = vrot.lane.b32.xlu1 %v1539_v0, %s3048_s2  ;;  %v1542_v4 = vmul.f32 %v3832_v22, %v3203_v36  ;;  %v1538_v0 = vmul.f32 %v3832_v22, %v3191_v31 }
 0x18f   :  { %v3834_v41 = vpop.permute.xlu0 %880  ;;  %v3836_v7 = vpop.permute.xlu1 %878 }
 0x190   :  { %5452 = vst [vmem:[#allocation95_spill] sm:$0xff] %v3834_v41  ;;  %1582 = vrot.lane.b32.xlu0 %v1544_v27, %s3048_s2  ;;  %1580 = vrot.lane.b32.xlu1 %v1543_v58, %s3048_s2  ;;  %v1639_v27 = vmul.f32 %v3807_v1, %v3197_v34  ;;  %v5293_v58 = vmov 0.0  }
 0x191   :  { %2858 = vmatprep.mubr.msk.f32.mxu1 %vm3056_vm0, %v5293_v58  ;;  %v94_v58 = vmul.f32 %v3189_v30, %v3426_v38 }
 0x193   :  { %v3844_v29 = vpop.permute.xlu0 %888  ;;  %v3846_v47 = vpop.permute.xlu1 %886 }
 0x194   :  { %5453 = vst [vmem:[#allocation96_spill] sm:$0xff] %v3844_v29  ;;  %1578 = vrot.lane.b32.xlu0 %v1542_v4, %s3048_s2  ;;  %1570 = vrot.lane.b32.xlu1 %v1538_v0, %s3048_s2  ;;  %v1644_v4 = vmul.f32 %v3803_v12, %v3214_v40  ;;  %v1643_v0 = vmul.f32 %v3807_v1, %v3214_v40 }
 0x197   :  { %v3856_v8 = vpop.permute.xlu0 %204  ;;  %v3858_v31 = vpop.permute.xlu1 %196 }
 0x198   :  { %5454 = vst [vmem:[#allocation97_spill] sm:$0xff] %v3856_v8  ;;  %5455 = vst [vmem:[#allocation98_spill] sm:$0xff] %v3858_v31  ;;  %1674 = vrot.lane.b32.xlu0 %v1640_v14, %s3049_s14  ;;  %1672 = vrot.lane.b32.xlu1 %v1639_v27, %s3049_s14  ;;  %v1642_v14 = vmul.f32 %v3832_v22, %v3214_v40  ;;  %v1638_v27 = vmul.f32 %v3832_v22, %v3197_v34 }
 0x199   :  { %v1548_v34 = vmul.f32 %v3803_v12, %v3240_v50  ;;  %v1547_v40 = vmul.f32 %v3807_v1, %v3240_v50 }
 0x19b   :  { %v3866_v36 = vpop.permute.xlu0 %422  ;;  %v3868_v57 = vpop.permute.xlu1 %414 }
 0x19c   :  { %5456 = vst [vmem:[#allocation99_spill] sm:$0xff] %v3866_v36  ;;  %5457 = vst [vmem:[#allocation100_spill] sm:$0xff] %v3868_v57  ;;  %1682 = vrot.lane.b32.xlu0 %v1644_v4, %s3049_s14  ;;  %1680 = vrot.lane.b32.xlu1 %v1643_v0, %s3049_s14  ;;  %v208_v4 = vsel %vm206_vm1, %v3454_v9, %v3452_v5  ;;  %v325_v0 = vsel %vm323_vm2, %v3478_v44, %v3476_v43 }
 0x19d   :  { %v232_v57 = vadd.f32 %v208_v4, %v94_v58  ;;  %v97_v36 = vmul.f32 %v3189_v30, %v3424_v37  ;;  %v442_v43 = vsel %vm440_vm3, %v3528_v48, %v3526_v51  ;;  %v328_v4 = vsel %vm323_vm2, %v3488_v62, %v3486_v61 }
 0x19e   :  { %v1551_v51 = vmul.f32 %v3807_v1, %v3226_v45 }
 0x19f   :  { %v3878_v31 = vpop.permute.xlu0 %666  ;;  %v3880_v8 = vpop.permute.xlu1 %658  ;;  %v349_v58 = vadd.f32 %v325_v0, %v232_v57  ;;  %v445_v0 = vsel %vm440_vm3, %v3538_v28, %v3536_v55  ;;  %v5462_v55 = vld [vmem:[#allocation20_spill] sm:$0xff] }
 0x1a0   :  { %5458 = vst [vmem:[#allocation101_spill] sm:$0xff] %v3878_v31  ;;  %5459 = vst [vmem:[#allocation102_spill] sm:$0xff] %v3880_v8  ;;  %1678 = vrot.lane.b32.xlu0 %v1642_v14, %s3049_s14  ;;  %1670 = vrot.lane.b32.xlu1 %v1638_v27, %s3049_s14  ;;  %v211_v27 = vsel %vm206_vm1, %v3458_v10, %v3456_v13  ;;  %v559_v8 = vsel %vm557_vm4, %v3588_v25, %v3586_v6 }
 0x1a1   :  { %v1552_v13 = vmul.f32 %v3803_v12, %v3226_v45  ;;  %v235_v31 = vadd.f32 %v211_v27, %v97_v36  ;;  %v676_v6 = vsel %vm674_vm5, %v3648_v17, %v3646_v26  ;;  %v1740_v15 = vmul.f32 %v3803_v12, %v5462_v55 }
 0x1a2   :  { %v1739_v26 = vmul.f32 %v3807_v1, %v5462_v55 }
 0x1a3   :  { %v3896_v5 = vpop.permute.xlu0 %884  ;;  %v3898_v14 = vpop.permute.xlu1 %876  ;;  %v352_v61 = vadd.f32 %v328_v4, %v235_v31  ;;  %v910_v4 = vsel %vm908_vm7, %v3836_v7, %v3834_v41 }
 0x1a4   :  { %1590 = vrot.lane.b32.xlu0 %v1548_v34, %s3048_s2  ;;  %1588 = vrot.lane.b32.xlu1 %v1547_v40, %s3048_s2  ;;  %v466_v34 = vadd.f32 %v442_v43, %v349_v58  ;;  %v5461_v43 = vld [vmem:[#allocation65_spill] sm:$0xff]  ;;  %v793_v58 = vsel %vm791_vm6, %v3736_v11, %v3734_v19 }
 0x1a5   :  { %v562_v27 = vsel %vm557_vm4, %v5461_v43, %v3596_v33 }
 0x1a6   :  { %v583_v36 = vadd.f32 %v559_v8, %v466_v34  ;;  %v679_v8 = vsel %vm674_vm5, %v3658_v24, %v3656_v53 }
 0x1a7   :  { %v3918_v40 = vpop.permute.xlu0 %779  ;;  %v3920_v57 = vpop.permute.xlu1 %777 }
 0x1a8   :  { %5460 = vst [vmem:[#allocation103_spill] sm:$0xff] %v3918_v40  ;;  %1598 = vrot.lane.b32.xlu0 %v1552_v13, %s3048_s2  ;;  %1596 = vrot.lane.b32.xlu1 %v1551_v51, %s3048_s2  ;;  %v469_v13 = vadd.f32 %v445_v0, %v352_v61  ;;  %v700_v21 = vadd.f32 %v676_v6, %v583_v36  ;;  %v5464_v61 = vld [vmem:[#allocation14_spill] sm:$0xff] }
 0x1a9   :  { %v796_v6 = vsel %vm791_vm6, %v3750_v18, %v3748_v42  ;;  %v1744_v0 = vmul.f32 %v3803_v12, %v5464_v61  ;;  %v1743_v36 = vmul.f32 %v3807_v1, %v5464_v61 }
 0x1aa   :  { %v586_v34 = vadd.f32 %v562_v27, %v469_v13  ;;  %v817_v19 = vadd.f32 %v793_v58, %v700_v21  ;;  %v913_v21 = vsel %vm908_vm7, %v3846_v47, %v3844_v29  ;;  %v1546_v13 = vmul.f32 %v3832_v22, %v3240_v50 }
 0x1ab   :  { %v3940_v51 = vpop.permute.xlu0 %787  ;;  %v3942_v31 = vpop.permute.xlu1 %785 }
 0x1ac   :  { %5463 = vst [vmem:[#allocation65_spill] sm:$0xff] %v3940_v51  ;;  %1774 = vrot.lane.b32.xlu0 %v1740_v15, %s3050_s15  ;;  %1772 = vrot.lane.b32.xlu1 %v1739_v26, %s3050_s15  ;;  %v703_v53 = vadd.f32 %v679_v8, %v586_v34  ;;  %v934_v33 = vadd.f32 %v910_v4, %v817_v19 }
 0x1ad   :  { %v1550_v19 = vmul.f32 %v3832_v22, %v3226_v45 }
 0x1ae   :  { %v820_v27 = vadd.f32 %v796_v6, %v703_v53  ;;  %v1742_v6 = vmul.f32 %v3832_v22, %v5464_v61  ;;  %v5471_v61 = vld [vmem:[#allocation47_spill] sm:$0xff] }
 0x1af   :  { %v3959_v41 = vpop.permute.xlu0 %997  ;;  %v3961_v15 = vpop.permute.xlu1 %995 }
 0x1b0   :  { %5465 = vst [vmem:[#allocation104_spill] sm:$0xff] %v3959_v41  ;;  %v1027_v26 = vsel %vm1025_vm8, %v3961_v15, %v3959_v41  ;;  %1782 = vrot.lane.b32.xlu0 %v1744_v0, %s3050_s15  ;;  %1780 = vrot.lane.b32.xlu1 %v1743_v36, %s3050_s15  ;;  %v937_v8 = vadd.f32 %v913_v21, %v820_v27  ;;  %v5469_v27 = vld [vmem:[#allocation43_spill] sm:$0xff] }
 0x1b1   :  { %v1051_v58 = vadd.f32 %v1027_v26, %v934_v33  ;;  %v1738_v0 = vmul.f32 %v3832_v22, %v5462_v55 }
 0x1b3   :  { %v3975_v4 = vpop.permute.xlu0 %1005  ;;  %v3977_v34 = vpop.permute.xlu1 %1003  ;;  %v1083_v33 = vadd.f32 %v3760_v52, %v1051_v58 }
 0x1b4   :  { %5466 = vst [vmem:[#allocation105_spill] sm:$0xff] %v3975_v4  ;;  %v1030_v41 = vsel %vm1025_vm8, %v3977_v34, %v3975_v4  ;;  %1594 = vrot.lane.b32.xlu0 %v1550_v19, %s3048_s2  ;;  %1586 = vrot.lane.b32.xlu1 %v1546_v13, %s3048_s2  ;;  %v210_v19 = vsel %vm206_vm1, %v5469_v27, %v3458_v10  ;;  %v5472_v27 = vld [vmem:[#allocation48_spill] sm:$0xff] }
 0x1b5   :  { %v1054_v53 = vadd.f32 %v1030_v41, %v937_v8  ;;  %v5470_v41 = vld [vmem:[#allocation44_spill] sm:$0xff]  ;;  %v96_v13 = vmul.f32 %v3210_v39, %v3424_v37  ;;  %v93_v8 = vmul.f32 %v3210_v39, %v3426_v38  ;;  %v1095_v55 = vmax.f32 %v1083_v33, 0.0 }
 0x1b6   :  { %v207_v58 = vsel %vm206_vm1, %v5470_v41, %v3454_v9  ;;  %v327_v10 = vsel %vm323_vm2, %v5471_v61, %v3488_v62  ;;  %v324_v9 = vsel %vm323_vm2, %v5472_v27, %v3478_v44  ;;  %v5474_v62 = vld [vmem:[#allocation57_spill] sm:$0xff]  ;;  %v5475_v44 = vld [vmem:[#allocation58_spill] sm:$0xff] }
 0x1b7   :  { %v3989_v36 = vpop.permute.xlu0 %1079  ;;  %v3991_v21 = vpop.permute.xlu1 %1074  ;;  %v1086_v26 = vadd.f32 %v3758_v60, %v1054_v53  ;;  %v234_v41 = vadd.f32 %v210_v19, %v96_v13  ;;  %v231_v50 = vadd.f32 %v207_v58, %v93_v8  ;;  %v444_v61 = vsel %vm440_vm3, %v5474_v62, %v3538_v28  ;;  %v5476_v13 = vld [vmem:[#allocation68_spill] sm:$0xff]  ;;  %v5477_v8 = vld [vmem:[#allocation69_spill] sm:$0xff] }
 0x1b8   :  { %5467 = vst [vmem:[#allocation106_spill] sm:$0xff] %v3989_v36  ;;  %5468 = vst [vmem:[#allocation107_spill] sm:$0xff] %v3991_v21  ;;  %1778 = vrot.lane.b32.xlu0 %v1742_v6, %s3050_s15  ;;  %1770 = vrot.lane.b32.xlu1 %v1738_v0, %s3050_s15  ;;  %v1648_v6 = vmul.f32 %v3803_v12, %v3238_v49  ;;  %v1647_v0 = vmul.f32 %v3807_v1, %v3238_v49 }
 0x1b9   :  { %v1098_v53 = vmax.f32 %v1086_v26, 0.0  ;;  %v441_v27 = vsel %vm440_vm3, %v5475_v44, %v3528_v48  ;;  %v351_v19 = vadd.f32 %v327_v10, %v234_v41  ;;  %v348_v58 = vadd.f32 %v324_v9, %v231_v50 }
 0x1ba   :  { %v558_v28 = vsel %vm557_vm4, %v5477_v8, %v3588_v25  ;;  %v675_v25 = vsel %vm674_vm5, %v3698_v20, %v3648_v17  ;;  %v792_v44 = vsel %vm791_vm6, %v3790_v16, %v3736_v11  ;;  %v909_v11 = vsel %vm908_vm7, %v3898_v14, %v3836_v7 }
 0x1bb   :  { %v4016_v45 = vpop.permute.xlu0 %321  ;;  %v4018_v33 = vpop.permute.xlu1 %313  ;;  %v4020_v26 = vpack.c.bf16 %v1098_v53, %v1095_v55  ;;  %v561_v55 = vsel %vm557_vm4, %v5476_v13, %v5461_v43  ;;  %v5478_v53 = vld [vmem:[#allocation17_spill] sm:$0xff]  ;;  %v678_v43 = vsel %vm674_vm5, %v3696_v32, %v3658_v24  ;;  %v5480_v13 = vld [vmem:[#allocation19_spill] sm:$0xff] }
 0x1bc   :  { %1690 = vrot.lane.b32.xlu0 %v1648_v6, %s3049_s14  ;;  %1688 = vrot.lane.b32.xlu1 %v1647_v0, %s3049_s14  ;;  %v1652_v62 = vmul.f32 %v3803_v12, %v5478_v53  ;;  %v1651_v48 = vmul.f32 %v3807_v1, %v5478_v53  ;;  %v468_v6 = vadd.f32 %v444_v61, %v351_v19 }
 0x1bd   :  { %5473 = vst [vmem:[#allocation43_spill] sm:$0xff] %v4020_v26  ;;  %1116 = vmatprep.subr.bf16.mxu0 %v4020_v26  ;;  %v465_v0 = vadd.f32 %v441_v27, %v348_v58  ;;  %v795_v61 = vsel %vm791_vm6, %v3788_v46, %v3750_v18  ;;  %v5479_v27 = vld [vmem:[#allocation18_spill] sm:$0xff]  ;;  %v912_v18 = vsel %vm908_vm7, %v3896_v5, %v3846_v47 }
 0x1be   :  { %v585_v9 = vadd.f32 %v561_v55, %v468_v6  ;;  %v1840_v24 = vmul.f32 %v3803_v12, %v5479_v27  ;;  %v1839_v17 = vmul.f32 %v3807_v1, %v5479_v27  ;;  %v1844_v55 = vmul.f32 %v3803_v12, %v5480_v13 }
 0x1bf   :  { %v4041_v10 = vpop.permute.xlu0 %539  ;;  %v4043_v50 = vpop.permute.xlu1 %531  ;;  %v582_v41 = vadd.f32 %v558_v28, %v465_v0  ;;  %v1843_v8 = vmul.f32 %v3807_v1, %v5480_v13  ;;  %v1650_v0 = vmul.f32 %v3832_v22, %v5478_v53  ;;  %v565_v26 = vsel %vm557_vm4, %v3710_v56, %v3708_v59 }
 0x1c0   :  { %1698 = vrot.lane.b32.xlu0 %v1652_v62, %s3049_s14  ;;  %1696 = vrot.lane.b32.xlu1 %v1651_v48, %s3049_s14  ;;  %v702_v20 = vadd.f32 %v678_v43, %v585_v9  ;;  %v1646_v43 = vmul.f32 %v3832_v22, %v3238_v49 }
 0x1c1   :  { %v699_v32 = vadd.f32 %v675_v25, %v582_v41 }
 0x1c2   :  { %v819_v16 = vadd.f32 %v795_v61, %v702_v20 }
 0x1c3   :  { %v4063_v19 = vpop.permute.xlu0 %783  ;;  %v4065_v58 = vpop.permute.xlu1 %775  ;;  %v816_v46 = vadd.f32 %v792_v44, %v699_v32  ;;  %v1842_v44 = vmul.f32 %v3832_v22, %v5480_v13 }
 0x1c4   :  { %1874 = vrot.lane.b32.xlu0 %v1840_v24, %s3051_s16  ;;  %1872 = vrot.lane.b32.xlu1 %v1839_v17, %s3051_s16  ;;  %v936_v28 = vadd.f32 %v912_v18, %v819_v16  ;;  %v1838_v24 = vmul.f32 %v3832_v22, %v5479_v27  ;;  %v5484_v18 = vld [vmem:[#allocation49_spill] sm:$0xff]  ;;  %v1752_v27 = vmul.f32 %v3803_v12, %v3272_v63 }
 0x1c5   :  { %v933_v62 = vadd.f32 %v909_v11, %v816_v46  ;;  %v5485_v11 = vld [vmem:[#allocation50_spill] sm:$0xff]  ;;  %v5486_v46 = vld [vmem:[#allocation39_spill] sm:$0xff] }
 0x1c6   :  { %v214_v16 = vsel %vm206_vm1, %v5485_v11, %v5484_v18 }
 0x1c7   :  { %v1002_v48 = vpop.permute.xlu0 %1001  ;;  %v994_v47 = vpop.permute.xlu1 %993 }
 0x1c8   :  { %v1029_v5 = vsel %vm1025_vm8, %v1002_v48, %v3977_v34  ;;  %v1026_v7 = vsel %vm1025_vm8, %v994_v47, %v3961_v15  ;;  %1882 = vrot.lane.b32.xlu0 %v1844_v55, %s3051_s16  ;;  %1880 = vrot.lane.b32.xlu1 %v1843_v8, %s3051_s16  ;;  %v100_v55 = vmul.f32 %v3189_v30, %v5486_v46  ;;  %v5487_v8 = vld [vmem:[#allocation59_spill] sm:$0xff] }
 0x1c9   :  { %v1053_v14 = vadd.f32 %v1029_v5, %v936_v28  ;;  %v1050_v6 = vadd.f32 %v1026_v7, %v933_v62  ;;  %v5488_v28 = vld [vmem:[#allocation60_spill] sm:$0xff]  ;;  %v1748_v48 = vmul.f32 %v3803_v12, %v3334_v35  ;;  %v1747_v47 = vmul.f32 %v3807_v1, %v3334_v35 }
 0x1ca   :  { %v331_v62 = vsel %vm323_vm2, %v5488_v28, %v5487_v8  ;;  %v238_v5 = vadd.f32 %v214_v16, %v100_v55  ;;  %v5496_v16 = vld [vmem:[#allocation61_spill] sm:$0xff]  ;;  %v5497_v55 = vld [vmem:[#allocation62_spill] sm:$0xff] }
 0x1cb   :  { %v4089_v25 = vpop.permute.xlu0 %896  ;;  %v4091_v9 = vpop.permute.xlu1 %894  ;;  %v1082_v34 = vadd.f32 %v3760_v52, %v1050_v6  ;;  %v1085_v15 = vadd.f32 %v3758_v60, %v1053_v14  ;;  %v5491_v6 = vld [vmem:[#allocation51_spill] sm:$0xff]  ;;  %v682_v52 = vsel %vm674_vm5, %v3811_v23, %v3809_v3 }
 0x1cc   :  { %5481 = vst [vmem:[#allocation44_spill] sm:$0xff] %v4089_v25  ;;  %1694 = vrot.lane.b32.xlu0 %v1650_v0, %s3049_s14  ;;  %1686 = vrot.lane.b32.xlu1 %v1646_v43, %s3049_s14  ;;  %v5492_v0 = vld [vmem:[#allocation52_spill] sm:$0xff] }
 0x1cd   :  { %v1094_v41 = vmax.f32 %v1082_v34, 0.0  ;;  %v1097_v61 = vmax.f32 %v1085_v15, 0.0  ;;  %v217_v43 = vsel %vm206_vm1, %v5492_v0, %v5491_v6  ;;  %v5493_v34 = vld [vmem:[#allocation70_spill] sm:$0xff]  ;;  %v5494_v15 = vld [vmem:[#allocation71_spill] sm:$0xff] }
 0x1cf   :  { %v4101_v17 = vpop.permute.xlu0 %904  ;;  %v4103_v20 = vpop.permute.xlu1 %902  ;;  %v4105_v32 = vpack.c.bf16 %v1097_v61, %v1094_v41  ;;  %v448_v41 = vsel %vm440_vm3, %v5494_v15, %v5493_v34  ;;  %v5495_v61 = vld [vmem:[#allocation40_spill] sm:$0xff]  ;;  %v5505_v34 = vld [vmem:[#allocation6_spill] sm:$0xff] }
 0x1d0   :  { %5482 = vst [vmem:[#allocation47_spill] sm:$0xff] %v4101_v17  ;;  %1878 = vrot.lane.b32.xlu0 %v1842_v44, %s3051_s16  ;;  %1870 = vrot.lane.b32.xlu1 %v1838_v24, %s3051_s16  ;;  %v103_v44 = vmul.f32 %v3189_v30, %v5495_v61  ;;  %v355_v24 = vadd.f32 %v331_v62, %v238_v5  ;;  %v5498_v62 = vld [vmem:[#allocation72_spill] sm:$0xff]  ;;  %v5499_v5 = vld [vmem:[#allocation73_spill] sm:$0xff] }
 0x1d1   :  { %5483 = vst [vmem:[#allocation48_spill] sm:$0xff] %v4105_v32  ;;  %1117 = vmatpush1.bf16.msra.mxu0 %v4105_v32  ;;  %v334_v32 = vsel %vm323_vm2, %v5497_v55, %v5496_v16  ;;  %v451_v53 = vsel %vm440_vm3, %v5499_v5, %v5498_v62  ;;  %v919_v62 = vsel %vm908_vm7, %v4103_v20, %v4101_v17 }
 0x1d2   :  { %v241_v13 = vadd.f32 %v217_v43, %v103_v44  ;;  %v568_v43 = vsel %vm557_vm4, %v3724_v2, %v3722_v54  ;;  %v5500_v44 = vld [vmem:[#allocation21_spill] sm:$0xff] }
 0x1d3   :  { %v4122_v7 = vpop.permute.xlu0 %438  ;;  %v4124_v14 = vpop.permute.xlu1 %430  ;;  %v1939_v3 = vmul.f32 %v3807_v1, %v5500_v44 }
 0x1d4   :  { %5489 = vst [vmem:[#allocation57_spill] sm:$0xff] %v4122_v7  ;;  %5490 = vst [vmem:[#allocation58_spill] sm:$0xff] %v4124_v14  ;;  %1790 = vrot.lane.b32.xlu0 %v1748_v48, %s3050_s15  ;;  %1788 = vrot.lane.b32.xlu1 %v1747_v47, %s3050_s15  ;;  %v1751_v48 = vmul.f32 %v3807_v1, %v3272_v63  ;;  %v472_v47 = vadd.f32 %v448_v41, %v355_v24 }
 0x1d5   :  { %v358_v60 = vadd.f32 %v334_v32, %v241_v13  ;;  %v799_v41 = vsel %vm791_vm6, %v3920_v57, %v3918_v40  ;;  %v1940_v24 = vmul.f32 %v3803_v12, %v5500_v44  ;;  %v5502_v32 = vld [vmem:[#allocation94_spill] sm:$0xff] }
 0x1d6   :  { %v589_v4 = vadd.f32 %v565_v26, %v472_v47  ;;  %v5501_v26 = vld [vmem:[#allocation93_spill] sm:$0xff]  ;;  %v916_v47 = vsel %vm908_vm7, %v4091_v9, %v4089_v25  ;;  %v5508_v25 = vld [vmem:[#allocation56_spill] sm:$0xff] }
 0x1d7   :  { %v4146_v49 = vpop.permute.xlu0 %656  ;;  %v4148_v30 = vpop.permute.xlu1 %648  ;;  %v475_v59 = vadd.f32 %v451_v53, %v358_v60  ;;  %v5503_v60 = vld [vmem:[#allocation28_spill] sm:$0xff] }
 0x1d8   :  { %1798 = vrot.lane.b32.xlu0 %v1752_v27, %s3050_s15  ;;  %1796 = vrot.lane.b32.xlu1 %v1751_v48, %s3050_s15  ;;  %v706_v27 = vadd.f32 %v682_v52, %v589_v4  ;;  %v685_v48 = vsel %vm674_vm5, %v5502_v32, %v5501_v26  ;;  %v802_v52 = vsel %vm791_vm6, %v3942_v31, %v3940_v51  ;;  %v5504_v26 = vld [vmem:[#allocation90_spill] sm:$0xff] }
 0x1d9   :  { %v592_v40 = vadd.f32 %v568_v43, %v475_v59  ;;  %v1944_v4 = vmul.f32 %v3803_v12, %v5503_v60  ;;  %v1943_v53 = vmul.f32 %v3807_v1, %v5503_v60  ;;  %v4189_v14 = vrot.slane %v5505_v34, %v5504_v26  ;;  %v5511_v26 = vld [vmem:[#allocation11_spill] sm:$0xff] }
 0x1da   :  { %v823_v54 = vadd.f32 %v799_v41, %v706_v27  ;;  %v213_v51 = vsel %vm206_vm1, %v5508_v25, %v5485_v11  ;;  %v5509_v11 = vld [vmem:[#allocation66_spill] sm:$0xff] }
 0x1db   :  { %v4168_v29 = vpop.permute.xlu0 %900  ;;  %v4170_v13 = vpop.permute.xlu1 %892  ;;  %v709_v59 = vadd.f32 %v685_v48, %v592_v40  ;;  %v99_v40 = vmul.f32 %v3210_v39, %v5486_v46  ;;  %v333_v48 = vsel %vm323_vm2, %v5509_v11, %v5497_v55  ;;  %v1746_v11 = vmul.f32 %v3832_v22, %v3334_v35 }
 0x1dc   :  { %1974 = vrot.lane.b32.xlu0 %v1940_v24, %s3052_s17  ;;  %1972 = vrot.lane.b32.xlu1 %v1939_v3, %s3052_s17  ;;  %v5506_v24 = vld [vmem:[#allocation55_spill] sm:$0xff]  ;;  %v940_v43 = vadd.f32 %v916_v47, %v823_v54  ;;  %v102_v54 = vmul.f32 %v3210_v39, %v5495_v61 }
 0x1dd   :  { %v216_v3 = vsel %vm206_vm1, %v5506_v24, %v5492_v0  ;;  %v826_v0 = vadd.f32 %v802_v52, %v709_v59  ;;  %v5510_v47 = vld [vmem:[#allocation67_spill] sm:$0xff]  ;;  %v237_v7 = vadd.f32 %v213_v51, %v99_v40  ;;  %v5513_v59 = vld [vmem:[#allocation78_spill] sm:$0xff]  ;;  %v5516_v40 = vld [vmem:[#allocation89_spill] sm:$0xff] }
 0x1de   :  { %v330_v24 = vsel %vm323_vm2, %v5510_v47, %v5488_v28  ;;  %v240_v17 = vadd.f32 %v216_v3, %v102_v54  ;;  %v450_v55 = vsel %vm440_vm3, %v5513_v59, %v5499_v5  ;;  %v5515_v54 = vld [vmem:[#allocation88_spill] sm:$0xff] }
 0x1df   :  { %v4194_v41 = vpop.permute.xlu0 %1013  ;;  %v4196_v27 = vpop.permute.xlu1 %1011  ;;  %v943_v42 = vadd.f32 %v919_v62, %v826_v0  ;;  %v354_v62 = vadd.f32 %v330_v24, %v237_v7  ;;  %v567_v5 = vsel %vm557_vm4, %v5515_v54, %v3724_v2  ;;  %v1750_v0 = vmul.f32 %v3832_v22, %v3272_v63  ;;  %v5517_v2 = vld [vmem:[#allocation101_spill] sm:$0xff] }
 0x1e0   :  { %5507 = vst [vmem:[#allocation68_spill] sm:$0xff] %v4194_v41  ;;  %v1033_v34 = vsel %vm1025_vm8, %v4196_v27, %v4194_v41  ;;  %1982 = vrot.lane.b32.xlu0 %v1944_v4, %s3052_s17  ;;  %1980 = vrot.lane.b32.xlu1 %v1943_v53, %s3052_s17  ;;  %v1545_v4 = vmul.f32 %v4189_v14, %v5511_v26  ;;  %v5512_v53 = vld [vmem:[#allocation9_spill] sm:$0xff] }
 0x1e1   :  { %v1057_v25 = vadd.f32 %v1033_v34, %v940_v43  ;;  %v1541_v41 = vmul.f32 %v4189_v14, %v5512_v53  ;;  %v5514_v43 = vld [vmem:[#allocation79_spill] sm:$0xff]  ;;  %v357_v51 = vadd.f32 %v333_v48, %v240_v17  ;;  %v684_v48 = vsel %vm674_vm5, %v5517_v2, %v5502_v32 }
 0x1e2   :  { %v447_v28 = vsel %vm440_vm3, %v5514_v43, %v5494_v15  ;;  %v564_v15 = vsel %vm557_vm4, %v5516_v40, %v3710_v56  ;;  %v5518_v56 = vld [vmem:[#allocation102_spill] sm:$0xff]  ;;  %v798_v32 = vsel %vm791_vm6, %v4065_v58, %v3920_v57  ;;  %v1942_v43 = vmul.f32 %v3832_v22, %v5503_v60 }
 0x1e3   :  { %v4223_v39 = vpop.permute.xlu0 %1021  ;;  %v1020_v52 = vpop.permute.xlu1 %1019  ;;  %v1089_v34 = vadd.f32 %v3991_v21, %v1057_v25  ;;  %v471_v17 = vadd.f32 %v447_v28, %v354_v62  ;;  %v681_v47 = vsel %vm674_vm5, %v5518_v56, %v3811_v23  ;;  %v1938_v23 = vmul.f32 %v3832_v22, %v5500_v44  ;;  %v5521_v40 = vld [vmem:[#allocation22_spill] sm:$0xff]  ;;  %v5525_v56 = vld [vmem:[#allocation24_spill] sm:$0xff] }
 0x1e4   :  { %v1036_v26 = vsel %vm1025_vm8, %v1020_v52, %v4223_v39  ;;  %1584 = vrot.lane.b32.xlu0 %v1545_v4, %s3048_s2  ;;  %1576 = vrot.lane.b32.xlu1 %v1541_v41, %s3048_s2  ;;  %v474_v41 = vadd.f32 %v450_v55, %v357_v51  ;;  %v801_v55 = vsel %vm791_vm6, %v4063_v19, %v3942_v31 }
 0x1e5   :  { %v1060_v3 = vadd.f32 %v1036_v26, %v943_v42  ;;  %v588_v4 = vadd.f32 %v564_v15, %v471_v17  ;;  %v1101_v53 = vmax.f32 %v1089_v34, 0.0  ;;  %v918_v31 = vsel %vm908_vm7, %v4168_v29, %v4103_v20  ;;  %v5520_v34 = vld [vmem:[#allocation32_spill] sm:$0xff]  ;;  %v5522_v20 = vld [vmem:[#allocation23_spill] sm:$0xff] }
 0x1e6   :  { %v591_v24 = vadd.f32 %v567_v5, %v474_v41  ;;  %v915_v57 = vsel %vm908_vm7, %v4170_v13, %v4091_v9  ;;  %v2040_v54 = vmul.f32 %v3803_v12, %v5520_v34  ;;  %v2039_v5 = vmul.f32 %v3807_v1, %v5520_v34 }
 0x1e7   :  { %v4246_v7 = vpop.permute.xlu0 %555  ;;  %v4248_v42 = vpop.permute.xlu1 %547  ;;  %v1092_v25 = vadd.f32 %v3989_v36, %v1060_v3  ;;  %v705_v26 = vadd.f32 %v681_v47, %v588_v4  ;;  %v1848_v29 = vmul.f32 %v3803_v12, %v5521_v40  ;;  %v1847_v9 = vmul.f32 %v3807_v1, %v5521_v40  ;;  %v5527_v4 = vld [vmem:[#allocation41_spill] sm:$0xff] }
 0x1e8   :  { %1794 = vrot.lane.b32.xlu0 %v1750_v0, %s3050_s15  ;;  %1786 = vrot.lane.b32.xlu1 %v1746_v11, %s3050_s15  ;;  %v708_v28 = vadd.f32 %v684_v48, %v591_v24  ;;  %v1852_v13 = vmul.f32 %v3803_v12, %v5522_v20  ;;  %v1851_v15 = vmul.f32 %v3807_v1, %v5522_v20  ;;  %v5523_v0 = vld [vmem:[#allocation76_spill] sm:$0xff]  ;;  %v5524_v11 = vld [vmem:[#allocation42_spill] sm:$0xff]  ;;  %v5526_v24 = vld [vmem:[#allocation77_spill] sm:$0xff] }
 0x1e9   :  { %v1104_v59 = vmax.f32 %v1092_v25, 0.0  ;;  %v822_v58 = vadd.f32 %v798_v32, %v705_v26  ;;  %v212_v41 = vsel %vm206_vm1, %v5524_v11, %v5523_v0  ;;  %v4301_v47 = vmul.f32 %v3803_v12, %v5525_v56  ;;  %v5528_v32 = vld [vmem:[#allocation8_spill] sm:$0xff] }
 0x1ea   :  { %v825_v19 = vadd.f32 %v801_v55, %v708_v28 }
 0x1eb   :  { %v4269_v51 = vpop.permute.xlu0 %773  ;;  %v4271_v62 = vpop.permute.xlu1 %765  ;;  %v4273_v3 = vpack.c.bf16 %v1104_v59, %v1101_v53  ;;  %v939_v25 = vadd.f32 %v915_v57, %v822_v58  ;;  %v209_v53 = vsel %vm206_vm1, %v5527_v4, %v5526_v24  ;;  %v5530_v57 = vld [vmem:[#allocation46_spill] sm:$0xff]  ;;  %v5532_v58 = vld [vmem:[#allocation45_spill] sm:$0xff] }
 0x1ec   :  { %1978 = vrot.lane.b32.xlu0 %v1942_v43, %s3052_s17  ;;  %1970 = vrot.lane.b32.xlu1 %v1938_v23, %s3052_s17  ;;  %v942_v17 = vadd.f32 %v918_v31, %v825_v19  ;;  %v98_v43 = vmul.f32 %v5528_v32, %v3424_v37  ;;  %v95_v23 = vmul.f32 %v5528_v32, %v3426_v38  ;;  %v5529_v31 = vld [vmem:[#allocation86_spill] sm:$0xff]  ;;  %v41_v24 = vld [vmem:[%s5217_s4] sm:$0xff] }
 0x1ed   :  { %5519 = vst [vmem:[#allocation69_spill] sm:$0xff] %v4273_v3  ;;  %1118 = vmatprep.subr.bf16.mxu0 %v4273_v3  ;;  %v329_v19 = vsel %vm323_vm2, %v5530_v57, %v5529_v31  ;;  %v42_v4 = vld [vmem:[%s5217_s4 + $0x8] sm:$0xff]  ;;  %v5538_v3 = vld [vmem:[#allocation64_spill] sm:$0xff] }
 0x1ee   :  { %v236_v0 = vadd.f32 %v212_v41, %v98_v43  ;;  %v233_v11 = vadd.f32 %v209_v53, %v95_v23  ;;  %v5533_v41 = vld [vmem:[#allocation99_spill] sm:$0xff]  ;;  %v5534_v53 = vld [vmem:[#allocation54_spill] sm:$0xff]  ;;  %v5535_v43 = vld [vmem:[#allocation100_spill] sm:$0xff] }
 0x1ef   :  { %v1018_v2 = vpop.permute.xlu0 %1017  ;;  %v1010_v48 = vpop.permute.xlu1 %1009  ;;  %v5536_v23 = vld [vmem:[#allocation53_spill] sm:$0xff] }
 0x1f0   :  { %v1035_v59 = vsel %vm1025_vm8, %v1018_v2, %v1020_v52  ;;  %v1032_v55 = vsel %vm1025_vm8, %v1010_v48, %v4196_v27  ;;  %1890 = vrot.lane.b32.xlu0 %v1848_v29, %s3051_s16  ;;  %1888 = vrot.lane.b32.xlu1 %v1847_v9, %s3051_s16  ;;  %v5531_v52 = vld [vmem:[#allocation87_spill] sm:$0xff]  ;;  %v104_v29 = vmul.f32 %v5528_v32, %v5495_v61 }
 0x1f1   :  { %v1059_v28 = vadd.f32 %v1035_v59, %v942_v17  ;;  %v1056_v26 = vadd.f32 %v1032_v55, %v939_v25  ;;  %v326_v27 = vsel %vm323_vm2, %v5532_v58, %v5531_v52  ;;  %v2043_v9 = vmul.f32 %v3807_v1, %v5525_v56  ;;  %v5537_v58 = vld [vmem:[#allocation97_spill] sm:$0xff] }
 0x1f2   :  { %v101_v59 = vmul.f32 %v5528_v32, %v5486_v46  ;;  %v446_v55 = vsel %vm440_vm3, %v5534_v53, %v5533_v41  ;;  %v350_v31 = vadd.f32 %v326_v27, %v233_v11  ;;  %v218_v32 = vsel %vm206_vm1, %v5491_v6, %v5537_v58  ;;  %v5539_v53 = vld [vmem:[#allocation63_spill] sm:$0xff] }
 0x1f3   :  { %v1091_v2 = vadd.f32 %v3989_v36, %v1059_v28  ;;  %v1088_v17 = vadd.f32 %v3991_v21, %v1056_v26  ;;  %v673_v25 = vpop.permute.xlu0 %672  ;;  %v4327_v48 = vpop.permute.xlu1 %664  ;;  %v443_v28 = vsel %vm440_vm3, %v5536_v23, %v5535_v43  ;;  %v353_v26 = vadd.f32 %v329_v19, %v236_v0  ;;  %v5543_v6 = vld [vmem:[#allocation75_spill] sm:$0xff] }
 0x1f4   :  { %1898 = vrot.lane.b32.xlu0 %v1852_v13, %s3051_s16  ;;  %1896 = vrot.lane.b32.xlu1 %v1851_v15, %s3051_s16  ;;  %v563_v41 = vsel %vm557_vm4, %v5538_v3, %v4041_v10  ;;  %v560_v43 = vsel %vm557_vm4, %v5539_v53, %v4043_v50  ;;  %v4354_v23 = vpack.c.bf16 %v42_v4, %v41_v24  ;;  %v5541_v13 = vld [vmem:[#allocation98_spill] sm:$0xff]  ;;  %v5553_v53 = vld [vmem:[#allocation95_spill] sm:$0xff] }
 0x1f5   :  { %v1103_v57 = vmax.f32 %v1091_v2, 0.0  ;;  %v1100_v52 = vmax.f32 %v1088_v17, 0.0  ;;  %v215_v15 = vsel %vm206_vm1, %v5484_v18, %v5541_v13  ;;  %v470_v19 = vadd.f32 %v446_v55, %v353_v26  ;;  %v5544_v3 = vld [vmem:[#allocation74_spill] sm:$0xff]  ;;  %v5549_v26 = vld [vmem:[#allocation72_spill] sm:$0xff] }
 0x1f6   :  { %5540 = vst [vmem:[#allocation49_spill] sm:$0xff] %v4354_v23  ;;  %v467_v27 = vadd.f32 %v443_v28, %v350_v31  ;;  %v335_v10 = vsel %vm323_vm2, %v5496_v16, %v4016_v45  ;;  %v680_v50 = vsel %vm674_vm5, %v5543_v6, %v4146_v49  ;;  %v677_v17 = vsel %vm674_vm5, %v5544_v3, %v4148_v30  ;;  %v5545_v49 = vld [vmem:[#allocation83_spill] sm:$0xff]  ;;  %v5546_v30 = vld [vmem:[#allocation82_spill] sm:$0xff]  ;;  %v5548_v28 = vld [vmem:[#allocation57_spill] sm:$0xff] }
 0x1f7   :  { %v891_v0 = vpop.permute.xlu0 %890  ;;  %v883_v11 = vpop.permute.xlu1 %882  ;;  %v4359_v2 = vpack.c.bf16 %v1103_v57, %v1100_v52  ;;  %v242_v18 = vadd.f32 %v218_v32, %v104_v29  ;;  %v587_v24 = vadd.f32 %v563_v41, %v470_v19  ;;  %v239_v55 = vadd.f32 %v215_v15, %v101_v59  ;;  %v5554_v19 = vld [vmem:[#allocation12_spill] sm:$0xff] }
 0x1f8   :  { %2074 = vrot.lane.b32.xlu0 %v2040_v54, %s3053_s18  ;;  %2072 = vrot.lane.b32.xlu1 %v2039_v5, %s3053_s18  ;;  %v584_v4 = vadd.f32 %v560_v43, %v467_v27  ;;  %v332_v45 = vsel %vm323_vm2, %v5487_v8, %v4018_v33  ;;  %v797_v16 = vsel %vm791_vm6, %v5545_v49, %v4269_v51  ;;  %v5547_v5 = vmov 0.0   ;;  %v5550_v33 = vld [vmem:[#allocation58_spill] sm:$0xff]  ;;  %v5552_v51 = vld [vmem:[#allocation96_spill] sm:$0xff] }
 0x1f9   :  { %5542 = vst [vmem:[#allocation50_spill] sm:$0xff] %v4359_v2  ;;  %1119 = vmatpush1.bf16.msra.mxu0 %v4359_v2  ;;  %v794_v54 = vsel %vm791_vm6, %v5546_v30, %v4271_v62  ;;  %v359_v29 = vadd.f32 %v335_v10, %v242_v18  ;;  %v452_v31 = vsel %vm440_vm3, %v5549_v26, %v5548_v28  ;;  %v5551_v8 = vld [vmem:[#allocation70_spill] sm:$0xff]  ;;  %v5561_v30 = vld [vmem:[#allocation104_spill] sm:$0xff] }
 0x1fa   :  { %2846 = vmatprep.subr.bf16.mxu0 %v5547_v5  ;;  %v704_v59 = vadd.f32 %v680_v50, %v587_v24  ;;  %v701_v57 = vadd.f32 %v677_v17, %v584_v4  ;;  %v449_v32 = vsel %vm440_vm3, %v5551_v8, %v5550_v33  ;;  %v914_v41 = vsel %vm908_vm7, %v5552_v51, %v891_v0  ;;  %v5555_v0 = vld [vmem:[#allocation81_spill] sm:$0xff]  ;;  %v5557_v50 = vld [vmem:[#allocation10_spill] sm:$0xff] }
 0x1fb   :  { %v790_v52 = vpop.permute.xlu0 %789  ;;  %v782_v58 = vpop.permute.xlu1 %781  ;;  %v911_v62 = vsel %vm908_vm7, %v5553_v53, %v883_v11  ;;  %v356_v43 = vadd.f32 %v332_v45, %v239_v55  ;;  %v1645_v27 = vmul.f32 %v4189_v14, %v5554_v19  ;;  %v476_v10 = vadd.f32 %v452_v31, %v359_v29  ;;  %v5556_v11 = vld [vmem:[#allocation80_spill] sm:$0xff]  ;;  %v5558_v17 = vld [vmem:[#allocation93_spill] sm:$0xff]  ;;  %v5566_v19 = vld [vmem:[#allocation47_spill] sm:$0xff] }
 0x1fc   :  { %2082 = vrot.lane.b32.xlu0 %v4301_v47, %s3053_s18  ;;  %2080 = vrot.lane.b32.xlu1 %v2043_v9, %s3053_s18  ;;  %v821_v13 = vadd.f32 %v797_v16, %v704_v59  ;;  %v818_v15 = vadd.f32 %v794_v54, %v701_v57  ;;  %v569_v6 = vsel %vm557_vm4, %v5555_v0, %v4246_v7  ;;  %v5559_v7 = vld [vmem:[#allocation92_spill] sm:$0xff]  ;;  %v5560_v16 = vld [vmem:[#allocation105_spill] sm:$0xff]  ;;  %v5563_v57 = vld [vmem:[#allocation103_spill] sm:$0xff] }
 0x1fd   :  { %2813 = vmatmul.mubr.msk.bf16.vlgmr.msra.gmra.mrb[0].mxu0 %vm1112_vm9, %v4354_v23  ;;  %v566_v47 = vsel %vm557_vm4, %v5556_v11, %v4248_v42  ;;  %v1641_v9 = vmul.f32 %v4189_v14, %v5557_v50  ;;  %v473_v3 = vadd.f32 %v449_v32, %v356_v43  ;;  %v686_v18 = vsel %vm674_vm5, %v5558_v17, %v673_v25  ;;  %v5562_v31 = vld [vmem:[#allocation65_spill] sm:$0xff] }
 0x1fe   :  { %2850 = vmatprep.mubr.msk.bf16.mxu0 %vm3056_vm0, %v5547_v5  ;;  %v938_v24 = vadd.f32 %v914_v41, %v821_v13  ;;  %v935_v4 = vadd.f32 %v911_v62, %v818_v15  ;;  %v683_v49 = vsel %vm674_vm5, %v5559_v7, %v4327_v48  ;;  %v593_v29 = vadd.f32 %v569_v6, %v476_v10  ;;  %v5564_v41 = vld [vmem:[#allocation84_spill] sm:$0xff]  ;;  %v5565_v62 = vld [vmem:[#allocation85_spill] sm:$0xff] }
 0x1ff   :  { %v1008_v55 = vpop.permute.xlu0 %1007  ;;  %v1000_v45 = vpop.permute.xlu1 %999  ;;  %v590_v25 = vadd.f32 %v566_v47, %v473_v3  ;;  %v803_v59 = vsel %vm791_vm6, %v5562_v31, %v790_v52  ;;  %v800_v48 = vsel %vm791_vm6, %v5563_v57, %v782_v58  ;;  %v1850_v33 = vmul.f32 %v3832_v22, %v5522_v20  ;;  %v5571_v31 = vld [vmem:[#allocation30_spill] sm:$0xff] }
 0x200   :  { %v1031_v42 = vsel %vm1025_vm8, %v5560_v16, %v1008_v55  ;;  %v1028_v54 = vsel %vm1025_vm8, %v5561_v30, %v1000_v45  ;;  %1684 = vrot.lane.b32.xlu0 %v1645_v27, %s3049_s14  ;;  %1676 = vrot.lane.b32.xlu1 %v1641_v9, %s3049_s14  ;;  %v1846_v8 = vmul.f32 %v3832_v22, %v5521_v40  ;;  %v5567_v27 = vld [vmem:[#allocation44_spill] sm:$0xff]  ;;  %v5570_v16 = vld [vmem:[#allocation25_spill] sm:$0xff] }
 0x201   :  { %v1055_v28 = vadd.f32 %v1031_v42, %v938_v24  ;;  %v1052_v26 = vadd.f32 %v1028_v54, %v935_v4  ;;  %v710_v32 = vadd.f32 %v686_v18, %v593_v29  ;;  %v707_v51 = vadd.f32 %v683_v49, %v590_v25  ;;  %v5569_v55 = vld [vmem:[#allocation68_spill] sm:$0xff] }
 0x202   :  { %v2042_v47 = vmul.f32 %v3832_v22, %v5525_v56  ;;  %v2038_v50 = vmul.f32 %v3832_v22, %v5520_v34  ;;  %v1948_v42 = vmul.f32 %v3803_v12, %v5570_v16  ;;  %v1947_v30 = vmul.f32 %v3807_v1, %v5570_v16 }
 0x203   :  { %v1087_v53 = vadd.f32 %v5564_v41, %v1055_v28  ;;  %v1084_v43 = vadd.f32 %v5565_v62, %v1052_v26  ;;  %v907_v13 = vpop.permute.xlu0 %906  ;;  %v899_v15 = vpop.permute.xlu1 %898  ;;  %v827_v10 = vadd.f32 %v803_v59, %v710_v32  ;;  %v824_v0 = vadd.f32 %v800_v48, %v707_v51  ;;  %v5573_v32 = vld [vmem:[#allocation26_spill] sm:$0xff]  ;;  %v5593_v62 = vld [vmem:[#allocation35_spill] sm:$0xff] }
 0x204   :  { %v920_v52 = vsel %vm908_vm7, %v5566_v19, %v907_v13  ;;  %v917_v58 = vsel %vm908_vm7, %v5567_v27, %v899_v15  ;;  %1894 = vrot.lane.b32.xlu0 %v1850_v33, %s3051_s16  ;;  %1886 = vrot.lane.b32.xlu1 %v1846_v8, %s3051_s16  ;;  %v1952_v59 = vmul.f32 %v3803_v12, %v5571_v31  ;;  %v5574_v15 = vld [vmem:[#allocation27_spill] sm:$0xff] }
 0x205   :  { %v1099_v6 = vmax.f32 %v1087_v53, 0.0  ;;  %v1096_v11 = vmax.f32 %v1084_v43, 0.0  ;;  %v944_v3 = vadd.f32 %v920_v52, %v827_v10  ;;  %v941_v17 = vadd.f32 %v917_v58, %v824_v0  ;;  %v5575_v10 = vld [vmem:[#allocation13_spill] sm:$0xff] }
 0x206   :  { %v1951_v57 = vmul.f32 %v3807_v1, %v5571_v31  ;;  %v2140_v51 = vmul.f32 %v3803_v12, %v5573_v32  ;;  %v2139_v53 = vmul.f32 %v3807_v1, %v5573_v32  ;;  %v2144_v19 = vmul.f32 %v3803_v12, %v5574_v15 }
 0x207   :  { %v4441_v9 = vpack.c.bf16 %v1099_v6, %v1096_v11  ;;  %v1024_v18 = vpop.permute.xlu0 %1023  ;;  %v1016_v24 = vpop.permute.xlu1 %1015  ;;  %v2143_v52 = vmul.f32 %v3807_v1, %v5574_v15  ;;  %v1553_v0 = vmul.f32 %v4189_v14, %v5575_v10  ;;  %v5576_v6 = vld [vmem:[#allocation16_spill] sm:$0xff] }
 0x208   :  { %v1037_v4 = vsel %vm1025_vm8, %v4223_v39, %v1024_v18  ;;  %v1034_v45 = vsel %vm1025_vm8, %v5569_v55, %v1016_v24  ;;  %2078 = vrot.lane.b32.xlu0 %v2042_v47, %s3053_s18  ;;  %2070 = vrot.lane.b32.xlu1 %v2038_v50, %s3053_s18  ;;  %v1549_v11 = vmul.f32 %v4189_v14, %v5576_v6  ;;  %v5578_v18 = vld [vmem:[#allocation20_spill] sm:$0xff] }
 0x209   :  { %5568 = vst [vmem:[#allocation39_spill] sm:$0xff] %v4441_v9  ;;  %v1061_v7 = vadd.f32 %v1037_v4, %v944_v3  ;;  %v1058_v49 = vadd.f32 %v1034_v45, %v941_v17  ;;  %2847 = vmatpush3.bf16.msra.mxu0 %v4441_v9  ;;  %v5577_v3 = vld [vmem:[#allocation14_spill] sm:$0xff]  ;;  %v1741_v24 = vmul.f32 %v4189_v14, %v5578_v18  ;;  %v5587_v9 = vld [vmem:[#allocation19_spill] sm:$0xff] }
 0x20a   :  { %2848 = vmatprep.subr.bf16.mxu0 %v5547_v5  ;;  %v1745_v17 = vmul.f32 %v4189_v14, %v5577_v3  ;;  %v1950_v45 = vmul.f32 %v3832_v22, %v5571_v31 }
 0x20b   :  { %v1093_v39 = vadd.f32 %v3989_v36, %v1061_v7  ;;  %v1090_v54 = vadd.f32 %v3991_v21, %v1058_v49  ;;  %v4457_v29 = vpop.permute.xlu0 %1574  ;;  %v4459_v25 = vpop.permute.xlu1 %1572  ;;  %v1946_v7 = vmul.f32 %v3832_v22, %v5570_v16  ;;  %v5590_v36 = vld [vmem:[#allocation33_spill] sm:$0xff] }
 0x20c   :  { %1990 = vrot.lane.b32.xlu0 %v1948_v42, %s3052_s17  ;;  %1988 = vrot.lane.b32.xlu1 %v1947_v30, %s3052_s17  ;;  %v2142_v30 = vmul.f32 %v3832_v22, %v5574_v15  ;;  %v2148_v21 = vmul.f32 %v3803_v12, %v5590_v36 }
 0x20d   :  { %v1105_v28 = vmax.f32 %v1093_v39, 0.0  ;;  %v1102_v26 = vmax.f32 %v1090_v54, 0.0  ;;  %v2138_v39 = vmul.f32 %v3832_v22, %v5573_v32 }
 0x20f   :  { %v4467_v48 = vpack.c.bf16 %v1105_v28, %v1102_v26  ;;  %v4469_v33 = vpop.permute.xlu0 %1582  ;;  %v4471_v8 = vpop.permute.xlu1 %1580  ;;  %v5579_v26 = vld [vmem:[#allocation34_spill] sm:$0xff] }
 0x210   :  { %1998 = vrot.lane.b32.xlu0 %v1952_v59, %s3052_s17  ;;  %1996 = vrot.lane.b32.xlu1 %v1951_v57, %s3052_s17  ;;  %v2048_v59 = vmul.f32 %v3803_v12, %v5579_v26  ;;  %v2047_v57 = vmul.f32 %v3807_v1, %v5579_v26 }
 0x211   :  { %5572 = vst [vmem:[#allocation59_spill] sm:$0xff] %v4467_v48  ;;  %2849 = vmatpush3.bf16.msra.mxu0 %v4467_v48 }
 0x213   :  { %v4480_v43 = vpop.permute.xlu0 %1578  ;;  %v4482_v13 = vpop.permute.xlu1 %1570 }
 0x214   :  { %2174 = vrot.lane.b32.xlu0 %v2140_v51, %s3054_s23  ;;  %2172 = vrot.lane.b32.xlu1 %v2139_v53, %s3054_s23 }
 0x215   :  { %2851 = vmatmul.mubr.msk.bf16.vlgmr.msra.gmra.mrb[4].mxu0 %vm1112_vm9, %v4354_v23  ;;  %v1845_v23 = vmul.f32 %v4189_v14, %v5587_v9 }
 0x216   :  { %1290 = vmatprep.mubr.f32.mxu0 %v5547_v5 }
 0x217   :  { %v4493_v27 = vpop.permute.xlu0 %1674  ;;  %v4495_v58 = vpop.permute.xlu1 %1672 }
 0x218   :  { %2182 = vrot.lane.b32.xlu0 %v2144_v19, %s3054_s23  ;;  %2180 = vrot.lane.b32.xlu1 %v2143_v52, %s3054_s23  ;;  %v5580_v19 = vld [vmem:[#allocation29_spill] sm:$0xff] }
 0x219   :  { %v2052_v52 = vmul.f32 %v3803_v12, %v5580_v19  ;;  %v2051_v10 = vmul.f32 %v3807_v1, %v5580_v19 }
 0x21b   :  { %v4503_v47 = vpop.permute.xlu0 %1682  ;;  %v4505_v50 = vpop.permute.xlu1 %1680 }
 0x21c   :  { %1600 = vrot.lane.b32.xlu0 %v1553_v0, %s3048_s2  ;;  %1592 = vrot.lane.b32.xlu1 %v1549_v11, %s3048_s2  ;;  %v5581_v11 = vld [vmem:[#allocation31_spill] sm:$0xff] }
 0x21d   :  { %v2240_v3 = vmul.f32 %v3803_v12, %v5581_v11 }
 0x21f   :  { %v4513_v4 = vpop.permute.xlu0 %1678  ;;  %v4515_v55 = vpop.permute.xlu1 %1670 }
 0x220   :  { %1784 = vrot.lane.b32.xlu0 %v1745_v17, %s3050_s15  ;;  %1776 = vrot.lane.b32.xlu1 %v1741_v24, %s3050_s15  ;;  %v2239_v17 = vmul.f32 %v3807_v1, %v5581_v11 }
 0x223   :  { %v4523_v49 = vpop.permute.xlu0 %1590  ;;  %v4525_v42 = vpop.permute.xlu1 %1588 }
 0x224   :  { %1994 = vrot.lane.b32.xlu0 %v1950_v45, %s3052_s17  ;;  %1986 = vrot.lane.b32.xlu1 %v1946_v7, %s3052_s17  ;;  %v5584_v45 = vld [vmem:[#allocation36_spill] sm:$0xff] }
 0x225   :  { %v2244_v7 = vmul.f32 %v3803_v12, %v5584_v45 }
 0x227   :  { %v4533_v54 = vpop.permute.xlu0 %1598  ;;  %v4535_v28 = vpop.permute.xlu1 %1596 }
 0x228   :  { %2178 = vrot.lane.b32.xlu0 %v2142_v30, %s3054_s23  ;;  %2170 = vrot.lane.b32.xlu1 %v2138_v39, %s3054_s23  ;;  %v2243_v30 = vmul.f32 %v3807_v1, %v5584_v45 }
 0x22b   :  { %v4543_v51 = vpop.permute.xlu0 %1774  ;;  %v4545_v53 = vpop.permute.xlu1 %1772 }
 0x22c   :  { %2090 = vrot.lane.b32.xlu0 %v2048_v59, %s3053_s18  ;;  %2088 = vrot.lane.b32.xlu1 %v2047_v57, %s3053_s18  ;;  %v5585_v57 = vld [vmem:[#allocation17_spill] sm:$0xff] }
 0x22f   :  { %v4553_v0 = vpop.permute.xlu0 %1782  ;;  %v4555_v6 = vpop.permute.xlu1 %1780 }
 0x230   :  { %2098 = vrot.lane.b32.xlu0 %v2052_v52, %s3053_s18  ;;  %2096 = vrot.lane.b32.xlu1 %v2051_v10, %s3053_s18  ;;  %v1653_v52 = vmul.f32 %v4189_v14, %v5585_v57  ;;  %v5586_v10 = vld [vmem:[#allocation15_spill] sm:$0xff] }
 0x233   :  { %v4563_v18 = vpop.permute.xlu0 %1594  ;;  %v4565_v24 = vpop.permute.xlu1 %1586 }
 0x234   :  { %5582 = vst [vmem:[#allocation60_spill] sm:$0xff] %v4563_v18  ;;  %5583 = vst [vmem:[#allocation51_spill] sm:$0xff] %v4565_v24  ;;  %2274 = vrot.lane.b32.xlu0 %v2240_v3, %s3055_s24  ;;  %2272 = vrot.lane.b32.xlu1 %v2239_v17, %s3055_s24  ;;  %v1649_v3 = vmul.f32 %v4189_v14, %v5586_v10  ;;  %v2050_v10 = vmul.f32 %v3832_v22, %v5580_v19 }
 0x235   :  { %v1945_v24 = vmul.f32 %v4189_v14, %v5503_v60 }
 0x237   :  { %v4573_v39 = vpop.permute.xlu0 %1778  ;;  %v4575_v59 = vpop.permute.xlu1 %1770 }
 0x238   :  { %2282 = vrot.lane.b32.xlu0 %v2244_v7, %s3055_s24  ;;  %2280 = vrot.lane.b32.xlu1 %v2243_v30, %s3055_s24  ;;  %v5588_v7 = vld [vmem:[#allocation18_spill] sm:$0xff] }
 0x239   :  { %v1841_v30 = vmul.f32 %v4189_v14, %v5588_v7  ;;  %v2242_v7 = vmul.f32 %v3832_v22, %v5584_v45 }
 0x23b   :  { %v4583_v17 = vpop.permute.xlu0 %1690  ;;  %v4585_v48 = vpop.permute.xlu1 %1688 }
 0x23c   :  { %1700 = vrot.lane.b32.xlu0 %v1653_v52, %s3049_s14  ;;  %1692 = vrot.lane.b32.xlu1 %v1649_v3, %s3049_s14  ;;  %v2046_v52 = vmul.f32 %v3832_v22, %v5579_v26 }
 0x23f   :  { %v4593_v5 = vpop.permute.xlu0 %1698  ;;  %v4595_v57 = vpop.permute.xlu1 %1696 }
 0x240   :  { %1884 = vrot.lane.b32.xlu0 %v1845_v23, %s3051_s16  ;;  %1876 = vrot.lane.b32.xlu1 %v1841_v30, %s3051_s16  ;;  %v2238_v23 = vmul.f32 %v3832_v22, %v5581_v11  ;;  %v2152_v11 = vmul.f32 %v3803_v12, %v5593_v62 }
 0x243   :  { %v4603_v3 = vpop.permute.xlu0 %1874  ;;  %v4605_v9 = vpop.permute.xlu1 %1872 }
 0x244   :  { %2094 = vrot.lane.b32.xlu0 %v2050_v10, %s3053_s18  ;;  %2086 = vrot.lane.b32.xlu1 %v2046_v52, %s3053_s18  ;;  %v2147_v10 = vmul.f32 %v3807_v1, %v5590_v36 }
 0x247   :  { %v4613_v30 = vpop.permute.xlu0 %1882  ;;  %v4615_v2 = vpop.permute.xlu1 %1880 }
 0x248   :  { %5589 = vst [vmem:[#allocation52_spill] sm:$0xff] %v4613_v30  ;;  %2278 = vrot.lane.b32.xlu0 %v2242_v7, %s3055_s24  ;;  %2270 = vrot.lane.b32.xlu1 %v2238_v23, %s3055_s24  ;;  %v2151_v7 = vmul.f32 %v3807_v1, %v5593_v62 }
 0x24b   :  { %v4623_v52 = vpop.permute.xlu0 %1694  ;;  %v4625_v41 = vpop.permute.xlu1 %1686 }
 0x24c   :  { %5591 = vst [vmem:[#allocation71_spill] sm:$0xff] %v4623_v52  ;;  %5592 = vst [vmem:[#allocation40_spill] sm:$0xff] %v4625_v41  ;;  %2190 = vrot.lane.b32.xlu0 %v2148_v21, %s3054_s23  ;;  %2188 = vrot.lane.b32.xlu1 %v2147_v10, %s3054_s23  ;;  %v1753_v52 = vmul.f32 %v4189_v14, %v3272_v63  ;;  %v1749_v21 = vmul.f32 %v4189_v14, %v3334_v35 }
 0x24d   :  { %v2150_v35 = vmul.f32 %v3832_v22, %v5593_v62 }
 0x24f   :  { %v1879_v23 = vpop.permute.xlu0 %1878  ;;  %v1871_v45 = vpop.permute.xlu1 %1870 }
 0x250   :  { %2198 = vrot.lane.b32.xlu0 %v2152_v11, %s3054_s23  ;;  %2196 = vrot.lane.b32.xlu1 %v2151_v7, %s3054_s23  ;;  %v1941_v11 = vmul.f32 %v4189_v14, %v5500_v44  ;;  %v5594_v44 = vld [vmem:[#allocation38_spill] sm:$0xff] }
 0x251   :  { %v2248_v18 = vmul.f32 %v3803_v12, %v5594_v44 }
 0x253   :  { %v4639_v41 = vpop.permute.xlu0 %1790  ;;  %v4641_v10 = vpop.permute.xlu1 %1788 }
 0x254   :  { %1800 = vrot.lane.b32.xlu0 %v1753_v52, %s3050_s15  ;;  %1792 = vrot.lane.b32.xlu1 %v1749_v21, %s3050_s15  ;;  %v2146_v52 = vmul.f32 %v3832_v22, %v5590_v36  ;;  %v5596_v36 = vld [vmem:[#allocation37_spill] sm:$0xff] }
 0x255   :  { %v2252_v26 = vmul.f32 %v3803_v12, %v5596_v36  ;;  %v2251_v19 = vmul.f32 %v3807_v1, %v5596_v36 }
 0x257   :  { %v4649_v7 = vpop.permute.xlu0 %1798  ;;  %v4651_v63 = vpop.permute.xlu1 %1796 }
 0x258   :  { %1984 = vrot.lane.b32.xlu0 %v1945_v24, %s3052_s17  ;;  %1976 = vrot.lane.b32.xlu1 %v1941_v11, %s3052_s17  ;;  %v2247_v24 = vmul.f32 %v3807_v1, %v5594_v44 }
 0x25b   :  { %v4659_v21 = vpop.permute.xlu0 %1974  ;;  %v4661_v60 = vpop.permute.xlu1 %1972 }
 0x25c   :  { %2194 = vrot.lane.b32.xlu0 %v2150_v35, %s3054_s23  ;;  %2186 = vrot.lane.b32.xlu1 %v2146_v52, %s3054_s23  ;;  %v1605_v35 = vsel %vm206_vm1, %v4480_v43, %v4471_v8  ;;  %v1602_v52 = vsel %vm206_vm1, %v4482_v13, %v4459_v25  ;;  %v1705_v43 = vsel %vm323_vm2, %v4513_v4, %v4505_v50 }
 0x25d   :  { %v1702_v13 = vsel %vm323_vm2, %v4515_v55, %v4495_v58  ;;  %v1853_v4 = vmul.f32 %v4189_v14, %v5522_v20  ;;  %v1849_v55 = vmul.f32 %v4189_v14, %v5521_v40  ;;  %v1512_v40 = vmul.f32 %v3807_v1, %v5486_v46 }
 0x25f   :  { %v4669_v11 = vpop.permute.xlu0 %1982  ;;  %v4671_v62 = vpop.permute.xlu1 %1980 }
 0x260   :  { %5595 = vst [vmem:[#allocation61_spill] sm:$0xff] %v4669_v11  ;;  %2290 = vrot.lane.b32.xlu0 %v2248_v18, %s3055_s24  ;;  %2288 = vrot.lane.b32.xlu1 %v2247_v24, %s3055_s24  ;;  %v1508_v11 = vmul.f32 %v3832_v22, %v3424_v37  ;;  %v1505_v18 = vmul.f32 %v3832_v22, %v3426_v38 }
 0x262   :  { %v1629_v12 = vadd.f32 %v1605_v35, %v1508_v11  ;;  %v1626_v15 = vadd.f32 %v1602_v52, %v1505_v18  ;;  %v1905_v11 = vsel %vm557_vm4, %v1879_v23, %v4615_v2  ;;  %v1506_v52 = vmul.f32 %v3807_v1, %v3426_v38 }
 0x263   :  { %v4689_v24 = vpop.permute.xlu0 %1584  ;;  %v4691_v32 = vpop.permute.xlu1 %1576  ;;  %v1603_v18 = vsel %vm206_vm1, %v4459_v25, %v4457_v29  ;;  %v1809_v25 = vsel %vm440_vm3, %v4641_v10, %v4639_v41 }
 0x264   :  { %5597 = vst [vmem:[#allocation62_spill] sm:$0xff] %v4689_v24  ;;  %5598 = vst [vmem:[#allocation73_spill] sm:$0xff] %v4691_v32  ;;  %2298 = vrot.lane.b32.xlu0 %v2252_v26, %s3055_s24  ;;  %2296 = vrot.lane.b32.xlu1 %v2251_v19, %s3055_s24  ;;  %v1805_v24 = vsel %vm440_vm3, %v4573_v39, %v4555_v6  ;;  %v1802_v32 = vsel %vm440_vm3, %v4575_v59, %v4545_v53 }
 0x265   :  { %v1729_v30 = vadd.f32 %v1705_v43, %v1629_v12  ;;  %v1726_v26 = vadd.f32 %v1702_v13, %v1626_v15  ;;  %v1609_v19 = vsel %vm206_vm1, %v4525_v42, %v4523_v49  ;;  %v1902_v59 = vsel %vm557_vm4, %v1871_v45, %v4605_v9 }
 0x266   :  { %v2041_v45 = vmul.f32 %v4189_v14, %v5520_v34  ;;  %v1709_v43 = vsel %vm323_vm2, %v4585_v48, %v4583_v17  ;;  %v2045_v13 = vmul.f32 %v4189_v14, %v5525_v56  ;;  %v1515_v56 = vmul.f32 %v3807_v1, %v5495_v61 }
 0x267   :  { %v1795_v39 = vpop.permute.xlu0 %1794  ;;  %v1787_v35 = vpop.permute.xlu1 %1786  ;;  %v1829_v15 = vadd.f32 %v1805_v24, %v1729_v30  ;;  %v1826_v23 = vadd.f32 %v1802_v32, %v1726_v26  ;;  %v1612_v32 = vsel %vm206_vm1, %v4535_v28, %v4533_v54 }
 0x268   :  { %v4720_v20 = vsel %vm440_vm3, %v1795_v39, %v4651_v63  ;;  %v4724_v12 = vsel %vm440_vm3, %v1787_v35, %v4641_v10  ;;  %1900 = vrot.lane.b32.xlu0 %v1853_v4, %s3051_s16  ;;  %1892 = vrot.lane.b32.xlu1 %v1849_v55, %s3051_s16  ;;  %v1633_v4 = vadd.f32 %v1609_v19, %v1512_v40 }
 0x269   :  { %v1929_v34 = vadd.f32 %v1905_v11, %v1829_v15  ;;  %v1926_v30 = vadd.f32 %v1902_v59, %v1826_v23  ;;  %v1703_v10 = vsel %vm323_vm2, %v4495_v58, %v4493_v27  ;;  %v1712_v59 = vsel %vm323_vm2, %v4595_v57, %v4593_v5 }
 0x26a   :  { %v1733_v19 = vadd.f32 %v1709_v43, %v1633_v4  ;;  %v2250_v40 = vmul.f32 %v3832_v22, %v5596_v36  ;;  %v2246_v15 = vmul.f32 %v3832_v22, %v5594_v44  ;;  %v1627_v23 = vadd.f32 %v1603_v18, %v1506_v52 }
 0x26b   :  { %v1979_v24 = vpop.permute.xlu0 %1978  ;;  %v1971_v55 = vpop.permute.xlu1 %1970  ;;  %v1636_v43 = vadd.f32 %v1612_v32, %v1515_v56 }
 0x26c   :  { %v2005_v26 = vsel %vm674_vm5, %v1979_v24, %v4671_v62  ;;  %v2002_v39 = vsel %vm674_vm5, %v1971_v55, %v4661_v60  ;;  %2084 = vrot.lane.b32.xlu0 %v2045_v13, %s3053_s18  ;;  %2076 = vrot.lane.b32.xlu1 %v2041_v45, %s3053_s18  ;;  %v1606_v45 = vsel %vm206_vm1, %v4471_v8, %v4469_v33 }
 0x26d   :  { %v4756_v11 = vadd.f32 %v2005_v26, %v1929_v34  ;;  %v4758_v35 = vadd.f32 %v2002_v39, %v1926_v30  ;;  %v1833_v13 = vadd.f32 %v1809_v25, %v1733_v19  ;;  %v1803_v34 = vsel %vm440_vm3, %v4545_v53, %v4543_v51 }
 0x26e   :  { %v1812_v30 = vsel %vm440_vm3, %v4651_v63, %v4649_v7  ;;  %v1509_v8 = vmul.f32 %v3807_v1, %v3424_v37  ;;  %v1727_v18 = vadd.f32 %v1703_v10, %v1627_v23  ;;  %v1736_v32 = vadd.f32 %v1712_v59, %v1636_v43 }
 0x26f   :  { %v4773_v4 = vpop.permute.xlu0 %1890  ;;  %v4775_v58 = vpop.permute.xlu1 %1888  ;;  %v1706_v53 = vsel %vm323_vm2, %v4505_v50, %v4503_v47  ;;  %v1903_v63 = vsel %vm557_vm4, %v4605_v9, %v4603_v3  ;;  %v1953_v55 = vmul.f32 %v4189_v14, %v5571_v31  ;;  %v1949_v25 = vmul.f32 %v4189_v14, %v5570_v16 }
 0x270   :  { %v1909_v52 = vsel %vm557_vm4, %v4775_v58, %v4773_v4  ;;  %2294 = vrot.lane.b32.xlu0 %v2250_v40, %s3055_s24  ;;  %2286 = vrot.lane.b32.xlu1 %v2246_v15, %s3055_s24  ;;  %v1630_v26 = vadd.f32 %v1606_v45, %v1509_v8  ;;  %v1827_v1 = vadd.f32 %v1803_v34, %v1727_v18  ;;  %v5599_v40 = vld [vmem:[#allocation52_spill] sm:$0xff]  ;;  %v5600_v15 = vld [vmem:[#allocation27_spill] sm:$0xff] }
 0x271   :  { %v4790_v24 = vadd.f32 %v1909_v52, %v1833_v13  ;;  %v1836_v39 = vadd.f32 %v1812_v30, %v1736_v32  ;;  %v1806_v50 = vsel %vm440_vm3, %v4555_v6, %v4553_v0  ;;  %v2003_v9 = vsel %vm674_vm5, %v4661_v60, %v4659_v21  ;;  %v5601_v60 = vld [vmem:[#allocation26_spill] sm:$0xff]  ;;  %v5602_v52 = vld [vmem:[#allocation61_spill] sm:$0xff] }
 0x272   :  { %v1730_v16 = vadd.f32 %v1706_v53, %v1630_v26  ;;  %v1927_v10 = vadd.f32 %v1903_v63, %v1827_v1  ;;  %v1906_v6 = vsel %vm557_vm4, %v4615_v2, %v5599_v40  ;;  %v2145_v23 = vmul.f32 %v4189_v14, %v5600_v15  ;;  %v5603_v63 = vld [vmem:[#allocation29_spill] sm:$0xff]  ;;  %v5608_v15 = vld [vmem:[#allocation62_spill] sm:$0xff] }
 0x273   :  { %v4802_v56 = vpop.permute.xlu0 %1898  ;;  %v4804_v19 = vpop.permute.xlu1 %1896  ;;  %v2141_v45 = vmul.f32 %v4189_v14, %v5601_v60  ;;  %v2006_v8 = vsel %vm674_vm5, %v4671_v62, %v5602_v52  ;;  %v5360_v53 = vmov 0.0|0.0   ;;  %v5605_v62 = vld [vmem:[#allocation60_spill] sm:$0xff]  ;;  %v5609_v60 = vld [vmem:[#allocation73_spill] sm:$0xff] }
 0x274   :  { %v1912_v31 = vsel %vm557_vm4, %v4804_v19, %v4802_v56  ;;  %2000 = vrot.lane.b32.xlu0 %v1953_v55, %s3052_s17  ;;  %1992 = vrot.lane.b32.xlu1 %v1949_v25, %s3052_s17  ;;  %v1830_v43 = vadd.f32 %v1806_v50, %v1730_v16  ;;  %v2027_v13 = vadd.f32 %v2003_v9, %v1927_v10  ;;  %v5604_v25 = vld [vmem:[#allocation34_spill] sm:$0xff] }
 0x275   :  { %v4817_v59 = vadd.f32 %v1912_v31, %v1836_v39  ;;  %2907 = vmatprep.subr.bf16.mxu1 %v5360_v53  ;;  %v2053_v55 = vmul.f32 %v4189_v14, %v5603_v63  ;;  %v2049_v26 = vmul.f32 %v4189_v14, %v5604_v25  ;;  %v1611_v1 = vsel %vm206_vm1, %v5605_v62, %v4535_v28  ;;  %v5606_v39 = vld [vmem:[#allocation51_spill] sm:$0xff] }
 0x276   :  { %v1930_v2 = vadd.f32 %v1906_v6, %v1830_v43  ;;  %v1608_v50 = vsel %vm206_vm1, %v5606_v39, %v4525_v42  ;;  %v5607_v31 = vld [vmem:[#allocation91_spill] sm:$0xff]  ;;  %v1511_v42 = vmul.f32 %v3832_v22, %v5486_v46 }
 0x277   :  { %v4826_v34 = vpop.permute.xlu0 %2074  ;;  %v2073_v30 = vpop.permute.xlu1 %2072  ;;  %v1507_v16 = vmul.f32 %v5607_v31, %v3426_v38  ;;  %v1514_v38 = vmul.f32 %v3832_v22, %v5495_v61 }
 0x278   :  { %v2103_v18 = vsel %vm791_vm6, %v2073_v30, %v4826_v34  ;;  %2184 = vrot.lane.b32.xlu0 %v2145_v23, %s3054_s23  ;;  %2176 = vrot.lane.b32.xlu1 %v2141_v45, %s3054_s23  ;;  %v2030_v9 = vadd.f32 %v2006_v8, %v1930_v2  ;;  %v1607_v23 = vsel %vm206_vm1, %v4469_v33, %v5608_v15  ;;  %v5611_v8 = vld [vmem:[#allocation40_spill] sm:$0xff] }
 0x279   :  { %v4835_v32 = vadd.f32 %v2103_v18, %v2027_v13  ;;  %v1604_v45 = vsel %vm206_vm1, %v4457_v29, %v5609_v60  ;;  %v1510_v33 = vmul.f32 %v5607_v31, %v3424_v37  ;;  %v5610_v13 = vld [vmem:[#allocation71_spill] sm:$0xff]  ;;  %v1708_v18 = vsel %vm323_vm2, %v5611_v8, %v4585_v48  ;;  %v5612_v2 = vld [vmem:[#allocation36_spill] sm:$0xff] }
 0x27a   :  { %v1711_v29 = vsel %vm323_vm2, %v5610_v13, %v4595_v57  ;;  %v2245_v63 = vmul.f32 %v4189_v14, %v5612_v2  ;;  %v1632_v22 = vadd.f32 %v1608_v50, %v1511_v42  ;;  %v1628_v39 = vadd.f32 %v1604_v45, %v1507_v16  ;;  %v5615_v16 = vld [vmem:[#allocation33_spill] sm:$0xff] }
 0x27b   :  { %v4850_v10 = vpop.permute.xlu0 %2082  ;;  %v2081_v6 = vpop.permute.xlu1 %2080  ;;  %v1631_v62 = vadd.f32 %v1607_v23, %v1510_v33  ;;  %v2149_v23 = vmul.f32 %v4189_v14, %v5615_v16 }
 0x27c   :  { %v2106_v28 = vsel %vm791_vm6, %v2081_v6, %v4850_v10  ;;  %2100 = vrot.lane.b32.xlu0 %v2053_v55, %s3053_s18  ;;  %2092 = vrot.lane.b32.xlu1 %v2049_v26, %s3053_s18  ;;  %v5613_v55 = vld [vmem:[#allocation31_spill] sm:$0xff]  ;;  %v1635_v26 = vadd.f32 %v1611_v1, %v1514_v38  ;;  %v1732_v60 = vadd.f32 %v1708_v18, %v1632_v22 }
 0x27d   :  { %v2130_v43 = vadd.f32 %v2106_v28, %v2030_v9  ;;  %v2241_v25 = vmul.f32 %v4189_v14, %v5613_v55  ;;  %v5614_v1 = vld [vmem:[#allocation35_spill] sm:$0xff]  ;;  %v2253_v18 = vmul.f32 %v4189_v14, %v5596_v36 }
 0x27e   :  { %v1735_v48 = vadd.f32 %v1711_v29, %v1635_v26  ;;  %v2153_v50 = vmul.f32 %v4189_v14, %v5614_v1 }
 0x27f   :  { %v1685_v37 = vpop.permute.xlu0 %1684  ;;  %v1677_v9 = vpop.permute.xlu1 %1676 }
 0x280   :  { %v1707_v15 = vsel %vm323_vm2, %v4503_v47, %v1685_v37  ;;  %v1704_v57 = vsel %vm323_vm2, %v4493_v27, %v1677_v9  ;;  %2284 = vrot.lane.b32.xlu0 %v2245_v63, %s3055_s24  ;;  %2276 = vrot.lane.b32.xlu1 %v2241_v25, %s3055_s24  ;;  %v1835_v45 = vadd.f32 %v4720_v20, %v1735_v48 }
 0x281   :  { %v1731_v28 = vadd.f32 %v1707_v15, %v1631_v62  ;;  %v1728_v13 = vadd.f32 %v1704_v57, %v1628_v39  ;;  %v1832_v47 = vadd.f32 %v4724_v12, %v1732_v60  ;;  %v2249_v20 = vmul.f32 %v4189_v14, %v5594_v44 }
 0x283   :  { %v1895_v38 = vpop.permute.xlu0 %1894  ;;  %v1887_v27 = vpop.permute.xlu1 %1886 }
 0x284   :  { %v1911_v42 = vsel %vm557_vm4, %v1895_v38, %v4804_v19  ;;  %v1908_v33 = vsel %vm557_vm4, %v1887_v27, %v4775_v58  ;;  %2200 = vrot.lane.b32.xlu0 %v2153_v50, %s3054_s23  ;;  %2192 = vrot.lane.b32.xlu1 %v2149_v23, %s3054_s23 }
 0x285   :  { %v1935_v29 = vadd.f32 %v1911_v42, %v1835_v45  ;;  %v1932_v8 = vadd.f32 %v1908_v33, %v1832_v47 }
 0x287   :  { %v2079_v12 = vpop.permute.xlu0 %2078  ;;  %v2071_v2 = vpop.permute.xlu1 %2070 }
 0x288   :  { %v2105_v63 = vsel %vm791_vm6, %v2079_v12, %v2081_v6  ;;  %v2102_v19 = vsel %vm791_vm6, %v2071_v2, %v2073_v30  ;;  %2300 = vrot.lane.b32.xlu0 %v2253_v18, %s3055_s24  ;;  %2292 = vrot.lane.b32.xlu1 %v2249_v20, %s3055_s24 }
 0x289   :  { %v2129_v58 = vadd.f32 %v2105_v63, %v4756_v11  ;;  %v2126_v55 = vadd.f32 %v2102_v19, %v4758_v35 }
 0x28b   :  { %v4906_v25 = vpop.permute.xlu0 %1990  ;;  %v1989_v36 = vpop.permute.xlu1 %1988 }
 0x28c   :  { %v2009_v14 = vsel %vm674_vm5, %v1989_v36, %v4906_v25 }
 0x28d   :  { %v2033_v44 = vadd.f32 %v2009_v14, %v4790_v24 }
 0x28f   :  { %v4911_v26 = vpop.permute.xlu0 %1998  ;;  %v1997_v6 = vpop.permute.xlu1 %1996 }
 0x290   :  { %v2012_v30 = vsel %vm674_vm5, %v1997_v6, %v4911_v26 }
 0x291   :  { %v4916_v22 = vadd.f32 %v2012_v30, %v4817_v59 }
 0x293   :  { %v4918_v11 = vpop.permute.xlu0 %2174  ;;  %v2173_v35 = vpop.permute.xlu1 %2172 }
 0x294   :  { %v2203_v62 = vsel %vm908_vm7, %v2173_v35, %v4918_v11 }
 0x295   :  { %v2227_v39 = vadd.f32 %v2203_v62, %v4835_v32  ;;  %v1513_v62 = vmul.f32 %v5607_v31, %v5486_v46 }
 0x297   :  { %v4923_v37 = vpop.permute.xlu0 %2182  ;;  %v2181_v24 = vpop.permute.xlu1 %2180 }
 0x298   :  { %v2206_v9 = vsel %vm908_vm7, %v2181_v24, %v4923_v37 }
 0x299   :  { %v2230_v15 = vadd.f32 %v2206_v9, %v2130_v43 }
 0x29b   :  { %v1601_v57 = vpop.permute.xlu0 %1600  ;;  %v1593_v48 = vpop.permute.xlu1 %1592 }
 0x29f   :  { %v1785_v60 = vpop.permute.xlu0 %1784  ;;  %v1777_v59 = vpop.permute.xlu1 %1776 }
 0x2a0   :  { %v1807_v1 = vsel %vm440_vm3, %v4553_v0, %v1785_v60  ;;  %v1804_v50 = vsel %vm440_vm3, %v4543_v51, %v1777_v59 }
 0x2a1   :  { %v4931_v16 = vadd.f32 %v1807_v1, %v1731_v28  ;;  %v4933_v32 = vadd.f32 %v1804_v50, %v1728_v13  ;;  %v5617_v1 = vld [vmem:[#allocation84_spill] sm:$0xff] }
 0x2a3   :  { %v1995_v23 = vpop.permute.xlu0 %1994  ;;  %v1987_v45 = vpop.permute.xlu1 %1986 }
 0x2a4   :  { %v2011_v47 = vsel %vm674_vm5, %v1995_v23, %v1997_v6  ;;  %v2008_v43 = vsel %vm674_vm5, %v1987_v45, %v1989_v36  ;;  %v1613_v6 = vsel %vm206_vm1, %v4533_v54, %v1601_v57 }
 0x2a5   :  { %v2035_v38 = vadd.f32 %v2011_v47, %v1935_v29  ;;  %v2032_v27 = vadd.f32 %v2008_v43, %v1932_v8 }
 0x2a7   :  { %v2179_v42 = vpop.permute.xlu0 %2178  ;;  %v2171_v33 = vpop.permute.xlu1 %2170 }
 0x2a8   :  { %v2205_v18 = vsel %vm908_vm7, %v2179_v42, %v2181_v24  ;;  %v2202_v0 = vsel %vm908_vm7, %v2171_v33, %v2173_v35  ;;  %v1516_v35 = vmul.f32 %v5607_v31, %v5495_v61  ;;  %v5616_v24 = vld [vmem:[#allocation85_spill] sm:$0xff] }
 0x2a9   :  { %v2229_v20 = vadd.f32 %v2205_v18, %v2129_v58  ;;  %v2226_v51 = vadd.f32 %v2202_v0, %v2126_v55 }
 0x2aa   :  { %v1637_v60 = vadd.f32 %v1613_v6, %v1516_v35 }
 0x2ab   :  { %v4939_v28 = vpop.permute.xlu0 %2090  ;;  %v2089_v13 = vpop.permute.xlu1 %2088 }
 0x2ac   :  { %v2109_v12 = vsel %vm791_vm6, %v2089_v13, %v4939_v28 }
 0x2ad   :  { %v4943_v2 = vadd.f32 %v2109_v12, %v2033_v44  ;;  %v1610_v44 = vsel %vm206_vm1, %v4523_v49, %v1593_v48 }
 0x2ae   :  { %v1634_v59 = vadd.f32 %v1610_v44, %v1513_v62 }
 0x2af   :  { %v4945_v63 = vpop.permute.xlu0 %2098  ;;  %v4947_v29 = vpop.permute.xlu1 %2096 }
 0x2b3   :  { %v4949_v8 = vpop.permute.xlu0 %2274  ;;  %v2273_v19 = vpop.permute.xlu1 %2272 }
 0x2b4   :  { %v2303_v36 = vsel %vm1025_vm8, %v2273_v19, %v4949_v8 }
 0x2b5   :  { %v2327_v58 = vadd.f32 %v2303_v36, %v2227_v39 }
 0x2b7   :  { %v4953_v55 = vpop.permute.xlu0 %2282  ;;  %v2281_v14 = vpop.permute.xlu1 %2280  ;;  %v2339_v39 = vadd.f32 %v2327_v58, %v5616_v24 }
 0x2b8   :  { %v2306_v30 = vsel %vm1025_vm8, %v2281_v14, %v4953_v55 }
 0x2b9   :  { %v2330_v9 = vadd.f32 %v2306_v30, %v2230_v15  ;;  %v2351_v23 = vmax.f32 %v2339_v39, 0.0 }
 0x2bb   :  { %v2342_v50 = vadd.f32 %v2330_v9, %v5617_v1  ;;  %v1701_v54 = vpop.permute.xlu0 %1700  ;;  %v1693_v57 = vpop.permute.xlu1 %1692 }
 0x2bc   :  { %v1713_v49 = vsel %vm323_vm2, %v4593_v5, %v1701_v54  ;;  %v1710_v48 = vsel %vm323_vm2, %v4583_v17, %v1693_v57 }
 0x2bd   :  { %v2354_v61 = vmax.f32 %v2342_v50, 0.0  ;;  %v4971_v45 = vadd.f32 %v1713_v49, %v1637_v60  ;;  %v4973_v46 = vadd.f32 %v1710_v48, %v1634_v59 }
 0x2bf   :  { %v4975_v31 = vpop.permute.xlu0 %1884  ;;  %v4977_v15 = vpop.permute.xlu1 %1876  ;;  %v4979_v47 = vpack.c.bf16 %v2354_v61, %v2351_v23 }
 0x2c3   :  { %v2095_v43 = vpop.permute.xlu0 %2094  ;;  %v2087_v42 = vpop.permute.xlu1 %2086 }
 0x2c4   :  { %v2111_v5 = vsel %vm791_vm6, %v2095_v43, %v4947_v29  ;;  %v2108_v33 = vsel %vm791_vm6, %v2087_v42, %v2089_v13 }
 0x2c5   :  { %v4984_v17 = vadd.f32 %v2111_v5, %v2035_v38  ;;  %v4986_v18 = vadd.f32 %v2108_v33, %v2032_v27 }
 0x2c7   :  { %v2279_v0 = vpop.permute.xlu0 %2278  ;;  %v2271_v12 = vpop.permute.xlu1 %2270 }
 0x2c8   :  { %v2305_v36 = vsel %vm1025_vm8, %v2279_v0, %v2281_v14  ;;  %v2302_v58 = vsel %vm1025_vm8, %v2271_v12, %v2273_v19  ;;  %v2112_v0 = vsel %vm791_vm6, %v4947_v29, %v4945_v63  ;;  %v5025_v29 = vld [vmem:[%s5218_s5] sm:$0x1] }
 0x2c9   :  { %v2329_v6 = vadd.f32 %v2305_v36, %v2229_v20  ;;  %v2326_v44 = vadd.f32 %v2302_v58, %v2226_v51 }
 0x2cb   :  { %v2341_v30 = vadd.f32 %v2329_v6, %v5617_v1  ;;  %v2338_v35 = vadd.f32 %v2326_v44, %v5616_v24  ;;  %v4992_v62 = vpop.permute.xlu0 %2190  ;;  %v4994_v39 = vpop.permute.xlu1 %2188 }
 0x2cc   :  { %v2209_v42 = vsel %vm908_vm7, %v4994_v39, %v4992_v62 }
 0x2cd   :  { %v2353_v38 = vmax.f32 %v2341_v30, 0.0  ;;  %v2350_v13 = vmax.f32 %v2338_v35, 0.0  ;;  %v2233_v58 = vadd.f32 %v2209_v42, %v4943_v2  ;;  %v2136_v35 = vadd.f32 %v2112_v0, %v4916_v22  ;;  %v5619_v22 = vld [vmem:[#allocation107_spill] sm:$0xff] }
 0x2cf   :  { %v4996_v27 = vpack.c.bf16 %v2353_v38, %v2350_v13  ;;  %v4998_v9 = vpop.permute.xlu0 %2198  ;;  %v2197_v60 = vpop.permute.xlu1 %2196  ;;  %v5618_v13 = vld [vmem:[#allocation43_spill] sm:$0xff] }
 0x2d0   :  { %v1150_v14 = vpop.f32.mrb[0].mxu0  ;;  %v2212_v44 = vsel %vm908_vm7, %v2197_v60, %v4998_v9 }
 0x2d1   :  { %2975 = vtanh.f32 %v1150_v14  ;;  %v1152_v19 = vpop.f32.mrb[1].mxu0  ;;  %v2236_v14 = vadd.f32 %v2212_v44, %v2136_v35 }
 0x2d2   :  { %2977 = vtanh.f32 %v1152_v19  ;;  %v1154_v20 = vpop.f32.mrb[2].mxu0 }
 0x2d3   :  { %2979 = vtanh.f32 %v1154_v20  ;;  %v1156_v51 = vpop.f32.mrb[3].mxu0  ;;  %v5000_v59 = vpop.permute.xlu0 %1800 }
 0x2d4   :  { %2981 = vtanh.f32 %v1156_v51  ;;  %v5002_v50 = vpop.permute.xlu1 %1792 }
 0x2d7   :  { %v5004_v54 = vpop.permute.xlu0 %1984 }
 0x2d8   :  { %v5006_v57 = vpop.permute.xlu1 %1976 }
 0x2db   :  { %v2976_v49 = vpop.eup %2975  ;;  %v2195_v48 = vpop.permute.xlu0 %2194 }
 0x2dc   :  { %v2978_v23 = vpop.eup %2977  ;;  %v2187_v61 = vpop.permute.xlu1 %2186 }
 0x2dd   :  { %v2980_v43 = vpop.eup %2979 }
 0x2de   :  { %v2982_v5 = vpop.eup %2981  ;;  %v2905_v33 = vpack.c.bf16 %v2980_v43, %v2976_v49  ;;  %v5620_v43 = vld [vmem:[#allocation106_spill] sm:$0xff] }
 0x2df   :  { %v5014_v12 = vpop.permute.xlu0 %2290  ;;  %v2903_v36 = vpack.c.bf16 %v2982_v5, %v2978_v23 }
 0x2e0   :  { %v2289_v6 = vpop.permute.xlu1 %2288 }
 0x2e1   :  { %v2309_v30 = vsel %vm1025_vm8, %v2289_v6, %v5014_v12  ;;  %2904 = vmatprep.subr.bf16.mxu0 %v2903_v36 }
 0x2e2   :  { %v2333_v38 = vadd.f32 %v2309_v30, %v2233_v58  ;;  %2906 = vmatpush1.bf16.msra.mxu0 %v2905_v33  ;;  %v5621_v30 = vld [vmem:[#allocation48_spill] sm:$0xff] }
 0x2e3   :  { %1398 = vmatprep.subr.bf16.mxu0 %v5618_v13  ;;  %v5028_v2 = vpop.permute.xlu0 %2298 }
 0x2e4   :  { %v2297_v19 = vpop.permute.xlu1 %2296  ;;  %v2345_v51 = vadd.f32 %v2333_v38, %v5619_v22  ;;  %v2211_v38 = vsel %vm908_vm7, %v2195_v48, %v2197_v60 }
 0x2e5   :  { %v2312_v20 = vsel %vm1025_vm8, %v2297_v19, %v5028_v2  ;;  %2815 = vmatmul.mubr.msk.f32.vlgmr.msra.gmra.mrb[8].mxu0 %vm1222_vm10, %v5025_v29 }
 0x2e6   :  { %v2336_v49 = vadd.f32 %v2312_v20, %v2236_v14  ;;  %v2357_v36 = vmax.f32 %v2345_v51, 0.0  ;;  %v5622_v20 = vld [vmem:[#allocation69_spill] sm:$0xff] }
 0x2e7   :  { %v5035_v23 = vpop.permute.xlu0 %1900 }
 0x2e8   :  { %v2348_v42 = vadd.f32 %v2336_v49, %v5620_v43  ;;  %v5038_v5 = vpop.permute.xlu1 %1892  ;;  %v1193_v33 = vpop.f32.mrb[4].mxu0  ;;  %v2208_v49 = vsel %vm908_vm7, %v2187_v61, %v4994_v39 }
 0x2e9   :  { %2983 = vtanh.f32 %v1193_v33  ;;  %v2852_v0 = vpop.f32.mrb[5].mxu0  ;;  %v2235_v33 = vadd.f32 %v2211_v38, %v4984_v17  ;;  %v5624_v17 = vmov 0.0  }
 0x2ea   :  { %v2360_v58 = vmax.f32 %v2348_v42, 0.0  ;;  %v1196_v44 = vpop.f32.mrb[6].mxu0  ;;  %v2232_v42 = vadd.f32 %v2208_v49, %v4986_v18 }
 0x2eb   :  { %2985 = vtanh.f32 %v1196_v44  ;;  %1399 = vmatpush1.bf16.xpose.msra.mxu0 %v5621_v30  ;;  %v2085_v35 = vpop.permute.xlu0 %2084  ;;  %v2853_v13 = vpop.f32.mrb[7].mxu0 }
 0x2ec   :  { %v2077_v14 = vpop.permute.xlu1 %2076  ;;  %1400 = vmatprep.subr.bf16.mxu0 %v5622_v20  ;;  %v5043_v53 = vpack.c.bf16 %v2360_v58, %v2357_v36  ;;  %v5623_v36 = vld [vmem:[#allocation50_spill] sm:$0xff] }
 0x2ef   :  { %v2295_v51 = vpop.permute.xlu0 %2294 }
 0x2f0   :  { %v2311_v0 = vsel %vm1025_vm8, %v2295_v51, %v2297_v19  ;;  %v2287_v44 = vpop.permute.xlu1 %2286  ;;  %v1907_v19 = vsel %vm557_vm4, %v5599_v40, %v4975_v31  ;;  %v2004_v40 = vsel %vm674_vm5, %v4659_v21, %v5006_v57 }
 0x2f1   :  { %v2335_v30 = vadd.f32 %v2311_v0, %v2235_v33  ;;  %v2308_v13 = vsel %vm1025_vm8, %v2287_v44, %v2289_v6  ;;  %v1904_v33 = vsel %vm557_vm4, %v4603_v3, %v4977_v15  ;;  %v2107_v3 = vsel %vm791_vm6, %v4850_v10, %v2085_v35 }
 0x2f2   :  { %v2332_v60 = vadd.f32 %v2308_v13, %v2232_v42  ;;  %v2007_v42 = vsel %vm674_vm5, %v5602_v52, %v5004_v54  ;;  %v1928_v31 = vadd.f32 %v1904_v33, %v4933_v32  ;;  %v2104_v52 = vsel %vm791_vm6, %v4826_v34, %v2077_v14 }
 0x2f3   :  { %v2984_v48 = vpop.eup %2983  ;;  %v2347_v20 = vadd.f32 %v2335_v30, %v5620_v43  ;;  %1401 = vmatpush1.bf16.xpose.msra.mxu0 %v5623_v36  ;;  %v2001_v58 = vpop.permute.xlu0 %2000  ;;  %v1931_v30 = vadd.f32 %v1907_v19, %v4931_v16  ;;  %v1813_v16 = vsel %vm440_vm3, %v4649_v7, %v5000_v59  ;;  %v5625_v10 = vmov 0  }
 0x2f4   :  { %v2344_v39 = vadd.f32 %v2332_v60, %v5619_v22  ;;  %v1993_v61 = vpop.permute.xlu1 %1992  ;;  %2861 = vmatprep.subr.bf16.mxu0 %v5624_v17  ;;  %v2028_v21 = vadd.f32 %v2004_v40, %v1928_v31  ;;  %v1810_v34 = vsel %vm440_vm3, %v4639_v41, %v5002_v50  ;;  %v1913_v7 = vsel %vm557_vm4, %v4802_v56, %v5035_v23 }
 0x2f5   :  { %v2986_v38 = vpop.eup %2985  ;;  %v2359_v18 = vmax.f32 %v2347_v20, 0.0  ;;  %v2031_v15 = vadd.f32 %v2007_v42, %v1931_v30  ;;  %v1837_v59 = vadd.f32 %v1813_v16, %v4971_v45  ;;  %v1910_v13 = vsel %vm557_vm4, %v4773_v4, %v5038_v5  ;;  %v5627_v16 = vld [vmem:[#allocation7_spill] sm:$0xff] }
 0x2f6   :  { %v2356_v49 = vmax.f32 %v2344_v39, 0.0  ;;  %v2908_v6 = vpack.c.bf16 %v2986_v38, %v2984_v48  ;;  %v1834_v41 = vadd.f32 %v1810_v34, %v4973_v46  ;;  %v2010_v45 = vsel %vm674_vm5, %v4906_v25, %v1993_v61 }
 0x2f7   :  { %v2185_v51 = vpop.permute.xlu0 %2184  ;;  %v2131_v35 = vadd.f32 %v2107_v3, %v2031_v15  ;;  %v1937_v56 = vadd.f32 %v1913_v7, %v1837_v59 }
 0x2f8   :  { %v5064_v0 = vpack.c.bf16 %v2359_v18, %v2356_v49  ;;  %v2177_v44 = vpop.permute.xlu1 %2176  ;;  %2909 = vmatpush3.bf16.msra.mxu1 %v2908_v6  ;;  %v2207_v57 = vsel %vm908_vm7, %v4923_v37, %v2185_v51  ;;  %v2128_v37 = vadd.f32 %v2104_v52, %v2028_v21  ;;  %v1934_v46 = vadd.f32 %v1910_v13, %v1834_v41  ;;  %v5626_v18 = vld [vmem:[#allocation49_spill] sm:$0xff] }
 0x2f9   :  { %2368 = vmatprep.subr.bf16.mxu1 %v4979_v47  ;;  %v2204_v14 = vsel %vm908_vm7, %v4918_v11, %v2177_v44  ;;  %v2231_v60 = vadd.f32 %v2207_v57, %v2131_v35  ;;  %v2013_v11 = vsel %vm674_vm5, %v4911_v26, %v2001_v58 }
 0x2fa   :  { %v2228_v50 = vadd.f32 %v2204_v14, %v2128_v37  ;;  %v2037_v58 = vadd.f32 %v2013_v11, %v1937_v56  ;;  %v2034_v25 = vadd.f32 %v2010_v45, %v1934_v46  ;;  %v5629_v14 = vld [vmem:[#allocation5_spill] sm:$0xff] }
 0x2fb   :  { %2859 = vmatmul.mubr.msk.f32.vlgmr.msra.gmra.mrb[0].mxu1 %vm1222_vm10, %v5025_v29  ;;  %v2101_v54 = vpop.permute.xlu0 %2100  ;;  %v5630_v7 = vsub.s32 2, %v5629_v14 }
 0x2fc   :  { %v2093_v32 = vpop.permute.xlu1 %2092  ;;  %2369 = vmatpush1.bf16.msra.mxu1 %v4996_v27  ;;  %2400 = vmatprep.mubr.bf16.mxu1 %v5625_v10  ;;  %v2113_v26 = vsel %vm791_vm6, %v4945_v63, %v2101_v54 }
 0x2fd   :  { %2370 = vmatprep.subr.bf16.mxu1 %v5043_v53  ;;  %v2137_v63 = vadd.f32 %v2113_v26, %v2037_v58 }
 0x2ff   :  { %v2285_v48 = vpop.permute.xlu0 %2284 }
 0x300   :  { %v2307_v20 = vsel %vm1025_vm8, %v4953_v55, %v2285_v48  ;;  %v2277_v36 = vpop.permute.xlu1 %2276  ;;  %2371 = vmatpush1.bf16.msra.mxu1 %v5064_v0  ;;  %v2110_v55 = vsel %vm791_vm6, %v4939_v28, %v2093_v32 }
 0x301   :  { %v2331_v23 = vadd.f32 %v2307_v20, %v2231_v60  ;;  %v2304_v4 = vsel %vm1025_vm8, %v4949_v8, %v2277_v36  ;;  %2869 = vmatprep.subr.bf16.mxu1 %v5624_v17 }
 0x302   :  { %v2328_v5 = vadd.f32 %v2304_v4, %v2228_v50 }
 0x303   :  { %v2343_v39 = vadd.f32 %v2331_v23, %v5617_v1  ;;  %v2201_v38 = vpop.permute.xlu0 %2200  ;;  %2817 = vmatmul.mubr.msk.bf16.vlgmr.msra.gmra.mrb[4].mxu1 %vm1112_vm9, %v5626_v18  ;;  %v2134_v1 = vadd.f32 %v2110_v55, %v2034_v25 }
 0x304   :  { %v2340_v8 = vadd.f32 %v2328_v5, %v5616_v24  ;;  %v2213_v61 = vsel %vm908_vm7, %v4998_v9, %v2201_v38  ;;  %v2193_v19 = vpop.permute.xlu1 %2192  ;;  %2873 = vmatprep.mubr.msk.bf16.mxu1 %vm3056_vm0, %v5624_v17 }
 0x305   :  { %v2355_v49 = vmax.f32 %v2343_v39, 0.0  ;;  %v2210_v28 = vsel %vm908_vm7, %v4992_v62, %v2193_v19  ;;  %v2237_v33 = vadd.f32 %v2213_v61, %v2137_v63  ;;  %v5631_v39 = vmov 0.0|0.0  }
 0x306   :  { %v2352_v6 = vmax.f32 %v2340_v8, 0.0  ;;  %v2234_v44 = vadd.f32 %v2210_v28, %v2134_v1 }
 0x307   :  { %v2301_v51 = vpop.permute.xlu0 %2300 }
 0x308   :  { %v5123_v42 = vpack.c.bf16 %v2355_v49, %v2352_v6  ;;  %v2313_v24 = vsel %vm1025_vm8, %v5028_v2, %v2301_v51  ;;  %v2293_v9 = vpop.permute.xlu1 %2292 }
 0x309   :  { %v2337_v30 = vadd.f32 %v2313_v24, %v2237_v33  ;;  %v2310_v40 = vsel %vm1025_vm8, %v5014_v12, %v2293_v9 }
 0x30a   :  { %v2334_v31 = vadd.f32 %v2310_v40, %v2234_v44  ;;  %2870 = vmatpush3.bf16.msra.mxu1 %v5123_v42 }
 0x30b   :  { %v2349_v62 = vadd.f32 %v2337_v30, %v5620_v43  ;;  %2871 = vmatprep.subr.bf16.mxu1 %v5624_v17  ;;  %v32_v43 = vld [vmem:[%s5214_s1] sm:$0x7] }
 0x30c   :  { %v2346_v3 = vadd.f32 %v2334_v31, %v5619_v22  ;;  %v1210_v21 = vrot.slane %v32_v43, %v5627_v16  ;;  %v5628_v22 = vld [vmem:[#allocation90_spill] sm:$0xff]  ;;  %v1218_v37 = vrot.slane %v32_v43, %v5630_v7 }
 0x30d   :  { %v2361_v15 = vmax.f32 %v2349_v62, 0.0  ;;  %v1214_v57 = vrot.slane %v32_v43, %v5628_v22 }
 0x30e   :  { %v2358_v52 = vmax.f32 %v2346_v3, 0.0 }
 0x310   :  { %v5133_v54 = vpack.c.bf16 %v2361_v15, %v2358_v52 }
 0x312   :  { %2872 = vmatpush3.bf16.msra.mxu1 %v5133_v54 }
 0x315   :  { %2874 = vmatmul.mubr.msk.bf16.vlgmr.msra.gmra.mrb[8].mxu1 %vm1112_vm9, %v5626_v18 }
 0x316   :  { %2522 = vmatprep.mubr.f32.mxu1 %v5624_v17 }
 0x3b8   :  { %v1292_v12 = vpop.f32.mrb[8].mxu0 }
 0x3b9   :  { %v1294_v2 = vpop.f32.mrb[9].mxu0  ;;  %v1293_v32 = vadd.f32 %v1292_v12, %v1210_v21 }
 0x3ba   :  { %v1295_v10 = vadd.f32 %v1294_v2, %v1214_v57 }
 0x3bb   :  { %v1368_v34 = vsel %vm1367_vm11, %v1293_v32, -inf }
 0x3bc   :  { %v1369_v35 = vsel %vm1367_vm11, %v1295_v10, -inf }
 0x3bd   :  { %v1371_v59 = vmax.f32 %v1368_v34, %v1369_v35 }
 0x3ce   :  { %v1363_v13 = vpop.f32.mrb[0].mxu1 }
 0x3cf   :  { %v1364_v60 = vadd.f32 %v1363_v13, %v1218_v37  ;;  %v2860_v48 = vpop.f32.mrb[1].mxu1 }
 0x3d1   :  { %v1370_v41 = vsel %vm1367_vm11, %v1364_v60, -inf }
 0x3d2   :  { %v1372_v11 = vmax.f32 %v1371_v59, %v1370_v41 }
 0x3d4   :  { %1373 = vmax.xlane.f32.xlu0 %v1372_v11 }
 0x3d6   :  { %v2402_v50 = vpop.f32.mrb[4].mxu1 }
 0x3d7   :  { %2987 = vtanh.f32 %v2402_v50  ;;  %v2404_v20 = vpop.f32.mrb[5].mxu1 }
 0x3d8   :  { %2989 = vtanh.f32 %v2404_v20  ;;  %v2406_v36 = vpop.f32.mrb[6].mxu1 }
 0x3d9   :  { %2991 = vtanh.f32 %v2406_v36  ;;  %v2408_v56 = vpop.f32.mrb[7].mxu1 }
 0x3da   :  { %2993 = vtanh.f32 %v2408_v56 }
 0x3e1   :  { %v2988_v45 = vpop.eup %2987 }
 0x3e2   :  { %v2990_v23 = vpop.eup %2989 }
 0x3e3   :  { %v2992_v4 = vpop.eup %2991 }
 0x3e4   :  { %v2994_v46 = vpop.eup %2993  ;;  %v2912_v26 = vpack.c.bf16 %v2992_v4, %v2988_v45  ;;  %v5633_v4 = vld [vmem:[#allocation59_spill] sm:$0xff] }
 0x3e5   :  { %v2910_v5 = vpack.c.bf16 %v2994_v46, %v2990_v23  ;;  %v5632_v23 = vld [vmem:[#allocation39_spill] sm:$0xff] }
 0x3e7   :  { %2911 = vmatprep.subr.bf16.mxu1 %v2910_v5  ;;  %v2713_v5 = vld [vmem:[%s5219_s6] sm:$0xff] }
 0x3e8   :  { %v2445_v58 = vpop.f32.mrb[8].mxu1  ;;  %2913 = vmatpush1.bf16.msra.mxu1 %v2912_v26 }
 0x3e9   :  { %v2875_v55 = vpop.f32.mrb[9].mxu1  ;;  %2914 = vmatprep.subr.bf16.mxu1 %v5631_v39  ;;  %2995 = vtanh.f32 %v2445_v58  ;;  %v2714_v58 = vld [vmem:[%s5219_s6 + $0x8] sm:$0xff] }
 0x3ea   :  { %v2448_v38 = vpop.f32.mrb[10].mxu1  ;;  %v2918_v55 = vpack.c.bf16 %v2714_v58, %v2713_v5 }
 0x3eb   :  { %2997 = vtanh.f32 %v2448_v38  ;;  %v2876_v18 = vpop.f32.mrb[11].mxu1  ;;  %2819 = vmatmul.mubr.msk.f32.vlgmr.msra.gmra.mrb[2].mxu1 %vm1222_vm10, %v5025_v29 }
 0x3ec   :  { %2881 = vmatprep.mubr.msk.f32.mxu1 %vm3056_vm0, %v5624_v17 }
 0x3f3   :  { %v2996_v25 = vpop.eup %2995 }
 0x3f5   :  { %v2998_v8 = vpop.eup %2997 }
 0x3f6   :  { %v2915_v61 = vpack.c.bf16 %v2998_v8, %v2996_v25 }
 0x3f8   :  { %2916 = vmatpush3.bf16.msra.mxu1 %v2915_v61 }
 0x3f9   :  { %2629 = vmatprep.subr.bf16.mxu1 %v4979_v47 }
 0x3fb   :  { %2882 = vmatmul.mubr.msk.f32.vlgmr.msra.gmra.mrb[12].mxu1 %vm1222_vm10, %v5025_v29 }
 0x401   :  { %2630 = vmatpush1.bf16.xpose.msra.mxu1 %v4996_v27 }
 0x402   :  { %2631 = vmatprep.subr.bf16.mxu1 %v5043_v53 }
 0x409   :  { %2632 = vmatpush1.bf16.xpose.msra.mxu1 %v5064_v0 }
 0x40a   :  { %2884 = vmatprep.subr.bf16.mxu1 %v5624_v17 }
 0x461   :  { %v1374_v19 = vpop.xlane.xlu0 %1373 }
 0x462   :  { %v1375_v63 = vsub.f32 %v1293_v32, %v1374_v19  ;;  %v1376_v49 = vsub.f32 %v1295_v10, %v1374_v19  ;;  %v1377_v51 = vsub.f32 %v1364_v60, %v1374_v19 }
 0x464   :  { %v1378_v28 = vmul.f32 1.442695, %v1375_v63  ;;  %v1380_v1 = vmul.f32 1.442695, %v1376_v49  ;;  %v1382_v47 = vmul.f32 1.442695, %v1377_v51 }
 0x466   :  { %2999 = vpow2.f32 %v1378_v28 }
 0x467   :  { %3001 = vpow2.f32 %v1380_v1 }
 0x468   :  { %3003 = vpow2.f32 %v1382_v47 }
 0x470   :  { %v3000_v44 = vpop.eup %2999 }
 0x471   :  { %v3002_v53 = vpop.eup %3001  ;;  %v1384_v31 = vsel %vm1367_vm11, %v3000_v44, 0.0 }
 0x472   :  { %v1385_v62 = vsel %vm1367_vm11, %v3002_v53, 0.0  ;;  %v3004_v52 = vpop.eup %3003 }
 0x473   :  { %v1386_v2 = vadd.f32 %v1385_v62, %v1384_v31  ;;  %v1387_v43 = vsel %vm1367_vm11, %v3004_v52, 0.0 }
 0x475   :  { %v1388_v16 = vadd.f32 %v1387_v43, %v1386_v2 }
 0x4be   :  { %v2524_v6 = vpop.f32.mrb[2].mxu1 }
 0x4bf   :  { %v2526_v33 = vpop.f32.mrb[3].mxu1  ;;  %v2525_v29 = vadd.f32 %v2524_v6, %v1210_v21 }
 0x4c0   :  { %v2527_v27 = vadd.f32 %v2526_v33, %v1214_v57  ;;  %v2715_v33 = vld [vmem:[%s5219_s6 + $0x10] sm:$0xff] }
 0x4c1   :  { %v2599_v0 = vsel %vm1367_vm11, %v2525_v29, -inf }
 0x4c2   :  { %v2600_v24 = vsel %vm1367_vm11, %v2527_v27, -inf }
 0x4c3   :  { %v2602_v3 = vmax.f32 %v2599_v0, %v2600_v24 }
 0x4ce   :  { %v2595_v9 = vpop.f32.mrb[12].mxu1 }
 0x4cf   :  { %v2596_v30 = vadd.f32 %v2595_v9, %v1218_v37  ;;  %v2883_v40 = vpop.f32.mrb[13].mxu1 }
 0x4d1   :  { %v2601_v15 = vsel %vm1367_vm11, %v2596_v30, -inf }
 0x4d2   :  { %v2603_v12 = vmax.f32 %v2602_v3, %v2601_v15 }
 0x4d4   :  { %2604 = vmax.xlane.f32.xlu1 %v2603_v12 }
 0x4d8   :  { %1389 = vadd.xlane.f32.xlu1 %v1388_v16 }
 0x561   :  { %v2605_v21 = vpop.xlane.xlu1 %2604 }
 0x562   :  { %v2606_v22 = vsub.f32 %v2525_v29, %v2605_v21  ;;  %v2607_v57 = vsub.f32 %v2527_v27, %v2605_v21  ;;  %v2608_v32 = vsub.f32 %v2596_v30, %v2605_v21 }
 0x564   :  { %v2609_v10 = vmul.f32 1.442695, %v2606_v22  ;;  %v2611_v34 = vmul.f32 1.442695, %v2607_v57  ;;  %v2613_v35 = vmul.f32 1.442695, %v2608_v32 }
 0x565   :  { %v1390_v14 = vpop.xlane.xlu1 %1389 }
 0x566   :  { %3005 = vpow2.f32 %v2609_v10 }
 0x567   :  { %3007 = vpow2.f32 %v2611_v34 }
 0x568   :  { %3009 = vpow2.f32 %v2613_v35 }
 0x569   :  { %3011 = vrcp.f32 %v1390_v14 }
 0x570   :  { %v3006_v7 = vpop.eup %3005 }
 0x571   :  { %v3008_v37 = vpop.eup %3007  ;;  %v2615_v59 = vsel %vm1367_vm11, %v3006_v7, 0.0 }
 0x572   :  { %v3010_v13 = vpop.eup %3009  ;;  %v2616_v60 = vsel %vm1367_vm11, %v3008_v37, 0.0 }
 0x573   :  { %v3012_v48 = vpop.eup %3011  ;;  %v2617_v41 = vadd.f32 %v2616_v60, %v2615_v59  ;;  %v2618_v50 = vsel %vm1367_vm11, %v3010_v13, 0.0 }
 0x574   :  { %v1393_v11 = vmul.f32 %v3012_v48, %v3002_v53  ;;  %v1392_v20 = vmul.f32 %v3012_v48, %v3000_v44  ;;  %v1394_v46 = vmul.f32 %v3012_v48, %v3004_v52  ;;  %v2821_v53 = vld [vmem:[%s5220_s7] ss:$0 sm:$0xff] }
 0x575   :  { %v2619_v36 = vadd.f32 %v2618_v50, %v2617_v41 }
 0x576   :  { %v1396_v56 = vpack.c.bf16 %v1393_v11, %v1393_v11  ;;  %v1395_v45 = vpack.c.bf16 %v1392_v20, %v1392_v20  ;;  %v1397_v26 = vpack.c.bf16 %v1394_v46, %v1394_v46 }
 0x577   :  { %2620 = vadd.xlane.f32.xlu0 %v2619_v36 }
 0x578   :  { %1430 = vmatprep.mubr.bf16.mxu0 %v1396_v56 }
 0x579   :  { %1431 = vmatmul.mubr.bf16.vlgmr.msra.gmra.mrb[12].mxu0 %v1395_v45 }
 0x57a   :  { %2862 = vmatpush3.bf16.xpose.msra.mxu0 %v5632_v23  ;;  %2865 = vmatprep.mubr.msk.bf16.mxu0 %vm3056_vm0, %v5624_v17 }
 0x57b   :  { %2863 = vmatprep.subr.bf16.mxu0 %v5624_v17 }
 0x582   :  { %2864 = vmatpush3.bf16.xpose.msra.mxu0 %v5633_v4 }
 0x583   :  { %2917 = vmatprep.subr.bf16.mxu0 %v5631_v39 }
 0x589   :  { %2866 = vmatmul.mubr.bf16.vlgmr.msra.gmra.mrb[12].mxu0 %v1397_v26 }
 0x58a   :  { %2900 = vmatprep.mubr.msk.f32.mxu0 %vm3056_vm0, %v5624_v17  ;;  %2919 = vmatpush3.bf16.msra.mxu0 %v2918_v55 }
 0x58b   :  { %2920 = vmatprep.subr.bf16.mxu0 %v5631_v39 }
 0x604   :  { %v2621_v38 = vpop.xlane.xlu0 %2620 }
 0x605   :  { %3013 = vrcp.f32 %v2621_v38 }
 0x60f   :  { %v3014_v18 = vpop.eup %3013 }
 0x610   :  { %v2624_v25 = vmul.f32 %v3014_v18, %v3008_v37  ;;  %v2623_v8 = vmul.f32 %v3014_v18, %v3006_v7  ;;  %v2625_v63 = vmul.f32 %v3014_v18, %v3010_v13 }
 0x612   :  { %v2627_v61 = vpack.c.bf16 %v2624_v25, %v2624_v25  ;;  %v2626_v19 = vpack.c.bf16 %v2623_v8, %v2623_v8  ;;  %v2628_v39 = vpack.c.bf16 %v2625_v63, %v2625_v63 }
 0x614   :  { %2661 = vmatprep.mubr.bf16.mxu1 %v2627_v61 }
 0x615   :  { %2662 = vmatmul.mubr.bf16.vlgmr.msra.gmra.mrb[16].mxu1 %v2626_v19 }
 0x616   :  { %2885 = vmatpush3.bf16.xpose.msra.mxu1 %v5123_v42  ;;  %2888 = vmatprep.mubr.msk.bf16.mxu1 %vm3056_vm0, %v5624_v17  ;;  %v2716_v42 = vld [vmem:[%s5219_s6 + $0x18] sm:$0xff]  ;;  %s3015_s6 = scalar_lea.vmem %s2806_s20, 32 }
 0x617   :  { %2886 = vmatprep.subr.bf16.mxu1 %v5624_v17  ;;  %v2921_v51 = vpack.c.bf16 %v2716_v42, %v2715_v33  ;;  %p3016_p0 = scmp.ne.s32.totalorder %s2806_s20, %s3015_s6  ;;  %p3021_p2 = scmp.lt.s32.totalorder %s3015_s6, %s3015_s6 }
 0x619   :  { %2922 = vmatpush3.bf16.msra.mxu0 %v2921_v51  ;;  %p3022_p3 = por %p3021_p2, %p3020_p1 }
 0x61b   :  { %p3023_p4 = pnand %p3022_p3, %p3016_p0 }
 0x61e   :  { %2887 = vmatpush3.bf16.xpose.msra.mxu1 %v5133_v54 }
 0x625   :  { %2889 = vmatmul.mubr.bf16.vlgmr.msra.gmra.mrb[16].mxu1 %v2628_v39 }
 0x65c   :  { %v1472_v49 = vpop.f32.mrb[12].mxu0 }
 0x65d   :  { %v2867_v28 = vpop.f32.mrb[13].mxu0 }
 0x65e   :  { %v1475_v1 = vpop.f32.mrb[14].mxu0 }
 0x65f   :  { %v2868_v6 = vpop.f32.mrb[15].mxu0 }
 0x6f8   :  { %v2703_v17 = vpop.f32.mrb[16].mxu1 }
 0x6f9   :  { %v2710_v47 = vrot.slane %v2703_v17, 7  ;;  %v2890_v54 = vpop.f32.mrb[17].mxu1 }
 0x6fa   :  { %v2706_v29 = vpop.f32.mrb[18].mxu1 }
 0x6fb   :  { %v2712_v27 = vsel %vm1367_vm11, %v1472_v49, %v2710_v47  ;;  %v2891_v44 = vpop.f32.mrb[19].mxu1 }
 0x6fc   :  { %2901 = vmatmul.mubr.msk.f32.vlgmr.msra.gmra.mrb[10].mxu0 %vm1112_vm9, %v2712_v27 }
 0x7cf   :  { %v2793_v0 = vpop.f32.mrb[10].mxu0 }
 0x7d0   :  { %v2794_v24 = vadd.f32 %v2821_v53, %v2793_v0  ;;  %v2902_v9 = vpop.f32.mrb[11].mxu0 }
 0x7d2   :  { %2798 = vst.msk [vmem:[#allocation2] sm:$0x3] %vm2797_vm12, %v2794_v24 }
 0x7d3   :  { %3026 = shalt.err (!%p3023_p4)
}
 0x7d4   :  { %s3027_s23 = scalar_lea.hbm %s5221_s8, 32 }
 0x7d5   :  { %p3028_p5 = scmp.ne.s32.totalorder %s5221_s8, %s3027_s23  ;;  %p3031_p6 = scmp.lt.u32.totalorder %s3027_s23, %s5221_s8 }
 0x7d7   :  { %p3033_p7 = pnand %p3031_p6, %p3028_p5 }
 0x7d9   :  { %3036 = shalt.err (!%p3033_p7)
}
 0x7da   :  { %2808 = dma.vmem_to_hbm [thread:$0]  %s2806_s20, 32, %s5221_s8, [#allocation3]  }
 0x7db   :  { %3037 = dma.done.wait [#allocation3], 32  }
 0x7dc   :  { %3038 = vsyncadd [#allocation3], 4294967264 }
 0x7dd   :  { %2812 = vsyncpa [#allocation3], 1 }

</bundles_post_ra>
